<compile_context>
chip_gen: v7x
topology: tpu7x:2x2x1
jax: 0.10.0
libtpu: 0.0.40
codegen_flags: <defaults>
</compile_context>

<pallas_src>
import functools

import jax
import jax.numpy as jnp
from jax.experimental import pallas as pl
from jax.experimental.pallas import tpu as pltpu


def _round_up(x, m):
    return ((x + m - 1) // m) * m


def _gru_chunk_kernel(x_ref, wih_ref, whh_ref, bias_ref, bhhn_ref, o_ref,
                      gi_buf, h_ref, *, hidden, t_chunk):
    """One (batch-block, time-chunk) grid cell.

    Grid = (batch blocks [parallel], time chunks [arbitrary / sequential]).
    The hidden state is carried across time chunks in VMEM scratch.
    """
    H = hidden
    b_blk = x_ref.shape[0]
    d_in = x_ref.shape[2]

    @pl.when(pl.program_id(1) == 0)
    def _():
        # h0 is zeros in the reference module; reset at the first chunk of
        # every batch block (time axis restarts at 0 for each batch block).
        h_ref[...] = jnp.zeros_like(h_ref)

    # ---- fused input projection for the whole chunk ------------------------
    # gi = x @ W_ih^T + (b_ih + [b_hr, b_hz, 0]) as one big MXU matmul
    # (M = b_blk * t_chunk).  t_chunk is a multiple of 8, so the f32 collapse
    # (b_blk, t_chunk, D) -> (b_blk*t_chunk, D) is a tile-aligned no-op reshape.
    x2 = x_ref[...].reshape(b_blk * t_chunk, d_in).astype(jnp.bfloat16)
    gi = jnp.dot(x2, wih_ref[...], preferred_element_type=jnp.float32)
    gi = gi + bias_ref[...]                             # (1, 3H) f32 broadcast
    gi_buf[...] = gi.reshape(b_blk, t_chunk, 3 * H)

    whh = whh_ref[...]                                  # (H, 3H) bf16, resident
    bhh_n = bhhn_ref[...]                               # (1, H)  f32 n-gate bias
    h = h_ref[...]                                      # (b_blk, H) f32 carry

    # Static Python unroll: every slice index below is a compile-time constant,
    # so all VMEM accesses (gi_buf load, o_ref store) are static slices.
    for i in range(t_chunk):
        gi_i = gi_buf[:, i, :]                          # (b_blk, 3H) f32
        gh = jnp.dot(h.astype(jnp.bfloat16), whh,
                     preferred_element_type=jnp.float32)        # (b_blk, 3H)
        # PyTorch GRU gate layout along the 3H axis: [r | z | n]
        r = jax.nn.sigmoid(gi_i[:, 0:H] + gh[:, 0:H])
        z = jax.nn.sigmoid(gi_i[:, H:2 * H] + gh[:, H:2 * H])
        n = jnp.tanh(gi_i[:, 2 * H:3 * H] + r * (gh[:, 2 * H:3 * H] + bhh_n))
        h = (1.0 - z) * n + z * h
        # Batch-major output block; lane dim is H (multiple of 128).  The
        # size-1 sublane store stays in VMEM, the pipeliner writes the full
        # (b_blk, t_chunk, H) block back to HBM once per chunk.
        o_ref[:, i, :] = h.astype(o_ref.dtype)

    h_ref[...] = h


def _vmem_bytes(b_blk, t_chunk, d_in, hidden, x_itemsize, out_itemsize):
    """Rough per-core VMEM footprint (double-buffered streamed blocks +
    resident bf16 weights + scratch)."""
    streamed = 2 * b_blk * t_chunk * (d_in * x_itemsize + hidden * out_itemsize)
    weights = 2 * 2 * 3 * hidden * (d_in + hidden)      # bf16, budget 2 buffers
    scratch = b_blk * t_chunk * 3 * hidden * 4 + b_blk * hidden * 4
    biases = 2 * 4 * (3 * hidden + hidden)
    return streamed + weights + scratch + biases


def gru_encoder_t_text_forward(text, w_ih, w_hh, b_ih, b_hh, *,
                               t_chunk=16, megacore_batch_split=False):
    """text: (B, T, D_in); weights in PyTorch convention:
       w_ih: (3H, D_in), w_hh: (3H, H), b_ih: (3H,), b_hh: (3H,).
       Returns (B, T, H)."""
    B, T, D = text.shape
    H = w_hh.shape[1]

    # Folded bias: b_ih plus the r/z slices of b_hh (the n-gate recurrent bias
    # stays separate because PyTorch scales it by r).
    bias = (b_ih + jnp.concatenate([b_hh[:2 * H], jnp.zeros((H,), b_hh.dtype)])
            ).astype(jnp.float32).reshape(1, 3 * H)
    bhh_n = b_hh[2 * H:].astype(jnp.float32).reshape(1, H)

    # Resident bf16 weights for the MXU (f32 accumulation inside the kernel).
    wih_t = jnp.transpose(w_ih).astype(jnp.bfloat16)    # (D, 3H)
    whh_t = jnp.transpose(w_hh).astype(jnp.bfloat16)    # (H, 3H)

    # ---- time chunking (t_chunk kept a multiple of 8 so the in-kernel
    #      (b_blk, t_chunk, D) -> (b_blk*t_chunk, D) reshape is tile-aligned) --
    t_chunk = max(8, min(_round_up(t_chunk, 8), _round_up(T, 8)))
    T_pad = _round_up(T, t_chunk)
    nt = T_pad // t_chunk
    if T_pad != T:
        # Zero-padded trailing steps are computed and sliced off below.  The
        # hidden state keeps evolving into the padding but never feeds a
        # returned output (only `out`, not h_T, is exposed by the module).
        text = jnp.pad(text, ((0, 0), (0, T_pad - T), (0, 0)))

    # ---- batch blocking ------------------------------------------------------
    b_blk = B
    if megacore_batch_split and B >= 16 and B % 16 == 0:
        # Only worth it on 2-TensorCore chips (v7x); on v5e/v6e it just halves
        # M of the recurrent matmul and doubles per-step overhead.
        b_blk = B // 2
    x_itemsize = jnp.dtype(text.dtype).itemsize
    out_itemsize = x_itemsize
    budget = 40 * 1024 * 1024   # leaves headroom inside v7x's 64 MiB physical VMEM
    while (_vmem_bytes(b_blk, t_chunk, D, H, x_itemsize, out_itemsize) > budget
           and b_blk % 2 == 0 and b_blk > 8):
        b_blk //= 2
    nb = B // b_blk

    est = _vmem_bytes(b_blk, t_chunk, D, H, x_itemsize, out_itemsize)
    vmem_limit = int(min(max(est * 5 // 4 + (8 << 20), 32 << 20), 100 << 20))

    # TODO(synk): optionally emit bf16 outputs (halves writeback) and/or an f32
    # recurrent-matmul path for very long sequences if bf16 drift matters.
    out = pl.pallas_call(
        functools.partial(_gru_chunk_kernel, hidden=H, t_chunk=t_chunk),
        out_shape=jax.ShapeDtypeStruct((B, T_pad, H), text.dtype),
        grid_spec=pltpu.PrefetchScalarGridSpec(
            num_scalar_prefetch=0,
            grid=(nb, nt),
            in_specs=[
                pl.BlockSpec((b_blk, t_chunk, D), lambda b, t: (b, t, 0)),
                pl.BlockSpec((D, 3 * H), lambda b, t: (0, 0)),   # W_ih^T, resident
                pl.BlockSpec((H, 3 * H), lambda b, t: (0, 0)),   # W_hh^T, resident
                pl.BlockSpec((1, 3 * H), lambda b, t: (0, 0)),   # folded input bias
                pl.BlockSpec((1, H), lambda b, t: (0, 0)),       # n-gate recurrent bias
            ],
            out_specs=pl.BlockSpec((b_blk, t_chunk, H), lambda b, t: (b, t, 0)),
            scratch_shapes=[
                pltpu.VMEM((b_blk, t_chunk, 3 * H), jnp.float32),  # chunk gi
                pltpu.VMEM((b_blk, H), jnp.float32),               # hidden carry
            ],
        ),
        compiler_params=pltpu.CompilerParams(
            dimension_semantics=("parallel", "arbitrary"),  # time is sequential
            vmem_limit_bytes=vmem_limit),
    )(text, wih_t, whh_t, bias, bhh_n)

    # Module contract is batch-major (B, T, H) — already in that layout.
    return out[:, :T, :]


def _gru_reference(text, w_ih, w_hh, b_ih, b_hh):
    """Pure-JAX f32 reference (PyTorch nn.GRU semantics) for correctness check."""
    B, T, D = text.shape
    H = w_hh.shape[1]
    x_tmajor = jnp.transpose(text, (1, 0, 2)).astype(jnp.float32)

    def step(h, x):
        gi = x @ w_ih.T + b_ih
        gh = h @ w_hh.T + b_hh
        r = jax.nn.sigmoid(gi[:, 0:H] + gh[:, 0:H])
        z = jax.nn.sigmoid(gi[:, H:2 * H] + gh[:, H:2 * H])
        n = jnp.tanh(gi[:, 2 * H:3 * H] + r * gh[:, 2 * H:3 * H])
        h_new = (1.0 - z) * n + z * h
        return h_new, h_new

    h0 = jnp.zeros((B, H), jnp.float32)
    _, ys = jax.lax.scan(step, h0, x_tmajor)
    return jnp.transpose(ys, (1, 0, 2)).astype(text.dtype)


if __name__ == "__main__":
    # Small shapes consistent with the module (module hardcodes D_in=768, H=768;
    # scaled down to 128 to keep the synthetic example small but tile-aligned).
    B, T, D_in, H = 8, 6, 128, 128

    key = jax.random.PRNGKey(0)
    k_x, k_wih, k_whh, k_bih, k_bhh = jax.random.split(key, 5)

    # nn.GRU default init: uniform(-1/sqrt(H), 1/sqrt(H)); the module's
    # _initialize_weights only touches nn.Linear layers (none here).
    bound = 1.0 / (H ** 0.5)
    text = jax.random.normal(k_x, (B, T, D_in), jnp.float32)
    w_ih = jax.random.uniform(k_wih, (3 * H, D_in), jnp.float32, -bound, bound)
    w_hh = jax.random.uniform(k_whh, (3 * H, H), jnp.float32, -bound, bound)
    b_ih = jax.random.uniform(k_bih, (3 * H,), jnp.float32, -bound, bound)
    b_hh = jax.random.uniform(k_bhh, (3 * H,), jnp.float32, -bound, bound)

    out = gru_encoder_t_text_forward(text, w_ih, w_hh, b_ih, b_hh)
    out = jax.block_until_ready(out)

    ref = jax.block_until_ready(_gru_reference(text, w_ih, w_hh, b_ih, b_hh))
    assert out.shape == (B, T, H), out.shape
    # Matmuls run in bf16 on the MXU (f32 accumulation, f32 carry/gates), so the
    # tolerance vs. the pure-f32 reference is loosened accordingly.
    max_err = float(jnp.max(jnp.abs(out - ref)))
    assert jnp.allclose(out, ref, rtol=3e-2, atol=3e-2), max_err

    print("KERNEL_OK")
</pallas_src>

<mosaic_0001>
module attributes {stable_mosaic.version = 11 : i64} {
  func.func @_gru_chunk_kernel(%arg0: i32, %arg1: i32, %arg2: memref<8x8x128xf32, #tpu.memory_space<vmem>>, %arg3: memref<128x384xbf16, #tpu.memory_space<vmem>>, %arg4: memref<128x384xbf16, #tpu.memory_space<vmem>>, %arg5: memref<1x384xf32, #tpu.memory_space<vmem>>, %arg6: memref<1x128xf32, #tpu.memory_space<vmem>>, %arg7: memref<8x8x128xf32, #tpu.memory_space<vmem>>, %arg8: memref<8x8x384xf32, #tpu.memory_space<vmem>>, %arg9: memref<8x128xf32, #tpu.memory_space<vmem>>) attributes {dimension_semantics = [#tpu.dimension_semantics<parallel>, #tpu.dimension_semantics<arbitrary>], iteration_bounds = array<i64: 1, 1>, scalar_prefetch = 0 : i64, scratch_operands = 2 : i64, tpu.core_type = #tpu.core_type<tc>, window_params = [{transform_indices = @transform_0, window_bounds = array<i64: 8, 8, 128>}, {pipeline_mode = #tpu.pipeline_mode<synchronous>, transform_indices = @transform_1, window_bounds = array<i64: 128, 384>}, {pipeline_mode = #tpu.pipeline_mode<synchronous>, transform_indices = @transform_2, window_bounds = array<i64: 128, 384>}, {pipeline_mode = #tpu.pipeline_mode<synchronous>, transform_indices = @transform_3, window_bounds = array<i64: 1, 384>}, {pipeline_mode = #tpu.pipeline_mode<synchronous>, transform_indices = @transform_4, window_bounds = array<i64: 1, 128>}, {transform_indices = @transform_5, window_bounds = array<i64: 8, 8, 128>}]} {
    %c0_i32 = arith.constant 0 : i32
    %0 = arith.cmpi eq, %arg1, %c0_i32 : i32
    %1 = arith.extui %0 : i1 to i32
    %c0_i32_0 = arith.constant 0 : i32
    %2 = arith.cmpi ne, %1, %c0_i32_0 : i32
    scf.if %2 {
      %cst_91 = arith.constant 0.000000e+00 : f32
      %297 = vector.broadcast %cst_91 : f32 to vector<8x128xf32>
      %c0_92 = arith.constant 0 : index
      %c0_93 = arith.constant 0 : index
      %298 = vector.load %arg9[%c0_92, %c0_93] : memref<8x128xf32, #tpu.memory_space<vmem>>, vector<8x128xf32>
      tpu.vector_store %arg9[%c0_92, %c0_93], %297 {strides = array<i32>} : memref<8x128xf32, #tpu.memory_space<vmem>>, vector<8x128xf32>,
    } else {
    }
    %c0 = arith.constant 0 : index
    %c0_1 = arith.constant 0 : index
    %c0_2 = arith.constant 0 : index
    %3 = vector.load %arg2[%c0, %c0_1, %c0_2] : memref<8x8x128xf32, #tpu.memory_space<vmem>>, vector<8x8x128xf32>
    %4 = vector.shape_cast %3 : vector<8x8x128xf32> to vector<64x128xf32>
    %5 = arith.truncf %4 : vector<64x128xf32> to vector<64x128xbf16>
    %c0_3 = arith.constant 0 : index
    %c0_4 = arith.constant 0 : index
    %6 = vector.load %arg3[%c0_3, %c0_4] : memref<128x384xbf16, #tpu.memory_space<vmem>>, vector<128x384xbf16>
    %cst = arith.constant dense<0.000000e+00> : vector<64x384xf32>
    %7 = tpu.matmul %5, %6, %cst {dimension_numbers = #tpu.dot_dimension_numbers<[1], [0], [0], [1], [0, 0, 1, 1], [], []>} : vector<64x128xbf16>, vector<128x384xbf16>, vector<64x384xf32> -> vector<64x384xf32>
    %c0_5 = arith.constant 0 : index
    %c0_6 = arith.constant 0 : index
    %8 = vector.load %arg5[%c0_5, %c0_6] : memref<1x384xf32, #tpu.memory_space<vmem>>, vector<1x384xf32>
    %9 = vector.broadcast %8 : vector<1x384xf32> to vector<64x384xf32>
    %10 = arith.addf %7, %9 : vector<64x384xf32>
    %11 = vector.shape_cast %10 : vector<64x384xf32> to vector<8x8x384xf32>
    %c0_7 = arith.constant 0 : index
    %c0_8 = arith.constant 0 : index
    %c0_9 = arith.constant 0 : index
    %12 = vector.load %arg8[%c0_7, %c0_8, %c0_9] : memref<8x8x384xf32, #tpu.memory_space<vmem>>, vector<8x8x384xf32>
    tpu.vector_store %arg8[%c0_7, %c0_8, %c0_9], %11 {strides = array<i32>} : memref<8x8x384xf32, #tpu.memory_space<vmem>>, vector<8x8x384xf32>,
    %c0_10 = arith.constant 0 : index
    %c0_11 = arith.constant 0 : index
    %13 = vector.load %arg4[%c0_10, %c0_11] : memref<128x384xbf16, #tpu.memory_space<vmem>>, vector<128x384xbf16>
    %c0_12 = arith.constant 0 : index
    %c0_13 = arith.constant 0 : index
    %14 = vector.load %arg6[%c0_12, %c0_13] : memref<1x128xf32, #tpu.memory_space<vmem>>, vector<1x128xf32>
    %c0_14 = arith.constant 0 : index
    %c0_15 = arith.constant 0 : index
    %15 = vector.load %arg9[%c0_14, %c0_15] : memref<8x128xf32, #tpu.memory_space<vmem>>, vector<8x128xf32>
    %c0_16 = arith.constant 0 : index
    %c0_17 = arith.constant 0 : index
    %c0_18 = arith.constant 0 : index
    %16 = vector.load %arg8[%c0_16, %c0_17, %c0_18] : memref<8x8x384xf32, #tpu.memory_space<vmem>>, vector<8x1x384xf32>
    %17 = vector.shape_cast %16 : vector<8x1x384xf32> to vector<8x384xf32>
    %18 = arith.truncf %15 : vector<8x128xf32> to vector<8x128xbf16>
    %cst_19 = arith.constant dense<0.000000e+00> : vector<8x384xf32>
    %19 = tpu.matmul %18, %13, %cst_19 {dimension_numbers = #tpu.dot_dimension_numbers<[1], [0], [0], [1], [0, 0, 1, 1], [], []>} : vector<8x128xbf16>, vector<128x384xbf16>, vector<8x384xf32> -> vector<8x384xf32>
    %20 = vector.extract_strided_slice %17 {offsets = [0, 0], sizes = [8, 128], strides = [1, 1]} : vector<8x384xf32> to vector<8x128xf32>
    %21 = vector.extract_strided_slice %19 {offsets = [0, 0], sizes = [8, 128], strides = [1, 1]} : vector<8x384xf32> to vector<8x128xf32>
    %22 = arith.addf %20, %21 : vector<8x128xf32>
    %23 = arith.negf %22 : vector<8x128xf32>
    %24 = math.exp %23 : vector<8x128xf32>
    %cst_20 = arith.constant 1.000000e+00 : f32
    %25 = vector.broadcast %cst_20 : f32 to vector<8x128xf32>
    %26 = arith.addf %25, %24 : vector<8x128xf32>
    %27 = arith.divf %25, %26 : vector<8x128xf32>
    %28 = vector.extract_strided_slice %17 {offsets = [0, 128], sizes = [8, 128], strides = [1, 1]} : vector<8x384xf32> to vector<8x128xf32>
    %29 = vector.extract_strided_slice %19 {offsets = [0, 128], sizes = [8, 128], strides = [1, 1]} : vector<8x384xf32> to vector<8x128xf32>
    %30 = arith.addf %28, %29 : vector<8x128xf32>
    %31 = arith.negf %30 : vector<8x128xf32>
    %32 = math.exp %31 : vector<8x128xf32>
    %cst_21 = arith.constant 1.000000e+00 : f32
    %33 = vector.broadcast %cst_21 : f32 to vector<8x128xf32>
    %34 = arith.addf %33, %32 : vector<8x128xf32>
    %35 = arith.divf %33, %34 : vector<8x128xf32>
    %36 = vector.extract_strided_slice %17 {offsets = [0, 256], sizes = [8, 128], strides = [1, 1]} : vector<8x384xf32> to vector<8x128xf32>
    %37 = vector.extract_strided_slice %19 {offsets = [0, 256], sizes = [8, 128], strides = [1, 1]} : vector<8x384xf32> to vector<8x128xf32>
    %38 = vector.broadcast %14 : vector<1x128xf32> to vector<8x128xf32>
    %39 = arith.addf %37, %38 : vector<8x128xf32>
    %40 = arith.mulf %27, %39 : vector<8x128xf32>
    %41 = arith.addf %36, %40 : vector<8x128xf32>
    %42 = math.tanh %41 : vector<8x128xf32>
    %cst_22 = arith.constant 1.000000e+00 : f32
    %43 = vector.broadcast %cst_22 : f32 to vector<8x128xf32>
    %44 = arith.subf %43, %35 : vector<8x128xf32>
    %45 = arith.mulf %44, %42 : vector<8x128xf32>
    %46 = arith.mulf %35, %15 : vector<8x128xf32>
    %47 = arith.addf %45, %46 : vector<8x128xf32>
    %c0_23 = arith.constant 0 : index
    %c0_24 = arith.constant 0 : index
    %c0_25 = arith.constant 0 : index
    %48 = vector.load %arg7[%c0_23, %c0_24, %c0_25] : memref<8x8x128xf32, #tpu.memory_space<vmem>>, vector<8x1x128xf32>
    %49 = vector.shape_cast %48 : vector<8x1x128xf32> to vector<8x128xf32>
    %50 = vector.shape_cast %47 : vector<8x128xf32> to vector<8x1x128xf32>
    tpu.vector_store %arg7[%c0_23, %c0_24, %c0_25], %50 {strides = array<i32>} : memref<8x8x128xf32, #tpu.memory_space<vmem>>, vector<8x1x128xf32>,
    %c0_26 = arith.constant 0 : index
    %c1 = arith.constant 1 : index
    %c0_27 = arith.constant 0 : index
    %51 = vector.load %arg8[%c0_26, %c1, %c0_27] : memref<8x8x384xf32, #tpu.memory_space<vmem>>, vector<8x1x384xf32>
    %52 = vector.shape_cast %51 : vector<8x1x384xf32> to vector<8x384xf32>
    %53 = arith.truncf %47 : vector<8x128xf32> to vector<8x128xbf16>
    %cst_28 = arith.constant dense<0.000000e+00> : vector<8x384xf32>
    %54 = tpu.matmul %53, %13, %cst_28 {dimension_numbers = #tpu.dot_dimension_numbers<[1], [0], [0], [1], [0, 0, 1, 1], [], []>} : vector<8x128xbf16>, vector<128x384xbf16>, vector<8x384xf32> -> vector<8x384xf32>
    %55 = vector.extract_strided_slice %52 {offsets = [0, 0], sizes = [8, 128], strides = [1, 1]} : vector<8x384xf32> to vector<8x128xf32>
    %56 = vector.extract_strided_slice %54 {offsets = [0, 0], sizes = [8, 128], strides = [1, 1]} : vector<8x384xf32> to vector<8x128xf32>
    %57 = arith.addf %55, %56 : vector<8x128xf32>
    %58 = arith.negf %57 : vector<8x128xf32>
    %59 = math.exp %58 : vector<8x128xf32>
    %cst_29 = arith.constant 1.000000e+00 : f32
    %60 = vector.broadcast %cst_29 : f32 to vector<8x128xf32>
    %61 = arith.addf %60, %59 : vector<8x128xf32>
    %62 = arith.divf %60, %61 : vector<8x128xf32>
    %63 = vector.extract_strided_slice %52 {offsets = [0, 128], sizes = [8, 128], strides = [1, 1]} : vector<8x384xf32> to vector<8x128xf32>
    %64 = vector.extract_strided_slice %54 {offsets = [0, 128], sizes = [8, 128], strides = [1, 1]} : vector<8x384xf32> to vector<8x128xf32>
    %65 = arith.addf %63, %64 : vector<8x128xf32>
    %66 = arith.negf %65 : vector<8x128xf32>
    %67 = math.exp %66 : vector<8x128xf32>
    %cst_30 = arith.constant 1.000000e+00 : f32
    %68 = vector.broadcast %cst_30 : f32 to vector<8x128xf32>
    %69 = arith.addf %68, %67 : vector<8x128xf32>
    %70 = arith.divf %68, %69 : vector<8x128xf32>
    %71 = vector.extract_strided_slice %52 {offsets = [0, 256], sizes = [8, 128], strides = [1, 1]} : vector<8x384xf32> to vector<8x128xf32>
    %72 = vector.extract_strided_slice %54 {offsets = [0, 256], sizes = [8, 128], strides = [1, 1]} : vector<8x384xf32> to vector<8x128xf32>
    %73 = vector.broadcast %14 : vector<1x128xf32> to vector<8x128xf32>
    %74 = arith.addf %72, %73 : vector<8x128xf32>
    %75 = arith.mulf %62, %74 : vector<8x128xf32>
    %76 = arith.addf %71, %75 : vector<8x128xf32>
    %77 = math.tanh %76 : vector<8x128xf32>
    %cst_31 = arith.constant 1.000000e+00 : f32
    %78 = vector.broadcast %cst_31 : f32 to vector<8x128xf32>
    %79 = arith.subf %78, %70 : vector<8x128xf32>
    %80 = arith.mulf %79, %77 : vector<8x128xf32>
    %81 = arith.mulf %70, %47 : vector<8x128xf32>
    %82 = arith.addf %80, %81 : vector<8x128xf32>
    %c0_32 = arith.constant 0 : index
    %c1_33 = arith.constant 1 : index
    %c0_34 = arith.constant 0 : index
    %83 = vector.load %arg7[%c0_32, %c1_33, %c0_34] : memref<8x8x128xf32, #tpu.memory_space<vmem>>, vector<8x1x128xf32>
    %84 = vector.shape_cast %83 : vector<8x1x128xf32> to vector<8x128xf32>
    %85 = vector.shape_cast %82 : vector<8x128xf32> to vector<8x1x128xf32>
    tpu.vector_store %arg7[%c0_32, %c1_33, %c0_34], %85 {strides = array<i32>} : memref<8x8x128xf32, #tpu.memory_space<vmem>>, vector<8x1x128xf32>,
    %c0_35 = arith.constant 0 : index
    %c2 = arith.constant 2 : index
    %c0_36 = arith.constant 0 : index
    %86 = vector.load %arg8[%c0_35, %c2, %c0_36] : memref<8x8x384xf32, #tpu.memory_space<vmem>>, vector<8x1x384xf32>
    %87 = vector.shape_cast %86 : vector<8x1x384xf32> to vector<8x384xf32>
    %88 = arith.truncf %82 : vector<8x128xf32> to vector<8x128xbf16>
    %cst_37 = arith.constant dense<0.000000e+00> : vector<8x384xf32>
    %89 = tpu.matmul %88, %13, %cst_37 {dimension_numbers = #tpu.dot_dimension_numbers<[1], [0], [0], [1], [0, 0, 1, 1], [], []>} : vector<8x128xbf16>, vector<128x384xbf16>, vector<8x384xf32> -> vector<8x384xf32>
    %90 = vector.extract_strided_slice %87 {offsets = [0, 0], sizes = [8, 128], strides = [1, 1]} : vector<8x384xf32> to vector<8x128xf32>
    %91 = vector.extract_strided_slice %89 {offsets = [0, 0], sizes = [8, 128], strides = [1, 1]} : vector<8x384xf32> to vector<8x128xf32>
    %92 = arith.addf %90, %91 : vector<8x128xf32>
    %93 = arith.negf %92 : vector<8x128xf32>
    %94 = math.exp %93 : vector<8x128xf32>
    %cst_38 = arith.constant 1.000000e+00 : f32
    %95 = vector.broadcast %cst_38 : f32 to vector<8x128xf32>
    %96 = arith.addf %95, %94 : vector<8x128xf32>
    %97 = arith.divf %95, %96 : vector<8x128xf32>
    %98 = vector.extract_strided_slice %87 {offsets = [0, 128], sizes = [8, 128], strides = [1, 1]} : vector<8x384xf32> to vector<8x128xf32>
    %99 = vector.extract_strided_slice %89 {offsets = [0, 128], sizes = [8, 128], strides = [1, 1]} : vector<8x384xf32> to vector<8x128xf32>
    %100 = arith.addf %98, %99 : vector<8x128xf32>
    %101 = arith.negf %100 : vector<8x128xf32>
    %102 = math.exp %101 : vector<8x128xf32>
    %cst_39 = arith.constant 1.000000e+00 : f32
    %103 = vector.broadcast %cst_39 : f32 to vector<8x128xf32>
    %104 = arith.addf %103, %102 : vector<8x128xf32>
    %105 = arith.divf %103, %104 : vector<8x128xf32>
    %106 = vector.extract_strided_slice %87 {offsets = [0, 256], sizes = [8, 128], strides = [1, 1]} : vector<8x384xf32> to vector<8x128xf32>
    %107 = vector.extract_strided_slice %89 {offsets = [0, 256], sizes = [8, 128], strides = [1, 1]} : vector<8x384xf32> to vector<8x128xf32>
    %108 = vector.broadcast %14 : vector<1x128xf32> to vector<8x128xf32>
    %109 = arith.addf %107, %108 : vector<8x128xf32>
    %110 = arith.mulf %97, %109 : vector<8x128xf32>
    %111 = arith.addf %106, %110 : vector<8x128xf32>
    %112 = math.tanh %111 : vector<8x128xf32>
    %cst_40 = arith.constant 1.000000e+00 : f32
    %113 = vector.broadcast %cst_40 : f32 to vector<8x128xf32>
    %114 = arith.subf %113, %105 : vector<8x128xf32>
    %115 = arith.mulf %114, %112 : vector<8x128xf32>
    %116 = arith.mulf %105, %82 : vector<8x128xf32>
    %117 = arith.addf %115, %116 : vector<8x128xf32>
    %c0_41 = arith.constant 0 : index
    %c2_42 = arith.constant 2 : index
    %c0_43 = arith.constant 0 : index
    %118 = vector.load %arg7[%c0_41, %c2_42, %c0_43] : memref<8x8x128xf32, #tpu.memory_space<vmem>>, vector<8x1x128xf32>
    %119 = vector.shape_cast %118 : vector<8x1x128xf32> to vector<8x128xf32>
    %120 = vector.shape_cast %117 : vector<8x128xf32> to vector<8x1x128xf32>
    tpu.vector_store %arg7[%c0_41, %c2_42, %c0_43], %120 {strides = array<i32>} : memref<8x8x128xf32, #tpu.memory_space<vmem>>, vector<8x1x128xf32>,
    %c0_44 = arith.constant 0 : index
    %c3 = arith.constant 3 : index
    %c0_45 = arith.constant 0 : index
    %121 = vector.load %arg8[%c0_44, %c3, %c0_45] : memref<8x8x384xf32, #tpu.memory_space<vmem>>, vector<8x1x384xf32>
    %122 = vector.shape_cast %121 : vector<8x1x384xf32> to vector<8x384xf32>
    %123 = arith.truncf %117 : vector<8x128xf32> to vector<8x128xbf16>
    %cst_46 = arith.constant dense<0.000000e+00> : vector<8x384xf32>
    %124 = tpu.matmul %123, %13, %cst_46 {dimension_numbers = #tpu.dot_dimension_numbers<[1], [0], [0], [1], [0, 0, 1, 1], [], []>} : vector<8x128xbf16>, vector<128x384xbf16>, vector<8x384xf32> -> vector<8x384xf32>
    %125 = vector.extract_strided_slice %122 {offsets = [0, 0], sizes = [8, 128], strides = [1, 1]} : vector<8x384xf32> to vector<8x128xf32>
    %126 = vector.extract_strided_slice %124 {offsets = [0, 0], sizes = [8, 128], strides = [1, 1]} : vector<8x384xf32> to vector<8x128xf32>
    %127 = arith.addf %125, %126 : vector<8x128xf32>
    %128 = arith.negf %127 : vector<8x128xf32>
    %129 = math.exp %128 : vector<8x128xf32>
    %cst_47 = arith.constant 1.000000e+00 : f32
    %130 = vector.broadcast %cst_47 : f32 to vector<8x128xf32>
    %131 = arith.addf %130, %129 : vector<8x128xf32>
    %132 = arith.divf %130, %131 : vector<8x128xf32>
    %133 = vector.extract_strided_slice %122 {offsets = [0, 128], sizes = [8, 128], strides = [1, 1]} : vector<8x384xf32> to vector<8x128xf32>
    %134 = vector.extract_strided_slice %124 {offsets = [0, 128], sizes = [8, 128], strides = [1, 1]} : vector<8x384xf32> to vector<8x128xf32>
    %135 = arith.addf %133, %134 : vector<8x128xf32>
    %136 = arith.negf %135 : vector<8x128xf32>
    %137 = math.exp %136 : vector<8x128xf32>
    %cst_48 = arith.constant 1.000000e+00 : f32
    %138 = vector.broadcast %cst_48 : f32 to vector<8x128xf32>
    %139 = arith.addf %138, %137 : vector<8x128xf32>
    %140 = arith.divf %138, %139 : vector<8x128xf32>
    %141 = vector.extract_strided_slice %122 {offsets = [0, 256], sizes = [8, 128], strides = [1, 1]} : vector<8x384xf32> to vector<8x128xf32>
    %142 = vector.extract_strided_slice %124 {offsets = [0, 256], sizes = [8, 128], strides = [1, 1]} : vector<8x384xf32> to vector<8x128xf32>
    %143 = vector.broadcast %14 : vector<1x128xf32> to vector<8x128xf32>
    %144 = arith.addf %142, %143 : vector<8x128xf32>
    %145 = arith.mulf %132, %144 : vector<8x128xf32>
    %146 = arith.addf %141, %145 : vector<8x128xf32>
    %147 = math.tanh %146 : vector<8x128xf32>
    %cst_49 = arith.constant 1.000000e+00 : f32
    %148 = vector.broadcast %cst_49 : f32 to vector<8x128xf32>
    %149 = arith.subf %148, %140 : vector<8x128xf32>
    %150 = arith.mulf %149, %147 : vector<8x128xf32>
    %151 = arith.mulf %140, %117 : vector<8x128xf32>
    %152 = arith.addf %150, %151 : vector<8x128xf32>
    %c0_50 = arith.constant 0 : index
    %c3_51 = arith.constant 3 : index
    %c0_52 = arith.constant 0 : index
    %153 = vector.load %arg7[%c0_50, %c3_51, %c0_52] : memref<8x8x128xf32, #tpu.memory_space<vmem>>, vector<8x1x128xf32>
    %154 = vector.shape_cast %153 : vector<8x1x128xf32> to vector<8x128xf32>
    %155 = vector.shape_cast %152 : vector<8x128xf32> to vector<8x1x128xf32>
    tpu.vector_store %arg7[%c0_50, %c3_51, %c0_52], %155 {strides = array<i32>} : memref<8x8x128xf32, #tpu.memory_space<vmem>>, vector<8x1x128xf32>,
    %c0_53 = arith.constant 0 : index
    %c4 = arith.constant 4 : index
    %c0_54 = arith.constant 0 : index
    %156 = vector.load %arg8[%c0_53, %c4, %c0_54] : memref<8x8x384xf32, #tpu.memory_space<vmem>>, vector<8x1x384xf32>
    %157 = vector.shape_cast %156 : vector<8x1x384xf32> to vector<8x384xf32>
    %158 = arith.truncf %152 : vector<8x128xf32> to vector<8x128xbf16>
    %cst_55 = arith.constant dense<0.000000e+00> : vector<8x384xf32>
    %159 = tpu.matmul %158, %13, %cst_55 {dimension_numbers = #tpu.dot_dimension_numbers<[1], [0], [0], [1], [0, 0, 1, 1], [], []>} : vector<8x128xbf16>, vector<128x384xbf16>, vector<8x384xf32> -> vector<8x384xf32>
    %160 = vector.extract_strided_slice %157 {offsets = [0, 0], sizes = [8, 128], strides = [1, 1]} : vector<8x384xf32> to vector<8x128xf32>
    %161 = vector.extract_strided_slice %159 {offsets = [0, 0], sizes = [8, 128], strides = [1, 1]} : vector<8x384xf32> to vector<8x128xf32>
    %162 = arith.addf %160, %161 : vector<8x128xf32>
    %163 = arith.negf %162 : vector<8x128xf32>
    %164 = math.exp %163 : vector<8x128xf32>
    %cst_56 = arith.constant 1.000000e+00 : f32
    %165 = vector.broadcast %cst_56 : f32 to vector<8x128xf32>
    %166 = arith.addf %165, %164 : vector<8x128xf32>
    %167 = arith.divf %165, %166 : vector<8x128xf32>
    %168 = vector.extract_strided_slice %157 {offsets = [0, 128], sizes = [8, 128], strides = [1, 1]} : vector<8x384xf32> to vector<8x128xf32>
    %169 = vector.extract_strided_slice %159 {offsets = [0, 128], sizes = [8, 128], strides = [1, 1]} : vector<8x384xf32> to vector<8x128xf32>
    %170 = arith.addf %168, %169 : vector<8x128xf32>
    %171 = arith.negf %170 : vector<8x128xf32>
    %172 = math.exp %171 : vector<8x128xf32>
    %cst_57 = arith.constant 1.000000e+00 : f32
    %173 = vector.broadcast %cst_57 : f32 to vector<8x128xf32>
    %174 = arith.addf %173, %172 : vector<8x128xf32>
    %175 = arith.divf %173, %174 : vector<8x128xf32>
    %176 = vector.extract_strided_slice %157 {offsets = [0, 256], sizes = [8, 128], strides = [1, 1]} : vector<8x384xf32> to vector<8x128xf32>
    %177 = vector.extract_strided_slice %159 {offsets = [0, 256], sizes = [8, 128], strides = [1, 1]} : vector<8x384xf32> to vector<8x128xf32>
    %178 = vector.broadcast %14 : vector<1x128xf32> to vector<8x128xf32>
    %179 = arith.addf %177, %178 : vector<8x128xf32>
    %180 = arith.mulf %167, %179 : vector<8x128xf32>
    %181 = arith.addf %176, %180 : vector<8x128xf32>
    %182 = math.tanh %181 : vector<8x128xf32>
    %cst_58 = arith.constant 1.000000e+00 : f32
    %183 = vector.broadcast %cst_58 : f32 to vector<8x128xf32>
    %184 = arith.subf %183, %175 : vector<8x128xf32>
    %185 = arith.mulf %184, %182 : vector<8x128xf32>
    %186 = arith.mulf %175, %152 : vector<8x128xf32>
    %187 = arith.addf %185, %186 : vector<8x128xf32>
    %c0_59 = arith.constant 0 : index
    %c4_60 = arith.constant 4 : index
    %c0_61 = arith.constant 0 : index
    %188 = vector.load %arg7[%c0_59, %c4_60, %c0_61] : memref<8x8x128xf32, #tpu.memory_space<vmem>>, vector<8x1x128xf32>
    %189 = vector.shape_cast %188 : vector<8x1x128xf32> to vector<8x128xf32>
    %190 = vector.shape_cast %187 : vector<8x128xf32> to vector<8x1x128xf32>
    tpu.vector_store %arg7[%c0_59, %c4_60, %c0_61], %190 {strides = array<i32>} : memref<8x8x128xf32, #tpu.memory_space<vmem>>, vector<8x1x128xf32>,
    %c0_62 = arith.constant 0 : index
    %c5 = arith.constant 5 : index
    %c0_63 = arith.constant 0 : index
    %191 = vector.load %arg8[%c0_62, %c5, %c0_63] : memref<8x8x384xf32, #tpu.memory_space<vmem>>, vector<8x1x384xf32>
    %192 = vector.shape_cast %191 : vector<8x1x384xf32> to vector<8x384xf32>
    %193 = arith.truncf %187 : vector<8x128xf32> to vector<8x128xbf16>
    %cst_64 = arith.constant dense<0.000000e+00> : vector<8x384xf32>
    %194 = tpu.matmul %193, %13, %cst_64 {dimension_numbers = #tpu.dot_dimension_numbers<[1], [0], [0], [1], [0, 0, 1, 1], [], []>} : vector<8x128xbf16>, vector<128x384xbf16>, vector<8x384xf32> -> vector<8x384xf32>
    %195 = vector.extract_strided_slice %192 {offsets = [0, 0], sizes = [8, 128], strides = [1, 1]} : vector<8x384xf32> to vector<8x128xf32>
    %196 = vector.extract_strided_slice %194 {offsets = [0, 0], sizes = [8, 128], strides = [1, 1]} : vector<8x384xf32> to vector<8x128xf32>
    %197 = arith.addf %195, %196 : vector<8x128xf32>
    %198 = arith.negf %197 : vector<8x128xf32>
    %199 = math.exp %198 : vector<8x128xf32>
    %cst_65 = arith.constant 1.000000e+00 : f32
    %200 = vector.broadcast %cst_65 : f32 to vector<8x128xf32>
    %201 = arith.addf %200, %199 : vector<8x128xf32>
    %202 = arith.divf %200, %201 : vector<8x128xf32>
    %203 = vector.extract_strided_slice %192 {offsets = [0, 128], sizes = [8, 128], strides = [1, 1]} : vector<8x384xf32> to vector<8x128xf32>
    %204 = vector.extract_strided_slice %194 {offsets = [0, 128], sizes = [8, 128], strides = [1, 1]} : vector<8x384xf32> to vector<8x128xf32>
    %205 = arith.addf %203, %204 : vector<8x128xf32>
    %206 = arith.negf %205 : vector<8x128xf32>
    %207 = math.exp %206 : vector<8x128xf32>
    %cst_66 = arith.constant 1.000000e+00 : f32
    %208 = vector.broadcast %cst_66 : f32 to vector<8x128xf32>
    %209 = arith.addf %208, %207 : vector<8x128xf32>
    %210 = arith.divf %208, %209 : vector<8x128xf32>
    %211 = vector.extract_strided_slice %192 {offsets = [0, 256], sizes = [8, 128], strides = [1, 1]} : vector<8x384xf32> to vector<8x128xf32>
    %212 = vector.extract_strided_slice %194 {offsets = [0, 256], sizes = [8, 128], strides = [1, 1]} : vector<8x384xf32> to vector<8x128xf32>
    %213 = vector.broadcast %14 : vector<1x128xf32> to vector<8x128xf32>
    %214 = arith.addf %212, %213 : vector<8x128xf32>
    %215 = arith.mulf %202, %214 : vector<8x128xf32>
    %216 = arith.addf %211, %215 : vector<8x128xf32>
    %217 = math.tanh %216 : vector<8x128xf32>
    %cst_67 = arith.constant 1.000000e+00 : f32
    %218 = vector.broadcast %cst_67 : f32 to vector<8x128xf32>
    %219 = arith.subf %218, %210 : vector<8x128xf32>
    %220 = arith.mulf %219, %217 : vector<8x128xf32>
    %221 = arith.mulf %210, %187 : vector<8x128xf32>
    %222 = arith.addf %220, %221 : vector<8x128xf32>
    %c0_68 = arith.constant 0 : index
    %c5_69 = arith.constant 5 : index
    %c0_70 = arith.constant 0 : index
    %223 = vector.load %arg7[%c0_68, %c5_69, %c0_70] : memref<8x8x128xf32, #tpu.memory_space<vmem>>, vector<8x1x128xf32>
    %224 = vector.shape_cast %223 : vector<8x1x128xf32> to vector<8x128xf32>
    %225 = vector.shape_cast %222 : vector<8x128xf32> to vector<8x1x128xf32>
    tpu.vector_store %arg7[%c0_68, %c5_69, %c0_70], %225 {strides = array<i32>} : memref<8x8x128xf32, #tpu.memory_space<vmem>>, vector<8x1x128xf32>,
    %c0_71 = arith.constant 0 : index
    %c6 = arith.constant 6 : index
    %c0_72 = arith.constant 0 : index
    %226 = vector.load %arg8[%c0_71, %c6, %c0_72] : memref<8x8x384xf32, #tpu.memory_space<vmem>>, vector<8x1x384xf32>
    %227 = vector.shape_cast %226 : vector<8x1x384xf32> to vector<8x384xf32>
    %228 = arith.truncf %222 : vector<8x128xf32> to vector<8x128xbf16>
    %cst_73 = arith.constant dense<0.000000e+00> : vector<8x384xf32>
    %229 = tpu.matmul %228, %13, %cst_73 {dimension_numbers = #tpu.dot_dimension_numbers<[1], [0], [0], [1], [0, 0, 1, 1], [], []>} : vector<8x128xbf16>, vector<128x384xbf16>, vector<8x384xf32> -> vector<8x384xf32>
    %230 = vector.extract_strided_slice %227 {offsets = [0, 0], sizes = [8, 128], strides = [1, 1]} : vector<8x384xf32> to vector<8x128xf32>
    %231 = vector.extract_strided_slice %229 {offsets = [0, 0], sizes = [8, 128], strides = [1, 1]} : vector<8x384xf32> to vector<8x128xf32>
    %232 = arith.addf %230, %231 : vector<8x128xf32>
    %233 = arith.negf %232 : vector<8x128xf32>
    %234 = math.exp %233 : vector<8x128xf32>
    %cst_74 = arith.constant 1.000000e+00 : f32
    %235 = vector.broadcast %cst_74 : f32 to vector<8x128xf32>
    %236 = arith.addf %235, %234 : vector<8x128xf32>
    %237 = arith.divf %235, %236 : vector<8x128xf32>
    %238 = vector.extract_strided_slice %227 {offsets = [0, 128], sizes = [8, 128], strides = [1, 1]} : vector<8x384xf32> to vector<8x128xf32>
    %239 = vector.extract_strided_slice %229 {offsets = [0, 128], sizes = [8, 128], strides = [1, 1]} : vector<8x384xf32> to vector<8x128xf32>
    %240 = arith.addf %238, %239 : vector<8x128xf32>
    %241 = arith.negf %240 : vector<8x128xf32>
    %242 = math.exp %241 : vector<8x128xf32>
    %cst_75 = arith.constant 1.000000e+00 : f32
    %243 = vector.broadcast %cst_75 : f32 to vector<8x128xf32>
    %244 = arith.addf %243, %242 : vector<8x128xf32>
    %245 = arith.divf %243, %244 : vector<8x128xf32>
    %246 = vector.extract_strided_slice %227 {offsets = [0, 256], sizes = [8, 128], strides = [1, 1]} : vector<8x384xf32> to vector<8x128xf32>
    %247 = vector.extract_strided_slice %229 {offsets = [0, 256], sizes = [8, 128], strides = [1, 1]} : vector<8x384xf32> to vector<8x128xf32>
    %248 = vector.broadcast %14 : vector<1x128xf32> to vector<8x128xf32>
    %249 = arith.addf %247, %248 : vector<8x128xf32>
    %250 = arith.mulf %237, %249 : vector<8x128xf32>
    %251 = arith.addf %246, %250 : vector<8x128xf32>
    %252 = math.tanh %251 : vector<8x128xf32>
    %cst_76 = arith.constant 1.000000e+00 : f32
    %253 = vector.broadcast %cst_76 : f32 to vector<8x128xf32>
    %254 = arith.subf %253, %245 : vector<8x128xf32>
    %255 = arith.mulf %254, %252 : vector<8x128xf32>
    %256 = arith.mulf %245, %222 : vector<8x128xf32>
    %257 = arith.addf %255, %256 : vector<8x128xf32>
    %c0_77 = arith.constant 0 : index
    %c6_78 = arith.constant 6 : index
    %c0_79 = arith.constant 0 : index
    %258 = vector.load %arg7[%c0_77, %c6_78, %c0_79] : memref<8x8x128xf32, #tpu.memory_space<vmem>>, vector<8x1x128xf32>
    %259 = vector.shape_cast %258 : vector<8x1x128xf32> to vector<8x128xf32>
    %260 = vector.shape_cast %257 : vector<8x128xf32> to vector<8x1x128xf32>
    tpu.vector_store %arg7[%c0_77, %c6_78, %c0_79], %260 {strides = array<i32>} : memref<8x8x128xf32, #tpu.memory_space<vmem>>, vector<8x1x128xf32>,
    %c0_80 = arith.constant 0 : index
    %c7 = arith.constant 7 : index
    %c0_81 = arith.constant 0 : index
    %261 = vector.load %arg8[%c0_80, %c7, %c0_81] : memref<8x8x384xf32, #tpu.memory_space<vmem>>, vector<8x1x384xf32>
    %262 = vector.shape_cast %261 : vector<8x1x384xf32> to vector<8x384xf32>
    %263 = arith.truncf %257 : vector<8x128xf32> to vector<8x128xbf16>
    %cst_82 = arith.constant dense<0.000000e+00> : vector<8x384xf32>
    %264 = tpu.matmul %263, %13, %cst_82 {dimension_numbers = #tpu.dot_dimension_numbers<[1], [0], [0], [1], [0, 0, 1, 1], [], []>} : vector<8x128xbf16>, vector<128x384xbf16>, vector<8x384xf32> -> vector<8x384xf32>
    %265 = vector.extract_strided_slice %262 {offsets = [0, 0], sizes = [8, 128], strides = [1, 1]} : vector<8x384xf32> to vector<8x128xf32>
    %266 = vector.extract_strided_slice %264 {offsets = [0, 0], sizes = [8, 128], strides = [1, 1]} : vector<8x384xf32> to vector<8x128xf32>
    %267 = arith.addf %265, %266 : vector<8x128xf32>
    %268 = arith.negf %267 : vector<8x128xf32>
    %269 = math.exp %268 : vector<8x128xf32>
    %cst_83 = arith.constant 1.000000e+00 : f32
    %270 = vector.broadcast %cst_83 : f32 to vector<8x128xf32>
    %271 = arith.addf %270, %269 : vector<8x128xf32>
    %272 = arith.divf %270, %271 : vector<8x128xf32>
    %273 = vector.extract_strided_slice %262 {offsets = [0, 128], sizes = [8, 128], strides = [1, 1]} : vector<8x384xf32> to vector<8x128xf32>
    %274 = vector.extract_strided_slice %264 {offsets = [0, 128], sizes = [8, 128], strides = [1, 1]} : vector<8x384xf32> to vector<8x128xf32>
    %275 = arith.addf %273, %274 : vector<8x128xf32>
    %276 = arith.negf %275 : vector<8x128xf32>
    %277 = math.exp %276 : vector<8x128xf32>
    %cst_84 = arith.constant 1.000000e+00 : f32
    %278 = vector.broadcast %cst_84 : f32 to vector<8x128xf32>
    %279 = arith.addf %278, %277 : vector<8x128xf32>
    %280 = arith.divf %278, %279 : vector<8x128xf32>
    %281 = vector.extract_strided_slice %262 {offsets = [0, 256], sizes = [8, 128], strides = [1, 1]} : vector<8x384xf32> to vector<8x128xf32>
    %282 = vector.extract_strided_slice %264 {offsets = [0, 256], sizes = [8, 128], strides = [1, 1]} : vector<8x384xf32> to vector<8x128xf32>
    %283 = vector.broadcast %14 : vector<1x128xf32> to vector<8x128xf32>
    %284 = arith.addf %282, %283 : vector<8x128xf32>
    %285 = arith.mulf %272, %284 : vector<8x128xf32>
    %286 = arith.addf %281, %285 : vector<8x128xf32>
    %287 = math.tanh %286 : vector<8x128xf32>
    %cst_85 = arith.constant 1.000000e+00 : f32
    %288 = vector.broadcast %cst_85 : f32 to vector<8x128xf32>
    %289 = arith.subf %288, %280 : vector<8x128xf32>
    %290 = arith.mulf %289, %287 : vector<8x128xf32>
    %291 = arith.mulf %280, %257 : vector<8x128xf32>
    %292 = arith.addf %290, %291 : vector<8x128xf32>
    %c0_86 = arith.constant 0 : index
    %c7_87 = arith.constant 7 : index
    %c0_88 = arith.constant 0 : index
    %293 = vector.load %arg7[%c0_86, %c7_87, %c0_88] : memref<8x8x128xf32, #tpu.memory_space<vmem>>, vector<8x1x128xf32>
    %294 = vector.shape_cast %293 : vector<8x1x128xf32> to vector<8x128xf32>
    %295 = vector.shape_cast %292 : vector<8x128xf32> to vector<8x1x128xf32>
    tpu.vector_store %arg7[%c0_86, %c7_87, %c0_88], %295 {strides = array<i32>} : memref<8x8x128xf32, #tpu.memory_space<vmem>>, vector<8x1x128xf32>,
    %c0_89 = arith.constant 0 : index
    %c0_90 = arith.constant 0 : index
    %296 = vector.load %arg9[%c0_89, %c0_90] : memref<8x128xf32, #tpu.memory_space<vmem>>, vector<8x128xf32>
    tpu.vector_store %arg9[%c0_89, %c0_90], %292 {strides = array<i32>} : memref<8x128xf32, #tpu.memory_space<vmem>>, vector<8x128xf32>,
    return
  }
  func.func @transform_0(%arg0: i32, %arg1: i32) -> (i32, i32, i32) {
    %c0_i32 = arith.constant 0 : i32
    %c0_i32_0 = arith.constant 0 : i32
    return %arg0, %arg1, %c0_i32 : i32, i32, i32
  }
  func.func @transform_1(%arg0: i32, %arg1: i32) -> (i32, i32) {
    %c0_i32 = arith.constant 0 : i32
    %c0_i32_0 = arith.constant 0 : i32
    %c0_i32_1 = arith.constant 0 : i32
    return %c0_i32, %c0_i32_0 : i32, i32
  }
  func.func @transform_2(%arg0: i32, %arg1: i32) -> (i32, i32) {
    %c0_i32 = arith.constant 0 : i32
    %c0_i32_0 = arith.constant 0 : i32
    %c0_i32_1 = arith.constant 0 : i32
    return %c0_i32, %c0_i32_0 : i32, i32
  }
  func.func @transform_3(%arg0: i32, %arg1: i32) -> (i32, i32) {
    %c0_i32 = arith.constant 0 : i32
    %c0_i32_0 = arith.constant 0 : i32
    %c0_i32_1 = arith.constant 0 : i32
    return %c0_i32, %c0_i32_0 : i32, i32
  }
  func.func @transform_4(%arg0: i32, %arg1: i32) -> (i32, i32) {
    %c0_i32 = arith.constant 0 : i32
    %c0_i32_0 = arith.constant 0 : i32
    %c0_i32_1 = arith.constant 0 : i32
    return %c0_i32, %c0_i32_0 : i32, i32
  }
  func.func @transform_5(%arg0: i32, %arg1: i32) -> (i32, i32, i32) {
    %c0_i32 = arith.constant 0 : i32
    %c0_i32_0 = arith.constant 0 : i32
    return %arg0, %arg1, %c0_i32 : i32, i32, i32
  }
}

</mosaic_0001>

<bundles_post_ra>
// kernel: tpu_custom_call.1
= control target key start
LH: loop header
LB: loop body
LE: loop exit
PB: predicated region body
PF: predicated region fallthrough
CT: control target
= control target key end

     0   :  { %10 = vsyncpa [#allocation5], 0  ;;  %s7692_s0 = inlined_call_operand.hbm [shape: f32[8,8,128], index: 0, kind: input, shape index: {}]   ;;  %s7693_s1 = inlined_call_operand.hbm [shape: bf16[128,384], index: 1, kind: input, shape index: {}]   ;;  %s7694_s2 = inlined_call_operand.hbm [shape: bf16[128,384], index: 2, kind: input, shape index: {}]   ;;  %s7695_s3 = inlined_call_operand.vmem [shape: f32[1,384], index: 3, kind: input, shape index: {}]   ;;  %s7696_s4 = inlined_call_operand.vmem [shape: f32[1,128], index: 4, kind: input, shape index: {}]   ;;  %s7697_s5 = inlined_call_operand.hbm [shape: f32[8,8,128], index: 5, kind: output, shape index: {}]  }
   0x1   :  { %11 = vsyncpa [#allocation8], 0 }
   0x2   :  { %12 = vsyncpa [#allocation6], 0  ;;  %s6244_s18 = smov [#allocation7]   ;;  %s6150_s22 = scalar_lea.hbm %s7693_s1, 3072 }
   0x3   :  { %s30_s19 = sshll.u32 %s6244_s18, 4  ;;  %p6151_p0 = scmp.ne.s32.totalorder %s7693_s1, %s6150_s22  ;;  %s31_s19 = int_to_ptr.vmem [resolvable:$true] %s30_s19 }
   0x4   :  { %p6154_p1 = scmp.lt.u32.totalorder %s6150_s22, %s7693_s1 }
   0x6   :  { %p6156_p2 = pnand %p6154_p1, %p6151_p0 }
   0x8   :  { %6159 = shalt.err (!%p6156_p2)
}
   0x9   :  { %s6160_s27 = scalar_lea.vmem %s31_s19, 3072  ;;  %p6165_p4 = scmp.lt.s32.totalorder %s31_s19, %s31_s19 }
   0xa   :  { %p6161_p3 = scmp.ne.s32.totalorder %s31_s19, %s6160_s27  ;;  %p6166_p5 = scmp.lt.s32.totalorder %s6160_s27, %s6160_s27 }
   0xc   :  { %p6167_p6 = por %p6166_p5, %p6165_p4 }
   0xe   :  { %p6168_p7 = pnand %p6167_p6, %p6161_p3 }
  0x10   :  { %6171 = shalt.err (!%p6168_p7)
}
  0x11   :  { %s6245_s28 = smov 192   ;;  %s6246_s29 = smov 12  }
  0x12   :  { %36 = dma.hbm_to_vmem [thread:$0]  %s7693_s1, 3072, %s31_s19, [#allocation8], %s6245_s28, %s6245_s28, %s6246_s29  }
  0x13   :  { %s6247_s7 = smov [#allocation4]   ;;  %s6172_s11 = scalar_lea.hbm %s7692_s0, 1024 }
  0x14   :  { %s18_s8 = sshll.u32 %s6247_s7, 4  ;;  %p6173_p8 = scmp.ne.s32.totalorder %s7692_s0, %s6172_s11  ;;  %s19_s8 = int_to_ptr.vmem [resolvable:$true] %s18_s8 }
  0x15   :  { %p6176_p9 = scmp.lt.u32.totalorder %s6172_s11, %s7692_s0 }
  0x17   :  { %p6178_p10 = pnand %p6176_p9, %p6173_p8 }
  0x19   :  { %6181 = shalt.err (!%p6178_p10)
}
  0x1a   :  { %s6182_s16 = scalar_lea.vmem %s19_s8, 1024  ;;  %p6187_p12 = scmp.lt.s32.totalorder %s19_s8, %s19_s8 }
  0x1b   :  { %p6183_p11 = scmp.ne.s32.totalorder %s19_s8, %s6182_s16  ;;  %p6188_p13 = scmp.lt.s32.totalorder %s6182_s16, %s6182_s16 }
  0x1d   :  { %p6189_p0 = por %p6188_p13, %p6187_p12 }
  0x1f   :  { %p6190_p1 = pnand %p6189_p0, %p6183_p11 }
  0x21   :  { %6193 = shalt.err (!%p6190_p1)
}
  0x22   :  { %s6248_s1 = smov 128   ;;  %s6249_s17 = smov 8  }
  0x23   :  { %24 = dma.hbm_to_vmem [thread:$0]  %s7692_s0, 1024, %s19_s8, [#allocation5], %s6248_s1, %s6248_s1, %s6249_s17  }
  0x24   :  { %s6250_s20 = smov [#allocation9]   ;;  %s6194_s24 = scalar_lea.hbm %s7694_s2, 3072 }
  0x25   :  { %s42_s21 = sshll.u32 %s6250_s20, 4  ;;  %p6195_p2 = scmp.ne.s32.totalorder %s7694_s2, %s6194_s24  ;;  %s43_s21 = int_to_ptr.vmem [resolvable:$true] %s42_s21 }
  0x26   :  { %p6198_p3 = scmp.lt.u32.totalorder %s6194_s24, %s7694_s2 }
  0x28   :  { %p6200_p4 = pnand %p6198_p3, %p6195_p2 }
  0x2a   :  { %6203 = shalt.err (!%p6200_p4)
}
  0x2b   :  { %s6204_s6 = scalar_lea.vmem %s43_s21, 3072  ;;  %p6209_p6 = scmp.lt.s32.totalorder %s43_s21, %s43_s21 }
  0x2c   :  { %p6205_p5 = scmp.ne.s32.totalorder %s43_s21, %s6204_s6  ;;  %p6210_p7 = scmp.lt.s32.totalorder %s6204_s6, %s6204_s6 }
  0x2e   :  { %p6211_p8 = por %p6210_p7, %p6209_p6 }
  0x30   :  { %p6212_p9 = pnand %p6211_p8, %p6205_p5 }
  0x32   :  { %6215 = shalt.err (!%p6212_p9)
}
  0x33   :  { %48 = dma.hbm_to_vmem [thread:$0]  %s7694_s2, 3072, %s43_s21, [#allocation8], %s6245_s28, %s6245_s28, %s6246_s29  }
  0x34   :  { %6238 = dma.done.wait [#allocation5], 1024  }
  0x35   :  { %6239 = vsyncadd [#allocation5], 4294966272 }
  0x36   :  { %6240 = dma.done.wait [#allocation8], 6144  }
  0x37   :  { %6241 = vsyncadd [#allocation8], 4294961152  ;;  %v7698_v0 = vmov 0   ;;  %v5371_v1 = vld [vmem:[#allocation7 + $0x4] ss:$12 sps:$4 sm:$0xff]   ;;  %v69_v20 = vld [vmem:[#allocation4 + $0x8] sm:$0xff]  ;;  %v114_v63 = vlaneseq }
  0x38   :  { %289 = vmatprep.mubr.bf16.mxu0 %v7698_v0  ;;  %v5373_v2 = vld [vmem:[#allocation7 + $0x8] ss:$12 sps:$4 sm:$0xff]   ;;  %257 = vmatprep.subr.bf16.mxu0 %v5371_v1  ;;  %v5374_v3 = vld [vmem:[#allocation7] ss:$12 sps:$4 sm:$0xff]   ;;  %v5378_v6 = vld [vmem:[#allocation7 + $0x18] ss:$12 sps:$4 sm:$0xff]  }
  0x39   :  { %5174 = vmatprep.subr.bf16.mxu1 %v5373_v2  ;;  %v5375_v4 = vld [vmem:[#allocation7 + $0x1c] ss:$12 sps:$4 sm:$0xff]   ;;  %258 = vmatpush1.bf16.msra.mxu0 %v5374_v3  ;;  %v5377_v5 = vld [vmem:[#allocation7 + $0x20] ss:$12 sps:$4 sm:$0xff]   ;;  %v5381_v8 = vld [vmem:[#allocation7 + $0x38] ss:$12 sps:$4 sm:$0xff]  }
  0x3a   :  { %5175 = vmatpush3.bf16.msra.mxu1 %v5373_v2  ;;  %259 = vmatprep.subr.bf16.mxu0 %v5375_v4  ;;  %v5379_v7 = vld [vmem:[#allocation7 + $0x34] ss:$12 sps:$4 sm:$0xff]   ;;  %v5382_v9 = vld [vmem:[#allocation7 + $0x30] ss:$12 sps:$4 sm:$0xff]   ;;  %v5383_v10 = vld [vmem:[#allocation7 + $0x4c] ss:$12 sps:$4 sm:$0xff]  }
  0x3b   :  { %5176 = vmatprep.subr.bf16.mxu1 %v5377_v5  ;;  %v5385_v11 = vld [vmem:[#allocation7 + $0x50] ss:$12 sps:$4 sm:$0xff]   ;;  %v5386_v12 = vld [vmem:[#allocation7 + $0x48] ss:$12 sps:$4 sm:$0xff]   ;;  %v5390_v15 = vld [vmem:[#allocation7 + $0x60] ss:$12 sps:$4 sm:$0xff]  }
  0x3c   :  { %v5387_v13 = vld [vmem:[#allocation7 + $0x64] ss:$12 sps:$4 sm:$0xff]   ;;  %v5389_v14 = vld [vmem:[#allocation7 + $0x68] ss:$12 sps:$4 sm:$0xff]   ;;  %v5393_v17 = vld [vmem:[#allocation7 + $0x80] ss:$12 sps:$4 sm:$0xff]  }
  0x3d   :  { %260 = vmatpush1.bf16.msra.mxu0 %v5378_v6  ;;  %v5391_v16 = vld [vmem:[#allocation7 + $0x7c] ss:$12 sps:$4 sm:$0xff]   ;;  %v68_v18 = vld [vmem:[#allocation4] sm:$0xff]  ;;  %v5399_v25 = vld [vmem:[#allocation7 + $0xac] ss:$12 sps:$4 sm:$0xff]   ;;  %v7700_v37 = vmov 0.0  }
  0x3e   :  { %5177 = vmatpush3.bf16.msra.mxu1 %v5377_v5  ;;  %261 = vmatprep.subr.bf16.mxu0 %v5379_v7  ;;  %v5394_v19 = vld [vmem:[#allocation7 + $0x78] ss:$12 sps:$4 sm:$0xff]   ;;  %v5395_v21 = vld [vmem:[#allocation7 + $0x94] ss:$12 sps:$4 sm:$0xff]   ;;  %v76_v22 = vpack.c.bf16 %v69_v20, %v68_v18  ;;  %v5398_v24 = vld [vmem:[#allocation7 + $0x90] ss:$12 sps:$4 sm:$0xff]  }
  0x3f   :  { %5178 = vmatprep.subr.bf16.mxu1 %v5381_v8  ;;  %v5397_v23 = vld [vmem:[#allocation7 + $0x98] ss:$12 sps:$4 sm:$0xff]   ;;  %v5401_v26 = vld [vmem:[#allocation7 + $0xb0] ss:$12 sps:$4 sm:$0xff]   ;;  %v5402_v27 = vld [vmem:[#allocation7 + $0xa8] ss:$12 sps:$4 sm:$0xff]  }
  0x40   :  { %5190 = vmatprep.mubr.bf16.mxu1 %v76_v22  ;;  %v70_v28 = vld [vmem:[#allocation4 + $0x10] sm:$0xff]  ;;  %v71_v29 = vld [vmem:[#allocation4 + $0x18] sm:$0xff]  ;;  %v72_v31 = vld [vmem:[#allocation4 + $0x20] sm:$0xff]  ;;  %vm6253_vm0 = vmmov 0   ;;  %v6254_v62 = vmov 0.0|0.0   ;;  %v6456_v1 = vshrl.u32 %v114_v63, 7 }
  0x41   :  { %262 = vmatpush1.bf16.msra.mxu0 %v5382_v9  ;;  %v6333_v30 = vld [vmem:[#allocation9 + $0x4] ss:$12 sps:$4 sm:$0xff]   ;;  %v73_v32 = vld [vmem:[#allocation4 + $0x28] sm:$0xff]  ;;  %v77_v33 = vpack.c.bf16 %v71_v29, %v70_v28  ;;  %v75_v41 = vld [vmem:[#allocation4 + $0x38] sm:$0xff]  ;;  %vm1174_vm1 = vcmask 1041409   ;;  %vm1177_vm2 = vcmask 1042434  }
  0x42   :  { %5179 = vmatpush3.bf16.msra.mxu1 %v5381_v8  ;;  %263 = vmatprep.subr.bf16.mxu0 %v5383_v10  ;;  %v6335_v34 = vld [vmem:[#allocation9] ss:$12 sps:$4 sm:$0xff]   ;;  %v6338_v35 = vld [vmem:[#allocation9 + $0x1c] ss:$12 sps:$4 sm:$0xff]   ;;  %v78_v36 = vpack.c.bf16 %v73_v32, %v72_v31  ;;  %v6341_v38 = vld [vmem:[#allocation9 + $0x18] ss:$12 sps:$4 sm:$0xff]  }
  0x43   :  { %5180 = vmatprep.subr.bf16.mxu1 %v5385_v11  ;;  %v6343_v39 = vld [vmem:[#allocation9 + $0x8] ss:$12 sps:$4 sm:$0xff]   ;;  %v6351_v43 = vld [vmem:[#allocation9 + $0x20] ss:$12 sps:$4 sm:$0xff]   ;;  %v6355_v45 = vld [vmem:[#allocation9 + $0x30] ss:$12 sps:$4 sm:$0xff]  }
  0x44   :  { %v74_v40 = vld [vmem:[#allocation4 + $0x30] sm:$0xff]  ;;  %v6358_v46 = vld [vmem:[#allocation9 + $0x4c] ss:$12 sps:$4 sm:$0xff]   ;;  %v6381_v52 = vld [vmem:[#allocation9 + $0x7c] ss:$12 sps:$4 sm:$0xff]   ;;  %v116_v2 = vsub.s32 0, %v6456_v1 }
  0x45   :  { %264 = vmatpush1.bf16.msra.mxu0 %v5386_v12  ;;  %v6348_v42 = vld [vmem:[#allocation9 + $0x34] ss:$12 sps:$4 sm:$0xff]   ;;  %v79_v44 = vpack.c.bf16 %v75_v41, %v74_v40  ;;  %v6361_v47 = vld [vmem:[#allocation9 + $0x38] ss:$12 sps:$4 sm:$0xff]   ;;  %v6372_v50 = vld [vmem:[#allocation9 + $0x50] ss:$12 sps:$4 sm:$0xff]  }
  0x46   :  { %5181 = vmatpush3.bf16.msra.mxu1 %v5385_v11  ;;  %265 = vmatprep.subr.bf16.mxu0 %v5387_v13  ;;  %v6364_v48 = vld [vmem:[#allocation9 + $0x48] ss:$12 sps:$4 sm:$0xff]   ;;  %v6368_v49 = vld [vmem:[#allocation9 + $0x64] ss:$12 sps:$4 sm:$0xff]   ;;  %v6378_v51 = vld [vmem:[#allocation9 + $0x60] ss:$12 sps:$4 sm:$0xff]  }
  0x47   :  { %5182 = vmatprep.subr.bf16.mxu1 %v5389_v14  ;;  %v6384_v53 = vld [vmem:[#allocation9 + $0x68] ss:$12 sps:$4 sm:$0xff]   ;;  %v6388_v54 = vld [vmem:[#allocation9 + $0x78] ss:$12 sps:$4 sm:$0xff]   ;;  %v6395_v56 = vld [vmem:[#allocation9 + $0x80] ss:$12 sps:$4 sm:$0xff]  }
  0x48   :  { %v6392_v55 = vld [vmem:[#allocation9 + $0x94] ss:$12 sps:$4 sm:$0xff]   ;;  %v6399_v57 = vld [vmem:[#allocation9 + $0x90] ss:$12 sps:$4 sm:$0xff]   ;;  %v6402_v58 = vld [vmem:[#allocation9 + $0xac] ss:$12 sps:$4 sm:$0xff]  }
  0x49   :  { %266 = vmatpush1.bf16.msra.mxu0 %v5390_v15  ;;  %v6405_v59 = vld [vmem:[#allocation9 + $0x98] ss:$12 sps:$4 sm:$0xff]   ;;  %v6409_v60 = vld [vmem:[#allocation9 + $0xa8] ss:$12 sps:$4 sm:$0xff]   ;;  %v6414_v61 = vld [vmem:[#allocation9 + $0xb0] ss:$12 sps:$4 sm:$0xff]  }
  0x4a   :  { %5183 = vmatpush3.bf16.msra.mxu1 %v5389_v14  ;;  %267 = vmatprep.subr.bf16.mxu0 %v5391_v16  ;;  %v112_v3 = vld [vmem:[%s7695_s3] sm:$0x7]  ;;  %v124_v4 = vsub.s32 2, %v6456_v1  ;;  %v120_v5 = vsub.s32 1, %v6456_v1  ;;  %vm1180_vm3 = vcmask 1043459   ;;  %vm1183_vm4 = vcmask 1044484  }
  0x4b   :  { %5184 = vmatprep.subr.bf16.mxu1 %v5393_v17  ;;  %v6464_v6 = vrot.slane %v112_v3, %v116_v2  ;;  %vm1186_vm5 = vcmask 1045509   ;;  %vm1189_vm6 = vcmask 1046534   ;;  %vm1192_vm7 = vcmask 1047559  }
  0x4c   :  { %v125_v7 = vrot.slane %v112_v3, %v124_v4  ;;  %v6466_v8 = vrot.slane %v112_v3, %v120_v5 }
  0x4d   :  { %268 = vmatpush1.bf16.msra.mxu0 %v5394_v19 }
  0x4e   :  { %5185 = vmatpush3.bf16.msra.mxu1 %v5393_v17  ;;  %269 = vmatprep.subr.bf16.mxu0 %v5395_v21 }
  0x4f   :  { %5186 = vmatprep.subr.bf16.mxu1 %v5397_v23 }
  0x51   :  { %270 = vmatpush1.bf16.msra.mxu0 %v5398_v24 }
  0x52   :  { %5187 = vmatpush3.bf16.msra.mxu1 %v5397_v23  ;;  %271 = vmatprep.subr.bf16.mxu0 %v5399_v25 }
  0x53   :  { %5188 = vmatprep.subr.bf16.mxu1 %v5401_v26 }
  0x55   :  { %272 = vmatpush1.bf16.msra.mxu0 %v5402_v27 }
  0x56   :  { %5189 = vmatpush3.bf16.msra.mxu1 %v5401_v26  ;;  %597 = vmatprep.subr.bf16.mxu0 %v6333_v30 }
  0x57   :  { %5198 = vmatprep.subr.bf16.mxu1 %v7700_v37 }
  0x58   :  { %290 = vmatmul.mubr.bf16.vlgmr.msra.gmra.mrb[0].mxu0 %v76_v22 }
  0x59   :  { %5191 = vmatmul.mubr.bf16.vlgmr.msra.gmra.mrb[0].mxu1 %v77_v33  ;;  %598 = vmatpush1.bf16.msra.mxu0 %v6335_v34 }
  0x5a   :  { %299 = vmatprep.mubr.bf16.mxu0 %v7698_v0  ;;  %599 = vmatprep.subr.bf16.mxu0 %v6338_v35 }
  0x5b   :  { %5194 = vmatprep.mubr.bf16.mxu1 %v78_v36  ;;  %5199 = vmatpush3.bf16.msra.mxu1 %v6343_v39 }
  0x5c   :  { %5200 = vmatprep.subr.bf16.mxu1 %v7700_v37 }
  0x5d   :  { %600 = vmatpush1.bf16.msra.mxu0 %v6341_v38 }
  0x5e   :  { %601 = vmatprep.subr.bf16.mxu0 %v6348_v42 }
  0x5f   :  { %5201 = vmatpush3.bf16.msra.mxu1 %v6351_v43 }
  0x60   :  { %300 = vmatmul.mubr.bf16.gmra.mrb[4].mxu0 %v77_v33  ;;  %5202 = vmatprep.subr.bf16.mxu1 %v7700_v37 }
  0x61   :  { %5195 = vmatmul.mubr.bf16.gmra.mrb[4].mxu1 %v79_v44  ;;  %602 = vmatpush1.bf16.msra.mxu0 %v6355_v45 }
  0x62   :  { %309 = vmatprep.mubr.bf16.mxu0 %v7698_v0  ;;  %603 = vmatprep.subr.bf16.mxu0 %v6358_v46 }
  0x63   :  { %5203 = vmatpush3.bf16.msra.mxu1 %v6361_v47  ;;  %5214 = vmatprep.mubr.msk.bf16.mxu1 %vm6253_vm0, %v7700_v37 }
  0x64   :  { %5204 = vmatprep.subr.bf16.mxu1 %v7700_v37 }
  0x65   :  { %604 = vmatpush1.bf16.msra.mxu0 %v6364_v48 }
  0x66   :  { %605 = vmatprep.subr.bf16.mxu0 %v6368_v49 }
  0x67   :  { %5205 = vmatpush3.bf16.msra.mxu1 %v6372_v50 }
  0x68   :  { %310 = vmatmul.mubr.bf16.gmra.mrb[8].mxu0 %v78_v36  ;;  %5206 = vmatprep.subr.bf16.mxu1 %v7700_v37 }
  0x69   :  { %606 = vmatpush1.bf16.msra.mxu0 %v6378_v51  ;;  %319 = vmatprep.mubr.bf16.mxu0 %v7698_v0 }
  0x6a   :  { %607 = vmatprep.subr.bf16.mxu0 %v6381_v52 }
  0x6b   :  { %5207 = vmatpush3.bf16.msra.mxu1 %v6384_v53 }
  0x6c   :  { %5208 = vmatprep.subr.bf16.mxu1 %v7700_v37 }
  0x6d   :  { %608 = vmatpush1.bf16.msra.mxu0 %v6388_v54 }
  0x6e   :  { %609 = vmatprep.subr.bf16.mxu0 %v6392_v55 }
  0x6f   :  { %5209 = vmatpush3.bf16.msra.mxu1 %v6395_v56 }
  0x70   :  { %320 = vmatmul.mubr.bf16.gmra.mrb[12].mxu0 %v79_v44  ;;  %5210 = vmatprep.subr.bf16.mxu1 %v7700_v37 }
  0x71   :  { %610 = vmatpush1.bf16.msra.mxu0 %v6399_v57  ;;  %629 = vmatprep.mubr.bf16.mxu0 %v7698_v0 }
  0x72   :  { %611 = vmatprep.subr.bf16.mxu0 %v6402_v58 }
  0x73   :  { %5211 = vmatpush3.bf16.msra.mxu1 %v6405_v59 }
  0x74   :  { %5212 = vmatprep.subr.bf16.mxu1 %v7700_v37 }
  0x75   :  { %612 = vmatpush1.bf16.msra.mxu0 %v6409_v60 }
  0x76   :  { %1196 = vmatprep.subr.bf16.mxu0 %v6333_v30 }
  0x77   :  { %5213 = vmatpush3.bf16.msra.mxu1 %v6414_v61 }
  0x78   :  { %630 = vmatmul.mubr.bf16.vlgmr.msra.gmra.mrb[16].mxu0 %v6254_v62  ;;  %5218 = vmatprep.subr.bf16.mxu1 %v7700_v37 }
  0x79   :  { %1197 = vmatpush1.bf16.msra.mxu0 %v6335_v34  ;;  %1228 = vmatprep.mubr.bf16.mxu0 %v7698_v0 }
  0x7a   :  { %5215 = vmatmul.mubr.bf16.vlgmr.msra.gmra.mrb[8].mxu1 %v6254_v62  ;;  %1198 = vmatprep.subr.bf16.mxu0 %v6338_v35 }
  0x7b   :  { %5219 = vmatpush3.bf16.msra.mxu1 %v6343_v39  ;;  %5234 = vmatprep.mubr.msk.bf16.mxu1 %vm6253_vm0, %v7700_v37 }
  0x7c   :  { %5220 = vmatprep.subr.bf16.mxu1 %v7700_v37 }
  0x7d   :  { %1199 = vmatpush1.bf16.msra.mxu0 %v6341_v38 }
  0x7e   :  { %1200 = vmatprep.subr.bf16.mxu0 %v6348_v42 }
  0x7f   :  { %5221 = vmatpush3.bf16.msra.mxu1 %v6351_v43 }
  0x80   :  { %5222 = vmatprep.subr.bf16.mxu1 %v7700_v37 }
  0x81   :  { %1201 = vmatpush1.bf16.msra.mxu0 %v6355_v45 }
  0x82   :  { %1202 = vmatprep.subr.bf16.mxu0 %v6358_v46 }
  0x83   :  { %5223 = vmatpush3.bf16.msra.mxu1 %v6361_v47 }
  0x84   :  { %5224 = vmatprep.subr.bf16.mxu1 %v7700_v37 }
  0x85   :  { %1203 = vmatpush1.bf16.msra.mxu0 %v6364_v48 }
  0x86   :  { %1204 = vmatprep.subr.bf16.mxu0 %v6368_v49 }
  0x87   :  { %5225 = vmatpush3.bf16.msra.mxu1 %v6372_v50 }
  0x88   :  { %5226 = vmatprep.subr.bf16.mxu1 %v7700_v37 }
  0x89   :  { %1205 = vmatpush1.bf16.msra.mxu0 %v6378_v51 }
  0x8a   :  { %1206 = vmatprep.subr.bf16.mxu0 %v6381_v52 }
  0x8b   :  { %5227 = vmatpush3.bf16.msra.mxu1 %v6384_v53 }
  0x8c   :  { %5228 = vmatprep.subr.bf16.mxu1 %v7700_v37 }
  0x8d   :  { %1207 = vmatpush1.bf16.msra.mxu0 %v6388_v54 }
  0x8e   :  { %1208 = vmatprep.subr.bf16.mxu0 %v6392_v55 }
  0x8f   :  { %5229 = vmatpush3.bf16.msra.mxu1 %v6395_v56 }
  0x90   :  { %5230 = vmatprep.subr.bf16.mxu1 %v7700_v37 }
  0x91   :  { %1209 = vmatpush1.bf16.msra.mxu0 %v6399_v57 }
  0x92   :  { %1210 = vmatprep.subr.bf16.mxu0 %v6402_v58 }
  0x93   :  { %5231 = vmatpush3.bf16.msra.mxu1 %v6405_v59 }
  0x94   :  { %5232 = vmatprep.subr.bf16.mxu1 %v7700_v37 }
  0x95   :  { %1211 = vmatpush1.bf16.msra.mxu0 %v6409_v60 }
  0x96   :  { %1724 = vmatprep.subr.bf16.mxu0 %v6333_v30 }
  0x97   :  { %5233 = vmatpush3.bf16.msra.mxu1 %v6414_v61 }
  0x98   :  { %5238 = vmatprep.subr.bf16.mxu1 %v7700_v37 }
 0x12b   :  { %v291_v9 = vpop.f32.mrb[0].mxu0 }
 0x12c   :  { %v5192_v10 = vpop.f32.mrb[0].mxu1  ;;  %v292_v11 = vadd.f32 %v291_v9, %v6464_v6  ;;  %v293_v13 = vpop.f32.mrb[1].mxu0 }
 0x12d   :  { %v373_v12 = vadd.f32 %v5192_v10, %v125_v7  ;;  %v364_v14 = vpop.f32.mrb[1].mxu1  ;;  %v294_v15 = vadd.f32 %v293_v13, %v6466_v8  ;;  %v295_v17 = vpop.f32.mrb[2].mxu0  ;;  %v6255_v10 = vmov 1966171168  }
 0x12e   :  { %v365_v16 = vadd.f32 %v364_v14, %v125_v7  ;;  %v5193_v18 = vpop.f32.mrb[2].mxu1  ;;  %395 = vst [vmem:[#allocation2] sm:$0xff] %v292_v11  ;;  %v296_v19 = vadd.f32 %v295_v17, %v6464_v6  ;;  %v297_v21 = vpop.f32.mrb[3].mxu0 }
 0x12f   :  { %403 = vst [vmem:[#allocation2 + $0x40] sm:$0xff] %v373_v12  ;;  %v376_v20 = vadd.f32 %v5193_v18, %v125_v7  ;;  %v367_v22 = vpop.f32.mrb[3].mxu1  ;;  %396 = vst [vmem:[#allocation2 + $0x8] sm:$0xff] %v294_v15  ;;  %v298_v23 = vadd.f32 %v297_v21, %v6466_v8 }
 0x130   :  { %397 = vst [vmem:[#allocation2 + $0x10] sm:$0xff] %v365_v16  ;;  %v368_v24 = vadd.f32 %v367_v22, %v125_v7  ;;  %398 = vst [vmem:[#allocation2 + $0x18] sm:$0xff] %v296_v19 }
 0x131   :  { %406 = vst [vmem:[#allocation2 + $0x58] sm:$0xff] %v376_v20  ;;  %399 = vst [vmem:[#allocation2 + $0x20] sm:$0xff] %v298_v23 }
 0x132   :  { %400 = vst [vmem:[#allocation2 + $0x28] sm:$0xff] %v368_v24 }
 0x133   :  { %v301_v25 = vpop.f32.mrb[4].mxu0 }
 0x134   :  { %v5196_v26 = vpop.f32.mrb[4].mxu1  ;;  %v302_v27 = vadd.f32 %v301_v25, %v6464_v6  ;;  %v303_v28 = vpop.f32.mrb[5].mxu0 }
 0x135   :  { %v389_v29 = vadd.f32 %v5196_v26, %v125_v7  ;;  %v380_v30 = vpop.f32.mrb[5].mxu1  ;;  %v304_v31 = vadd.f32 %v303_v28, %v6466_v8  ;;  %v305_v32 = vpop.f32.mrb[6].mxu0 }
 0x136   :  { %v381_v33 = vadd.f32 %v380_v30, %v125_v7  ;;  %v5197_v34 = vpop.f32.mrb[6].mxu1  ;;  %401 = vst [vmem:[#allocation2 + $0x30] sm:$0xff] %v302_v27  ;;  %v306_v35 = vadd.f32 %v305_v32, %v6464_v6  ;;  %v307_v36 = vpop.f32.mrb[7].mxu0 }
 0x137   :  { %415 = vst [vmem:[#allocation2 + $0xa0] sm:$0xff] %v389_v29  ;;  %v392_v38 = vadd.f32 %v5197_v34, %v125_v7  ;;  %v383_v39 = vpop.f32.mrb[7].mxu1  ;;  %402 = vst [vmem:[#allocation2 + $0x38] sm:$0xff] %v304_v31  ;;  %v308_v40 = vadd.f32 %v307_v36, %v6466_v8  ;;  %v6487_v21 = vld [vmem:[#allocation2] ss:$8 sm:$0x7] }
 0x138   :  { %409 = vst [vmem:[#allocation2 + $0x70] sm:$0xff] %v381_v33  ;;  %v384_v41 = vadd.f32 %v383_v39, %v125_v7  ;;  %404 = vst [vmem:[#allocation2 + $0x48] sm:$0xff] %v306_v35  ;;  %v681_v7 = vunpack.c.l.s4 %v6255_v10  ;;  %v800_v34 = vrot.slane %v6487_v21, 1 }
 0x139   :  { %418 = vst [vmem:[#allocation2 + $0xb8] sm:$0xff] %v392_v38  ;;  %405 = vst [vmem:[#allocation2 + $0x50] sm:$0xff] %v308_v40  ;;  %v6489_v23 = vld [vmem:[#allocation2 + $0x18] ss:$8 sm:$0x7] }
 0x13a   :  { %412 = vst [vmem:[#allocation2 + $0x88] sm:$0xff] %v384_v41  ;;  %v682_v12 = vunpack.c.0.s8 %v681_v7  ;;  %v801_v35 = vrot.slane %v6489_v23, 1 }
 0x13b   :  { %v311_v44 = vpop.f32.mrb[8].mxu0 }
 0x13c   :  { %v312_v62 = vadd.f32 %v311_v44, %v6464_v6  ;;  %v313_v63 = vpop.f32.mrb[9].mxu0  ;;  %v6485_v20 = vsub.s32 %v682_v12, %v6456_v1 }
 0x13d   :  { %v314_v2 = vadd.f32 %v313_v63, %v6466_v8  ;;  %v315_v3 = vpop.f32.mrb[10].mxu0 }
 0x13e   :  { %407 = vst [vmem:[#allocation2 + $0x60] sm:$0xff] %v312_v62  ;;  %v316_v4 = vadd.f32 %v315_v3, %v6464_v6  ;;  %v317_v5 = vpop.f32.mrb[11].mxu0 }
 0x13f   :  { %408 = vst [vmem:[#allocation2 + $0x68] sm:$0xff] %v314_v2  ;;  %v318_v9 = vadd.f32 %v317_v5, %v6466_v8 }
 0x140   :  { %410 = vst [vmem:[#allocation2 + $0x78] sm:$0xff] %v316_v4  ;;  %v6503_v62 = vld [vmem:[#allocation2 + $0x48] ss:$8 sm:$0x7] }
 0x141   :  { %411 = vst [vmem:[#allocation2 + $0x80] sm:$0xff] %v318_v9 }
 0x143   :  { %v321_v11 = vpop.f32.mrb[12].mxu0 }
 0x144   :  { %v322_v13 = vadd.f32 %v321_v11, %v6464_v6  ;;  %v323_v14 = vpop.f32.mrb[13].mxu0 }
 0x145   :  { %v324_v15 = vadd.f32 %v323_v14, %v6466_v8  ;;  %v325_v16 = vpop.f32.mrb[14].mxu0 }
 0x146   :  { %413 = vst [vmem:[#allocation2 + $0x90] sm:$0xff] %v322_v13  ;;  %v326_v17 = vadd.f32 %v325_v16, %v6464_v6  ;;  %v327_v18 = vpop.f32.mrb[15].mxu0  ;;  %v6508_v5 = vld [vmem:[#allocation2 + $0x60] ss:$8 sm:$0x7] }
 0x147   :  { %414 = vst [vmem:[#allocation2 + $0x98] sm:$0xff] %v324_v15  ;;  %v328_v19 = vadd.f32 %v327_v18, %v6466_v8  ;;  %v6495_v8 = vld [vmem:[#allocation2 + $0x30] ss:$8 sm:$0x7] }
 0x148   :  { %416 = vst [vmem:[#allocation2 + $0xa8] sm:$0xff] %v326_v17  ;;  %v802_v2 = vrot.slane %v6495_v8, 1  ;;  %v6510_v9 = vld [vmem:[#allocation2 + $0x78] ss:$8 sm:$0x7] }
 0x149   :  { %417 = vst [vmem:[#allocation2 + $0xb0] sm:$0xff] %v328_v19 }
 0x14b   :  { %v631_v22 = vpop.f32.mrb[16].mxu0 }
 0x14c   :  { %v679_v24 = vcombine.high %v631_v22, %v631_v22  ;;  %v686_v25 = vrot.slane %v631_v22, %v6485_v20  ;;  %v633_v26 = vpop.f32.mrb[17].mxu0 }
 0x14d   :  { %v817_v27 = vcombine.high %v633_v26, %v633_v26  ;;  %v824_v6 = vrot.slane %v633_v26, %v6485_v20  ;;  %v635_v28 = vpop.f32.mrb[18].mxu0  ;;  %v6493_v29 = vpop.f32.mrb[8].mxu1 }
 0x14e   :  { %v693_v1 = vrot.slane %v679_v24, %v6485_v20  ;;  %v694_v30 = vcombine.high %v686_v25, %v686_v25  ;;  %v702_v31 = vrot.slane %v686_v25, %v6485_v20  ;;  %v636_v32 = vpop.f32.mrb[19].mxu0  ;;  %v5216_v33 = vpop.f32.mrb[9].mxu1  ;;  %v6514_v13 = vld [vmem:[#allocation2 + $0x90] ss:$8 sm:$0x7]  ;;  %v803_v28 = vrot.slane %v6503_v62, 1 }
 0x14f   :  { %v675_v36 = vpop.f32.mrb[10].mxu1  ;;  %v831_v3 = vrot.slane %v817_v27, %v6485_v20  ;;  %v832_v4 = vcombine.high %v824_v6, %v824_v6  ;;  %v840_v17 = vrot.slane %v824_v6, %v6485_v20  ;;  %v804_v6 = vrot.slane %v6508_v5, 1 }
 0x150   :  { %v695_v38 = vcombine.high %v693_v1, %v693_v1  ;;  %v709_v39 = vrot.slane %v693_v1, %v6485_v20  ;;  %v716_v40 = vrot.slane %v694_v30, %v6485_v20  ;;  %v724_v41 = vcombine.high %v702_v31, %v702_v31  ;;  %v5217_v44 = vpop.f32.mrb[11].mxu1  ;;  %v6519_v18 = vld [vmem:[#allocation2 + $0xa8] ss:$8 sm:$0x7] }
 0x151   :  { %v736_v63 = vadd.f32 %v702_v31, %v6487_v21  ;;  %v847_v33 = vrot.slane %v831_v3, %v6485_v20  ;;  %v854_v36 = vrot.slane %v832_v4, %v6485_v20  ;;  %v833_v44 = vcombine.high %v831_v3, %v831_v3 }
 0x152   :  { %v723_v10 = vrot.slane %v695_v38, %v6485_v20  ;;  %v725_v7 = vcombine.high %v709_v39, %v709_v39  ;;  %v726_v11 = vcombine.high %v716_v40, %v716_v40  ;;  %v737_v12 = vadd.f32 %v716_v40, %v6489_v23 }
 0x153   :  { %v738_v14 = vadd.f32 %v724_v41, %v6495_v8  ;;  %v740_v15 = vadd.f32 %v709_v39, %v6508_v5  ;;  %v4961_v16 = vmul.f32 -1.442695, %v736_v63  ;;  %v862_v39 = vcombine.high %v840_v17, %v840_v17 }
 0x154   :  { %v727_v19 = vcombine.high %v723_v10, %v723_v10  ;;  %v739_v22 = vadd.f32 %v726_v11, %v6503_v62  ;;  %v741_v24 = vadd.f32 %v723_v10, %v6510_v9  ;;  %v742_v25 = vadd.f32 %v725_v7, %v6514_v13  ;;  %v6532_v10 = vld [vmem:[%s7696_s4] ss:$0 sm:$0xff] }
 0x155   :  { %5435 = vpow2.f32 %v4961_v16  ;;  %v4962_v26 = vmul.f32 -1.442695, %v737_v12  ;;  %v4963_v27 = vmul.f32 -1.442695, %v738_v14  ;;  %v4965_v31 = vmul.f32 -1.442695, %v740_v15 }
 0x156   :  { %v743_v1 = vadd.f32 %v727_v19, %v6519_v18  ;;  %v4964_v30 = vmul.f32 -1.442695, %v739_v22  ;;  %v4966_v32 = vmul.f32 -1.442695, %v741_v24  ;;  %v4967_v38 = vmul.f32 -1.442695, %v742_v25 }
 0x157   :  { %5437 = vpow2.f32 %v4962_v26  ;;  %v874_v40 = vadd.f32 %v840_v17, %v800_v34  ;;  %v864_v63 = vcombine.high %v854_v36, %v854_v36  ;;  %v875_v7 = vadd.f32 %v854_v36, %v801_v35 }
 0x158   :  { %5439 = vpow2.f32 %v4963_v27  ;;  %v4968_v41 = vmul.f32 -1.442695, %v743_v1  ;;  %v876_v11 = vadd.f32 %v862_v39, %v802_v2  ;;  %v878_v14 = vadd.f32 %v847_v33, %v804_v6 }
 0x159   :  { %5441 = vpow2.f32 %v4964_v30  ;;  %v877_v12 = vadd.f32 %v864_v63, %v803_v28  ;;  %v4969_v4 = vmul.f32 -1.442695, %v874_v40  ;;  %v4970_v15 = vmul.f32 -1.442695, %v875_v7 }
 0x15a   :  { %5443 = vpow2.f32 %v4965_v31  ;;  %v936_v34 = vadd.f32 %v6532_v10, %v6493_v29  ;;  %v861_v3 = vrot.slane %v833_v44, %v6485_v20  ;;  %v4971_v16 = vmul.f32 -1.442695, %v876_v11 }
 0x15b   :  { %5445 = vpow2.f32 %v4966_v32  ;;  %v4972_v17 = vmul.f32 -1.442695, %v877_v12  ;;  %v863_v22 = vcombine.high %v847_v33, %v847_v33  ;;  %v4973_v35 = vmul.f32 -1.442695, %v878_v14 }
 0x15c   :  { %5447 = vpow2.f32 %v4967_v38  ;;  %v805_v24 = vrot.slane %v6510_v9, 1  ;;  %v938_v25 = vcombine.high %v936_v34, %v936_v34  ;;  %v806_v27 = vrot.slane %v6514_v13, 1 }
 0x15d   :  { %5449 = vpow2.f32 %v4968_v41  ;;  %v865_v28 = vcombine.high %v861_v3, %v861_v3  ;;  %v945_v29 = vrot.slane %v936_v34, %v6485_v20  ;;  %v807_v31 = vrot.slane %v6519_v18, 1 }
 0x15e   :  { %5451 = vpow2.f32 %v4969_v4  ;;  %v879_v33 = vadd.f32 %v861_v3, %v805_v24  ;;  %v880_v36 = vadd.f32 %v863_v22, %v806_v27  ;;  %v952_v40 = vrot.slane %v938_v25, %v6485_v20 }
 0x15f   :  { %v5436_v19 = vpop.eup %5435  ;;  %5453 = vpow2.f32 %v4970_v15  ;;  %v881_v63 = vadd.f32 %v865_v28, %v807_v31  ;;  %v953_v7 = vcombine.high %v945_v29, %v945_v29  ;;  %v1003_v28 = vrot.slane %v6487_v21, 2 }
 0x160   :  { %v768_v2 = vadd.f32 1.0, %v5436_v19  ;;  %5455 = vpow2.f32 %v4971_v16  ;;  %v4974_v15 = vmul.f32 -1.442695, %v879_v33  ;;  %v4975_v34 = vmul.f32 -1.442695, %v880_v36 }
 0x161   :  { %v5438_v26 = vpop.eup %5437  ;;  %5457 = vpow2.f32 %v4972_v17  ;;  %v954_v17 = vcombine.high %v952_v40, %v952_v40  ;;  %v961_v19 = vrot.slane %v945_v29, %v6485_v20  ;;  %v1059_v21 = vrot.slane %v7700_v37, %v6485_v20 }
 0x162   :  { %v5440_v1 = vpop.eup %5439  ;;  %v769_v30 = vadd.f32 1.0, %v5438_v26  ;;  %5459 = vrcp.f32 %v768_v2  ;;  %v975_v2 = vrot.slane %v953_v7, %v6485_v20  ;;  %v1052_v26 = vcombine.high %v7700_v37, %v7700_v37 }
 0x163   :  { %v5442_v6 = vpop.eup %5441  ;;  %v770_v32 = vadd.f32 1.0, %v5440_v1  ;;  %5461 = vpow2.f32 %v4973_v35  ;;  %v4976_v35 = vmul.f32 -1.442695, %v881_v63  ;;  %v1005_v7 = vrot.slane %v6495_v8, 2 }
 0x164   :  { %v5444_v38 = vpop.eup %5443  ;;  %v771_v39 = vadd.f32 1.0, %v5442_v6  ;;  %5463 = vrcp.f32 %v769_v30  ;;  %v968_v30 = vrot.slane %v952_v40, %v6485_v20  ;;  %v982_v6 = vrot.slane %v954_v17, %v6485_v20 }
 0x165   :  { %v5446_v41 = vpop.eup %5445  ;;  %v772_v44 = vadd.f32 1.0, %v5444_v38  ;;  %5465 = vrcp.f32 %v770_v32  ;;  %v983_v32 = vcombine.high %v961_v19, %v961_v19  ;;  %v985_v38 = vcombine.high %v975_v2, %v975_v2 }
 0x166   :  { %v5448_v11 = vpop.eup %5447  ;;  %v773_v12 = vadd.f32 1.0, %v5446_v41  ;;  %5467 = vrcp.f32 %v771_v39 }
 0x167   :  { %v5450_v14 = vpop.eup %5449  ;;  %v774_v4 = vadd.f32 1.0, %v5448_v11  ;;  %5469 = vrcp.f32 %v772_v44  ;;  %v1004_v44 = vrot.slane %v6489_v23, 2  ;;  %v986_v23 = vcombine.high %v982_v6, %v982_v6 }
 0x168   :  { %v5452_v3 = vpop.eup %5451  ;;  %v775_v16 = vadd.f32 1.0, %v5450_v14  ;;  %5471 = vrcp.f32 %v773_v12 }
 0x169   :  { %v5454_v22 = vpop.eup %5453  ;;  %5473 = vrcp.f32 %v774_v4  ;;  %v906_v25 = vadd.f32 1.0, %v5452_v3  ;;  %v1006_v4 = vrot.slane %v6503_v62, 2  ;;  %v1066_v62 = vrot.slane %v1052_v26, %v6485_v20 }
 0x16a   :  { %v5456_v24 = vpop.eup %5455  ;;  %5475 = vrcp.f32 %v775_v16  ;;  %v907_v1 = vadd.f32 1.0, %v5454_v22  ;;  %v1007_v22 = vrot.slane %v6508_v5, 2 }
 0x16b   :  { %v5458_v27 = vpop.eup %5457  ;;  %5477 = vpow2.f32 %v4974_v15  ;;  %v908_v29 = vadd.f32 1.0, %v5456_v24  ;;  %v984_v15 = vcombine.high %v968_v30, %v968_v30 }
 0x16c   :  { %v5460_v31 = vpop.eup %5459  ;;  %5479 = vpow2.f32 %v4975_v34  ;;  %v909_v36 = vadd.f32 1.0, %v5458_v27 }
 0x16d   :  { %v5462_v33 = vpop.eup %5461  ;;  %5481 = vpow2.f32 %v4976_v35  ;;  %v995_v39 = vmul.f32 %v5460_v31, %v961_v19 }
 0x16e   :  { %v5464_v41 = vpop.eup %5463  ;;  %v910_v63 = vadd.f32 1.0, %v5462_v33  ;;  %5483 = vrcp.f32 %v906_v25 }
 0x16f   :  { %v5466_v40 = vpop.eup %5465  ;;  %5485 = vrcp.f32 %v907_v1  ;;  %v996_v11 = vmul.f32 %v5464_v41, %v975_v2  ;;  %v1019_v12 = vadd.f32 %v1003_v28, %v995_v39 }
 0x170   :  { %v5468_v14 = vpop.eup %5467  ;;  %5487 = vrcp.f32 %v908_v29  ;;  %v997_v34 = vmul.f32 %v5466_v40, %v983_v32  ;;  %v1008_v29 = vrot.slane %v6510_v9, 2  ;;  %v1067_v32 = vcombine.high %v1059_v21, %v1059_v21 }
 0x171   :  { %v5470_v3 = vpop.eup %5469  ;;  %5489 = vrcp.f32 %v909_v36  ;;  %v998_v16 = vmul.f32 %v5468_v14, %v985_v38  ;;  %v1020_v17 = vadd.f32 %v1004_v44, %v996_v11  ;;  %v1010_v38 = vrot.slane %v6519_v18, 2 }
 0x172   :  { %v5472_v19 = vpop.eup %5471  ;;  %5491 = vrcp.f32 %v910_v63  ;;  %v999_v35 = vmul.f32 %v5470_v3, %v968_v30  ;;  %v1021_v8 = vadd.f32 %v1005_v7, %v997_v34  ;;  %v1009_v30 = vrot.slane %v6514_v13, 2 }
 0x173   :  { %v5474_v24 = vpop.eup %5473  ;;  %v1000_v2 = vmul.f32 %v5472_v19, %v982_v6  ;;  %v1022_v25 = vadd.f32 %v1006_v4, %v998_v16  ;;  %5493 = vtanh.f32 %v1019_v12  ;;  %v1075_v63 = vrot.slane %v1059_v21, %v6485_v20 }
 0x174   :  { %v5476_v27 = vpop.eup %5475  ;;  %v1001_v28 = vmul.f32 %v5474_v24, %v984_v15  ;;  %v1023_v1 = vadd.f32 %v1007_v22, %v999_v35  ;;  %5495 = vtanh.f32 %v1020_v17  ;;  %v1089_v7 = vrot.slane %v1067_v32, %v6485_v20 }
 0x175   :  { %v5478_v31 = vpop.eup %5477  ;;  %v1002_v33 = vmul.f32 %v5476_v27, %v986_v23  ;;  %5497 = vtanh.f32 %v1021_v8  ;;  %v1024_v41 = vadd.f32 %v1008_v29, %v1000_v2  ;;  %v1068_v13 = vcombine.high %v1066_v62, %v1066_v62 }
 0x176   :  { %v5480_v5 = vpop.eup %5479  ;;  %v911_v36 = vadd.f32 1.0, %v5478_v31  ;;  %5499 = vtanh.f32 %v1022_v25  ;;  %v1025_v9 = vadd.f32 %v1009_v30, %v1001_v28  ;;  %v1082_v18 = vrot.slane %v1066_v62, %v6485_v20 }
 0x177   :  { %v5482_v6 = vpop.eup %5481  ;;  %v912_v39 = vadd.f32 1.0, %v5480_v5  ;;  %5501 = vtanh.f32 %v1023_v1  ;;  %v1026_v11 = vadd.f32 %v1010_v38, %v1002_v33  ;;  %v1097_v34 = vcombine.high %v1075_v63, %v1075_v63 }
 0x178   :  { %v5484_v26 = vpop.eup %5483  ;;  %v913_v44 = vadd.f32 1.0, %v5482_v6  ;;  %5503 = vrcp.f32 %v911_v36  ;;  %v1099_v21 = vcombine.high %v1089_v7, %v1089_v7  ;;  %v1096_v16 = vrot.slane %v1068_v13, %v6485_v20 }
 0x179   :  { %v5486_v40 = vpop.eup %5485  ;;  %5505 = vrcp.f32 %v912_v39  ;;  %v1035_v15 = vsub.f32 1.0, %v5484_v26  ;;  %v1109_v22 = vmul.f32 %v5484_v26, %v1075_v63  ;;  %v1098_v27 = vcombine.high %v1082_v18, %v1082_v18 }
 0x17a   :  { %v5488_v12 = vpop.eup %5487  ;;  %5507 = vrcp.f32 %v913_v44  ;;  %v1036_v23 = vsub.f32 1.0, %v5486_v40  ;;  %v1110_v2 = vmul.f32 %v5486_v40, %v1089_v7  ;;  %v1100_v36 = vcombine.high %v1096_v16, %v1096_v16 }
 0x17b   :  { %v5490_v14 = vpop.eup %5489  ;;  %5509 = vtanh.f32 %v1024_v41  ;;  %v1037_v19 = vsub.f32 1.0, %v5488_v12  ;;  %v1111_v1 = vmul.f32 %v5488_v12, %v1097_v34 }
 0x17c   :  { %v5492_v4 = vpop.eup %5491  ;;  %5511 = vtanh.f32 %v1025_v9  ;;  %v1038_v24 = vsub.f32 1.0, %v5490_v14  ;;  %v1112_v33 = vmul.f32 %v5490_v14, %v1099_v21 }
 0x17d   :  { %v5494_v3 = vpop.eup %5493  ;;  %5513 = vtanh.f32 %v1026_v11  ;;  %v1039_v28 = vsub.f32 1.0, %v5492_v4  ;;  %v1113_v38 = vmul.f32 %v5492_v4, %v1082_v18 }
 0x17e   :  { %v5496_v17 = vpop.eup %5495  ;;  %v1043_v35 = vmul.f32 %v5494_v3, %v1035_v15 }
 0x17f   :  { %v5498_v8 = vpop.eup %5497  ;;  %v1044_v25 = vmul.f32 %v5496_v17, %v1036_v23 }
 0x180   :  { %v5500_v62 = vpop.eup %5499  ;;  %v1045_v31 = vmul.f32 %v5498_v8, %v1037_v19  ;;  %v6563_v29 = vadd.f32 %v1109_v22, %v1043_v35 }
 0x181   :  { %v5502_v32 = vpop.eup %5501  ;;  %v1046_v5 = vmul.f32 %v5500_v62, %v1038_v24  ;;  %v6565_v30 = vadd.f32 %v1110_v2, %v1044_v25 }
 0x182   :  { %v5504_v6 = vpop.eup %5503  ;;  %v1047_v39 = vmul.f32 %v5502_v32, %v1039_v28  ;;  %v6567_v41 = vadd.f32 %v1111_v1, %v1045_v31  ;;  %1125 = vst [vmem:[#allocation10] sm:$0x1] %v6563_v29  ;;  %v1149_v63 = vpack.c.bf16 %v6563_v29, %v6563_v29 }
 0x183   :  { %v5506_v26 = vpop.eup %5505  ;;  %v6570_v44 = vadd.f32 %v1112_v33, %v1046_v5  ;;  %1126 = vst [vmem:[#allocation10 + $0x8] sm:$0x1] %v6565_v30  ;;  %v1150_v9 = vpack.c.bf16 %v6565_v30, %v6565_v30  ;;  %v1040_v7 = vsub.f32 1.0, %v5504_v6  ;;  %v1114_v13 = vmul.f32 %v5504_v6, %v1096_v16 }
 0x184   :  { %v5508_v40 = vpop.eup %5507  ;;  %v6577_v11 = vadd.f32 %v1113_v38, %v1047_v39  ;;  %1127 = vst [vmem:[#allocation10 + $0x10] sm:$0x1] %v6567_v41  ;;  %v1151_v12 = vpack.c.bf16 %v6567_v41, %v6567_v41  ;;  %v1041_v18 = vsub.f32 1.0, %v5506_v26  ;;  %v1115_v15 = vmul.f32 %v5506_v26, %v1098_v27 }
 0x185   :  { %v5510_v14 = vpop.eup %5509  ;;  %1128 = vst [vmem:[#allocation10 + $0x18] sm:$0x1] %v6570_v44  ;;  %v1042_v4 = vsub.f32 1.0, %v5508_v40  ;;  %v1152_v34 = vpack.c.bf16 %v6570_v44, %v6570_v44  ;;  %v1166_v16 = vunpack.c.l.b16 %v1150_v9  ;;  %v1116_v35 = vmul.f32 %v5508_v40, %v1100_v36 }
 0x186   :  { %v5512_v3 = vpop.eup %5511  ;;  %v1048_v23 = vmul.f32 %v5510_v14, %v1040_v7  ;;  %1129 = vst [vmem:[#allocation10 + $0x20] sm:$0x1] %v6577_v11  ;;  %v1153_v21 = vpack.c.bf16 %v6577_v11, %v6577_v11  ;;  %v1167_v17 = vunpack.c.l.b16 %v1151_v12  ;;  %v1165_v8 = vunpack.c.l.b16 %v1149_v63 }
 0x187   :  { %v5514_v19 = vpop.eup %5513  ;;  %v1049_v22 = vmul.f32 %v5512_v3, %v1041_v18  ;;  %v1168_v24 = vunpack.c.l.b16 %v1152_v34  ;;  %v1173_v62 = vrot.slane %v1166_v16, 7  ;;  %v6610_v3 = vld [vmem:[#allocation9] ss:$12 sps:$4 sm:$0xff]   ;;  %v6623_v16 = vld [vmem:[#allocation9 + $0x18] ss:$12 sps:$4 sm:$0xff]  }
 0x188   :  { %v1050_v2 = vmul.f32 %v5514_v19, %v1042_v4  ;;  %v6588_v25 = vadd.f32 %v1114_v13, %v1048_v23  ;;  %v1169_v27 = vunpack.c.l.b16 %v1153_v21  ;;  %v1176_v1 = vrot.slane %v1167_v17, 6  ;;  %v6613_v23 = vld [vmem:[#allocation9 + $0x8] ss:$12 sps:$4 sm:$0xff]   ;;  %v6664_v19 = vld [vmem:[#allocation2 + $0x31] ss:$8 sm:$0x7] }
 0x189   :  { %v6590_v28 = vadd.f32 %v1115_v15, %v1049_v22  ;;  %v1179_v31 = vrot.slane %v1168_v24, 5  ;;  %v1175_v5 = vsel %vm1174_vm1, %v1173_v62, %v1165_v8  ;;  %v6616_v21 = vld [vmem:[#allocation9 + $0x1c] ss:$12 sps:$4 sm:$0xff]  }
 0x18a   :  { %v6592_v32 = vadd.f32 %v1116_v35, %v1050_v2  ;;  %1130 = vst [vmem:[#allocation10 + $0x28] sm:$0x1] %v6588_v25  ;;  %v1154_v33 = vpack.c.bf16 %v6588_v25, %v6588_v25  ;;  %v1178_v6 = vsel %vm1177_vm2, %v1176_v1, %v1175_v5  ;;  %v1182_v38 = vrot.slane %v1169_v27, 4  ;;  %v6666_v22 = vld [vmem:[#allocation2 + $0x49] ss:$8 sm:$0x7] }
 0x18b   :  { %1131 = vst [vmem:[#allocation10 + $0x30] sm:$0x1] %v6590_v28  ;;  %v1155_v36 = vpack.c.bf16 %v6590_v28, %v6590_v28  ;;  %v1181_v63 = vsel %vm1180_vm3, %v1179_v31, %v1178_v6  ;;  %v6670_v24 = vld [vmem:[#allocation2 + $0x61] ss:$8 sm:$0x7] }
 0x18c   :  { %1132 = vst [vmem:[#allocation10 + $0x38] sm:$0x1] %v6592_v32  ;;  %v1156_v39 = vpack.c.bf16 %v6592_v32, %v6592_v32  ;;  %v1170_v26 = vunpack.c.l.b16 %v1154_v33  ;;  %v1184_v40 = vsel %vm1183_vm4, %v1182_v38, %v1181_v63  ;;  %v6672_v2 = vld [vmem:[#allocation2 + $0x79] ss:$8 sm:$0x7] }
 0x18d   :  { %v1171_v9 = vunpack.c.l.b16 %v1155_v36  ;;  %v6676_v33 = vld [vmem:[#allocation2 + $0x91] ss:$8 sm:$0x7] }
 0x18e   :  { %v1172_v7 = vunpack.c.l.b16 %v1156_v39  ;;  %v1185_v13 = vrot.slane %v1170_v26, 3  ;;  %v6680_v39 = vld [vmem:[#allocation2 + $0xa9] ss:$8 sm:$0x7] }
 0x18f   :  { %v1188_v12 = vrot.slane %v1171_v9, 2 }
 0x190   :  { %v1187_v14 = vsel %vm1186_vm5, %v1185_v13, %v1184_v40  ;;  %v1191_v18 = vrot.slane %v1172_v7, 1 }
 0x191   :  { %v1190_v4 = vsel %vm1189_vm6, %v1188_v12, %v1187_v14 }
 0x192   :  { %v1193_v15 = vsel %vm1192_vm7, %v1191_v18, %v1190_v4 }
 0x193   :  { %v1194_v34 = vpack.c.b16 %v1193_v15, %v1193_v15 }
 0x195   :  { %1229 = vmatmul.mubr.bf16.vlgmr.msra.gmra.mrb[20].mxu0 %v1194_v34  ;;  %5235 = vmatmul.mubr.bf16.vlgmr.msra.gmra.mrb[12].mxu1 %v1194_v34 }
 0x196   :  { %1725 = vmatpush1.bf16.msra.mxu0 %v6610_v3  ;;  %5239 = vmatpush3.bf16.msra.mxu1 %v6613_v23 }
 0x197   :  { %1726 = vmatprep.subr.bf16.mxu0 %v6616_v21  ;;  %5240 = vmatprep.subr.bf16.mxu1 %v7700_v37 }
 0x198   :  { %1756 = vmatprep.mubr.bf16.mxu0 %v7698_v0  ;;  %5254 = vmatprep.mubr.msk.bf16.mxu1 %vm6253_vm0, %v7700_v37 }
 0x19a   :  { %1727 = vmatpush1.bf16.msra.mxu0 %v6623_v16  ;;  %5241 = vmatpush3.bf16.msra.mxu1 %v6351_v43 }
 0x19b   :  { %1728 = vmatprep.subr.bf16.mxu0 %v6348_v42  ;;  %5242 = vmatprep.subr.bf16.mxu1 %v7700_v37  ;;  %v6651_v42 = vld [vmem:[#allocation9 + $0x4] ss:$12 sps:$4 sm:$0xff]  }
 0x19e   :  { %1729 = vmatpush1.bf16.msra.mxu0 %v6355_v45  ;;  %5243 = vmatpush3.bf16.msra.mxu1 %v6361_v47 }
 0x19f   :  { %1730 = vmatprep.subr.bf16.mxu0 %v6358_v46  ;;  %5244 = vmatprep.subr.bf16.mxu1 %v7700_v37 }
 0x1a2   :  { %1731 = vmatpush1.bf16.msra.mxu0 %v6364_v48  ;;  %5245 = vmatpush3.bf16.msra.mxu1 %v6372_v50 }
 0x1a3   :  { %1732 = vmatprep.subr.bf16.mxu0 %v6368_v49  ;;  %5246 = vmatprep.subr.bf16.mxu1 %v7700_v37 }
 0x1a6   :  { %1733 = vmatpush1.bf16.msra.mxu0 %v6378_v51  ;;  %5247 = vmatpush3.bf16.msra.mxu1 %v6384_v53 }
 0x1a7   :  { %1734 = vmatprep.subr.bf16.mxu0 %v6381_v52  ;;  %5248 = vmatprep.subr.bf16.mxu1 %v7700_v37 }
 0x1aa   :  { %1735 = vmatpush1.bf16.msra.mxu0 %v6388_v54  ;;  %5249 = vmatpush3.bf16.msra.mxu1 %v6395_v56 }
 0x1ab   :  { %1736 = vmatprep.subr.bf16.mxu0 %v6392_v55  ;;  %5250 = vmatprep.subr.bf16.mxu1 %v7700_v37 }
 0x1ae   :  { %1737 = vmatpush1.bf16.msra.mxu0 %v6399_v57  ;;  %5251 = vmatpush3.bf16.msra.mxu1 %v6405_v59  ;;  %v6658_v57 = vld [vmem:[#allocation2 + $0x1] ss:$8 sm:$0x7] }
 0x1af   :  { %1738 = vmatprep.subr.bf16.mxu0 %v6402_v58  ;;  %5252 = vmatprep.subr.bf16.mxu1 %v7700_v37  ;;  %v6660_v58 = vld [vmem:[#allocation2 + $0x19] ss:$8 sm:$0x7] }
 0x1b2   :  { %1739 = vmatpush1.bf16.msra.mxu0 %v6409_v60  ;;  %5253 = vmatpush3.bf16.msra.mxu1 %v6414_v61 }
 0x1b3   :  { %2252 = vmatprep.subr.bf16.mxu0 %v6651_v42  ;;  %5258 = vmatprep.subr.bf16.mxu1 %v7700_v37 }
 0x268   :  { %v1230_v43 = vpop.f32.mrb[20].mxu0  ;;  %v1271_v45 = vpop.f32.mrb[12].mxu1 }
 0x269   :  { %v1278_v46 = vcombine.high %v1230_v43, %v1230_v43  ;;  %v1285_v47 = vrot.slane %v1230_v43, %v6485_v20  ;;  %v1232_v48 = vpop.f32.mrb[21].mxu0  ;;  %v5236_v49 = vpop.f32.mrb[13].mxu1 }
 0x26a   :  { %v1234_v50 = vpop.f32.mrb[22].mxu0  ;;  %v1274_v51 = vpop.f32.mrb[14].mxu1  ;;  %v1423_v8 = vrot.slane %v1232_v48, %v6485_v20  ;;  %v1416_v38 = vcombine.high %v1232_v48, %v1232_v48  ;;  %v1399_v48 = vrot.slane %v6658_v57, 1 }
 0x26b   :  { %v1292_v52 = vrot.slane %v1278_v46, %v6485_v20  ;;  %v1293_v53 = vcombine.high %v1285_v47, %v1285_v47  ;;  %v1301_v54 = vrot.slane %v1285_v47, %v6485_v20  ;;  %v1235_v55 = vpop.f32.mrb[23].mxu0  ;;  %v5237_v56 = vpop.f32.mrb[15].mxu1  ;;  %v1400_v50 = vrot.slane %v6660_v58, 1 }
 0x26c   :  { %v1431_v4 = vcombine.high %v1423_v8, %v1423_v8  ;;  %v1439_v34 = vrot.slane %v1423_v8, %v6485_v20  ;;  %v1430_v46 = vrot.slane %v1416_v38, %v6485_v20  ;;  %v1401_v55 = vrot.slane %v6664_v19, 1 }
 0x26d   :  { %v1294_v59 = vcombine.high %v1292_v52, %v1292_v52  ;;  %v1308_v60 = vrot.slane %v1292_v52, %v6485_v20  ;;  %v1315_v61 = vrot.slane %v1293_v53, %v6485_v20  ;;  %v1323_v17 = vcombine.high %v1301_v54, %v1301_v54 }
 0x26e   :  { %v1335_v35 = vadd.f32 %v1301_v54, %v6658_v57  ;;  %v1453_v49 = vrot.slane %v1431_v4, %v6485_v20  ;;  %v1473_v51 = vadd.f32 %v1439_v34, %v1399_v48  ;;  %v1432_v52 = vcombine.high %v1430_v46, %v1430_v46 }
 0x26f   :  { %v1322_v27 = vrot.slane %v1294_v59, %v6485_v20  ;;  %v1324_v62 = vcombine.high %v1308_v60, %v1308_v60  ;;  %v1325_v1 = vcombine.high %v1315_v61, %v1315_v61  ;;  %v1336_v31 = vadd.f32 %v1315_v61, %v6660_v58 }
 0x270   :  { %v1337_v5 = vadd.f32 %v1323_v17, %v6664_v19  ;;  %v1339_v36 = vadd.f32 %v1308_v60, %v6670_v24  ;;  %v4978_v6 = vmul.f32 -1.442695, %v1335_v35  ;;  %v1529_v53 = vadd.f32 %v6532_v10, %v1271_v45 }
 0x271   :  { %v1326_v26 = vcombine.high %v1322_v27, %v1322_v27  ;;  %v1338_v63 = vadd.f32 %v1325_v1, %v6666_v22  ;;  %v1340_v9 = vadd.f32 %v1322_v27, %v6672_v2  ;;  %v1341_v40 = vadd.f32 %v1324_v62, %v6676_v33 }
 0x272   :  { %5515 = vpow2.f32 %v4978_v6  ;;  %v4979_v7 = vmul.f32 -1.442695, %v1336_v31  ;;  %v4980_v13 = vmul.f32 -1.442695, %v1337_v5  ;;  %v4982_v18 = vmul.f32 -1.442695, %v1339_v36 }
 0x273   :  { %v1342_v12 = vadd.f32 %v1326_v26, %v6680_v39  ;;  %v4981_v14 = vmul.f32 -1.442695, %v1338_v63  ;;  %v4983_v15 = vmul.f32 -1.442695, %v1340_v9  ;;  %v4984_v43 = vmul.f32 -1.442695, %v1341_v40 }
 0x274   :  { %5517 = vpow2.f32 %v4979_v7  ;;  %v1474_v54 = vadd.f32 %v1453_v49, %v1400_v50  ;;  %v1402_v56 = vrot.slane %v6666_v22, 1  ;;  %v1446_v60 = vrot.slane %v1430_v46, %v6485_v20 }
 0x275   :  { %5519 = vpow2.f32 %v4980_v13  ;;  %v4985_v47 = vmul.f32 -1.442695, %v1342_v12  ;;  %v1461_v61 = vcombine.high %v1439_v34, %v1439_v34  ;;  %v4986_v17 = vmul.f32 -1.442695, %v1473_v51 }
 0x276   :  { %5521 = vpow2.f32 %v4981_v14  ;;  %v4987_v35 = vmul.f32 -1.442695, %v1474_v54  ;;  %v1403_v27 = vrot.slane %v6670_v24, 1  ;;  %v1460_v62 = vrot.slane %v1432_v52, %v6485_v20 }
 0x277   :  { %5523 = vpow2.f32 %v4982_v18  ;;  %v1463_v1 = vcombine.high %v1453_v49, %v1453_v49  ;;  %v1531_v5 = vcombine.high %v1529_v53, %v1529_v53  ;;  %v1404_v10 = vrot.slane %v6672_v2, 1 }
 0x278   :  { %5525 = vpow2.f32 %v4983_v15  ;;  %v1405_v45 = vrot.slane %v6676_v33, 1  ;;  %v1538_v38 = vrot.slane %v1529_v53, %v6485_v20  ;;  %v1406_v26 = vrot.slane %v6680_v39, 1 }
 0x279   :  { %5527 = vpow2.f32 %v4984_v43  ;;  %v1462_v40 = vcombine.high %v1446_v60, %v1446_v60  ;;  %v1475_v7 = vadd.f32 %v1461_v61, %v1401_v55  ;;  %v1464_v14 = vcombine.high %v1460_v62, %v1460_v62 }
 0x27a   :  { %5529 = vpow2.f32 %v4985_v47  ;;  %v1476_v18 = vadd.f32 %v1463_v1, %v1402_v56  ;;  %v1545_v34 = vrot.slane %v1531_v5, %v6485_v20  ;;  %v1477_v43 = vadd.f32 %v1446_v60, %v1403_v27 }
 0x27b   :  { %5531 = vpow2.f32 %v4986_v17  ;;  %v1546_v48 = vcombine.high %v1538_v38, %v1538_v38  ;;  %v1478_v49 = vadd.f32 %v1460_v62, %v1404_v10  ;;  %v1479_v52 = vadd.f32 %v1462_v40, %v1405_v45 }
 0x27c   :  { %v5516_v59 = vpop.eup %5515  ;;  %v4988_v53 = vmul.f32 -1.442695, %v1475_v7  ;;  %v1480_v55 = vadd.f32 %v1464_v14, %v1406_v26  ;;  %v4989_v56 = vmul.f32 -1.442695, %v1476_v18  ;;  %v1547_v61 = vcombine.high %v1545_v34, %v1545_v34 }
 0x27d   :  { %v1367_v8 = vadd.f32 1.0, %v5516_v59  ;;  %v4990_v59 = vmul.f32 -1.442695, %v1477_v43  ;;  %v1554_v60 = vrot.slane %v1538_v38, %v6485_v20  ;;  %v4991_v17 = vmul.f32 -1.442695, %v1478_v49 }
 0x27e   :  { %v5518_v31 = vpop.eup %5517  ;;  %v4992_v27 = vmul.f32 -1.442695, %v1479_v52  ;;  %v1596_v1 = vrot.slane %v6658_v57, 2  ;;  %v4993_v5 = vmul.f32 -1.442695, %v1480_v55  ;;  %v1598_v45 = vrot.slane %v6664_v19, 2 }
 0x27f   :  { %v5520_v36 = vpop.eup %5519  ;;  %v1368_v6 = vadd.f32 1.0, %v5518_v31  ;;  %5533 = vrcp.f32 %v1367_v8  ;;  %v1568_v8 = vrot.slane %v1546_v48, %v6485_v20  ;;  %v1597_v31 = vrot.slane %v6660_v58, 2 }
 0x280   :  { %v5522_v63 = vpop.eup %5521  ;;  %v1369_v9 = vadd.f32 1.0, %v5520_v36  ;;  %5535 = vpow2.f32 %v4987_v35  ;;  %v1561_v36 = vrot.slane %v1545_v34, %v6485_v20  ;;  %v1575_v26 = vrot.slane %v1547_v61, %v6485_v20 }
 0x281   :  { %v5524_v13 = vpop.eup %5523  ;;  %v1370_v12 = vadd.f32 1.0, %v5522_v63  ;;  %5537 = vrcp.f32 %v1368_v6  ;;  %v1576_v63 = vcombine.high %v1554_v60, %v1554_v60  ;;  %v1578_v7 = vcombine.high %v1568_v8, %v1568_v8 }
 0x282   :  { %v5526_v4 = vpop.eup %5525  ;;  %v1371_v15 = vadd.f32 1.0, %v5524_v13  ;;  %5539 = vrcp.f32 %v1369_v9  ;;  %v1600_v19 = vrot.slane %v6670_v24, 2  ;;  %v1602_v24 = vrot.slane %v6676_v33, 2 }
 0x283   :  { %v5528_v46 = vpop.eup %5527  ;;  %v1372_v47 = vadd.f32 1.0, %v5526_v4  ;;  %5541 = vrcp.f32 %v1370_v12  ;;  %v1599_v12 = vrot.slane %v6666_v22, 2  ;;  %v1601_v4 = vrot.slane %v6672_v2, 2 }
 0x284   :  { %v5530_v50 = vpop.eup %5529  ;;  %v1373_v51 = vadd.f32 1.0, %v5528_v46  ;;  %5543 = vrcp.f32 %v1371_v15  ;;  %v1577_v46 = vcombine.high %v1561_v36, %v1561_v36  ;;  %v1603_v55 = vrot.slane %v6680_v39, 2 }
 0x285   :  { %v1374_v54 = vadd.f32 1.0, %v5530_v50  ;;  %5545 = vrcp.f32 %v1372_v47  ;;  %v5532_v35 = vpop.eup %5531  ;;  %v1579_v50 = vcombine.high %v1575_v26, %v1575_v26 }
 0x286   :  { %5547 = vrcp.f32 %v1373_v51  ;;  %v1505_v9 = vadd.f32 1.0, %v5532_v35 }
 0x287   :  { %5549 = vrcp.f32 %v1374_v54 }
 0x288   :  { %5551 = vpow2.f32 %v4988_v53 }
 0x289   :  { %v5534_v62 = vpop.eup %5533  ;;  %5553 = vpow2.f32 %v4989_v56 }
 0x28a   :  { %v5536_v10 = vpop.eup %5535  ;;  %v1588_v6 = vmul.f32 %v5534_v62, %v1554_v60  ;;  %5555 = vpow2.f32 %v4990_v59 }
 0x28b   :  { %v5538_v38 = vpop.eup %5537  ;;  %5557 = vpow2.f32 %v4991_v17  ;;  %v1506_v17 = vadd.f32 1.0, %v5536_v10 }
 0x28c   :  { %v5540_v40 = vpop.eup %5539  ;;  %v1589_v57 = vmul.f32 %v5538_v38, %v1568_v8  ;;  %v1612_v13 = vadd.f32 %v1596_v1, %v1588_v6  ;;  %5559 = vpow2.f32 %v4992_v27 }
 0x28d   :  { %v5542_v58 = vpop.eup %5541  ;;  %v1590_v14 = vmul.f32 %v5540_v40, %v1576_v63  ;;  %5561 = vpow2.f32 %v4993_v5 }
 0x28e   :  { %v5544_v18 = vpop.eup %5543  ;;  %v1591_v15 = vmul.f32 %v5542_v58, %v1578_v7  ;;  %v1613_v34 = vadd.f32 %v1597_v31, %v1589_v57  ;;  %5563 = vtanh.f32 %v1612_v13 }
 0x28f   :  { %v5546_v43 = vpop.eup %5545  ;;  %v1592_v47 = vmul.f32 %v5544_v18, %v1561_v36  ;;  %v1614_v48 = vadd.f32 %v1598_v45, %v1590_v14  ;;  %5565 = vrcp.f32 %v1505_v9 }
 0x290   :  { %v5548_v49 = vpop.eup %5547  ;;  %v1593_v51 = vmul.f32 %v5546_v43, %v1575_v26  ;;  %v1615_v52 = vadd.f32 %v1599_v12, %v1591_v15  ;;  %5567 = vtanh.f32 %v1613_v34 }
 0x291   :  { %v5550_v22 = vpop.eup %5549  ;;  %v1594_v53 = vmul.f32 %v5548_v49, %v1577_v46  ;;  %v1616_v54 = vadd.f32 %v1600_v19, %v1592_v47  ;;  %5569 = vtanh.f32 %v1614_v48 }
 0x292   :  { %v5552_v2 = vpop.eup %5551  ;;  %v1595_v56 = vmul.f32 %v5550_v22, %v1579_v50  ;;  %v1617_v59 = vadd.f32 %v1601_v4, %v1593_v51  ;;  %5571 = vtanh.f32 %v1615_v52 }
 0x293   :  { %v5554_v61 = vpop.eup %5553  ;;  %v1618_v60 = vadd.f32 %v1602_v24, %v1594_v53  ;;  %5573 = vtanh.f32 %v1616_v54  ;;  %v1507_v27 = vadd.f32 1.0, %v5552_v2 }
 0x294   :  { %v5556_v35 = vpop.eup %5555  ;;  %v1619_v8 = vadd.f32 %v1603_v55, %v1595_v56  ;;  %5575 = vtanh.f32 %v1617_v59  ;;  %v1508_v33 = vadd.f32 1.0, %v5554_v61 }
 0x295   :  { %v5558_v62 = vpop.eup %5557  ;;  %5577 = vtanh.f32 %v1618_v60  ;;  %v1509_v31 = vadd.f32 1.0, %v5556_v35 }
 0x296   :  { %v5560_v1 = vpop.eup %5559  ;;  %5579 = vtanh.f32 %v1619_v8  ;;  %v1510_v45 = vadd.f32 1.0, %v5558_v62 }
 0x297   :  { %v5562_v5 = vpop.eup %5561  ;;  %5581 = vrcp.f32 %v1506_v17  ;;  %v1511_v36 = vadd.f32 1.0, %v5560_v1 }
 0x298   :  { %v5564_v39 = vpop.eup %5563  ;;  %5583 = vrcp.f32 %v1507_v27  ;;  %v1512_v38 = vadd.f32 1.0, %v5562_v5 }
 0x299   :  { %v5566_v6 = vpop.eup %5565  ;;  %5585 = vrcp.f32 %v1508_v33 }
 0x29a   :  { %v5568_v10 = vpop.eup %5567  ;;  %5587 = vrcp.f32 %v1509_v31  ;;  %v1628_v26 = vsub.f32 1.0, %v5566_v6  ;;  %v1644_v7 = vmul.f32 %v5566_v6, %v6563_v29 }
 0x29b   :  { %v5570_v63 = vpop.eup %5569  ;;  %5589 = vrcp.f32 %v1510_v45 }
 0x29c   :  { %v5572_v9 = vpop.eup %5571  ;;  %5591 = vrcp.f32 %v1511_v36  ;;  %v1636_v40 = vmul.f32 %v5564_v39, %v1628_v26 }
 0x29d   :  { %v5574_v57 = vpop.eup %5573  ;;  %5593 = vrcp.f32 %v1512_v38 }
 0x29e   :  { %v5576_v13 = vpop.eup %5575  ;;  %v6715_v58 = vadd.f32 %v1644_v7, %v1636_v40 }
 0x29f   :  { %v5578_v12 = vpop.eup %5577 }
 0x2a0   :  { %v5580_v19 = vpop.eup %5579  ;;  %1660 = vst [vmem:[#allocation10 + $0x1] sm:$0x1] %v6715_v58  ;;  %v1684_v29 = vpack.c.bf16 %v6715_v58, %v6715_v58 }
 0x2a1   :  { %v5582_v14 = vpop.eup %5581 }
 0x2a2   :  { %v5584_v18 = vpop.eup %5583  ;;  %v1629_v4 = vsub.f32 1.0, %v5582_v14  ;;  %v1645_v48 = vmul.f32 %v5582_v14, %v6565_v30  ;;  %v1700_v6 = vunpack.c.l.b16 %v1684_v29 }
 0x2a3   :  { %v5586_v15 = vpop.eup %5585  ;;  %v1630_v34 = vsub.f32 1.0, %v5584_v18  ;;  %v1646_v52 = vmul.f32 %v5584_v18, %v6567_v41 }
 0x2a4   :  { %v5588_v43 = vpop.eup %5587  ;;  %v1631_v46 = vsub.f32 1.0, %v5586_v15  ;;  %v1637_v47 = vmul.f32 %v5568_v10, %v1629_v4  ;;  %v1647_v22 = vmul.f32 %v5586_v15, %v6570_v44 }
 0x2a5   :  { %v5590_v49 = vpop.eup %5589  ;;  %v1632_v50 = vsub.f32 1.0, %v5588_v43  ;;  %v1638_v51 = vmul.f32 %v5570_v63, %v1630_v34  ;;  %v1648_v2 = vmul.f32 %v5588_v43, %v6577_v11 }
 0x2a6   :  { %v5592_v24 = vpop.eup %5591  ;;  %v1633_v53 = vsub.f32 1.0, %v5590_v49  ;;  %v1639_v54 = vmul.f32 %v5572_v9, %v1631_v46  ;;  %v6724_v55 = vadd.f32 %v1645_v48, %v1637_v47  ;;  %v1649_v60 = vmul.f32 %v5590_v49, %v6588_v25 }
 0x2a7   :  { %v5594_v56 = vpop.eup %5593  ;;  %v1640_v59 = vmul.f32 %v5574_v57, %v1632_v50  ;;  %v6726_v30 = vadd.f32 %v1646_v52, %v1638_v51  ;;  %v1634_v61 = vsub.f32 1.0, %v5592_v24  ;;  %v1650_v44 = vmul.f32 %v5592_v24, %v6590_v28  ;;  %v6777_v50 = vld [vmem:[#allocation9 + $0x20] ss:$12 sps:$4 sm:$0xff]   ;;  %v6797_v52 = vld [vmem:[#allocation9 + $0x50] ss:$12 sps:$4 sm:$0xff]  }
 0x2a8   :  { %1661 = vst [vmem:[#allocation10 + $0x9] sm:$0x1] %v6724_v55  ;;  %v1635_v17 = vsub.f32 1.0, %v5594_v56  ;;  %v1641_v41 = vmul.f32 %v5576_v13, %v1633_v53  ;;  %v6731_v35 = vadd.f32 %v1647_v22, %v1639_v54  ;;  %v1685_v27 = vpack.c.bf16 %v6724_v55, %v6724_v55  ;;  %v6780_v51 = vld [vmem:[#allocation9 + $0x34] ss:$12 sps:$4 sm:$0xff]  }
 0x2a9   :  { %1662 = vst [vmem:[#allocation10 + $0x11] sm:$0x1] %v6726_v30  ;;  %v1642_v11 = vmul.f32 %v5578_v12, %v1634_v61  ;;  %v6734_v8 = vadd.f32 %v1648_v2, %v1640_v59  ;;  %v1686_v62 = vpack.c.bf16 %v6726_v30, %v6726_v30  ;;  %v1651_v33 = vmul.f32 %v5594_v56, %v6592_v32  ;;  %v6800_v22 = vld [vmem:[#allocation9 + $0x64] ss:$12 sps:$4 sm:$0xff]   ;;  %v6804_v24 = vld [vmem:[#allocation9 + $0x60] ss:$12 sps:$4 sm:$0xff]  }
 0x2aa   :  { %v1643_v25 = vmul.f32 %v5580_v19, %v1635_v17  ;;  %v6741_v1 = vadd.f32 %v1649_v60, %v1641_v41  ;;  %1663 = vst [vmem:[#allocation10 + $0x19] sm:$0x1] %v6731_v35  ;;  %v1687_v28 = vpack.c.bf16 %v6731_v35, %v6731_v35  ;;  %v1701_v45 = vunpack.c.l.b16 %v1685_v27  ;;  %v6807_v53 = vld [vmem:[#allocation9 + $0x68] ss:$12 sps:$4 sm:$0xff]   ;;  %v6814_v2 = vld [vmem:[#allocation9 + $0x78] ss:$12 sps:$4 sm:$0xff]  }
 0x2ab   :  { %v6746_v31 = vadd.f32 %v1650_v44, %v1642_v11  ;;  %1664 = vst [vmem:[#allocation10 + $0x21] sm:$0x1] %v6734_v8  ;;  %v1688_v5 = vpack.c.bf16 %v6734_v8, %v6734_v8  ;;  %v1702_v39 = vunpack.c.l.b16 %v1686_v62  ;;  %v6810_v54 = vld [vmem:[#allocation9 + $0x7c] ss:$12 sps:$4 sm:$0xff]   ;;  %v6817_v56 = vld [vmem:[#allocation9 + $0x80] ss:$12 sps:$4 sm:$0xff]  }
 0x2ac   :  { %v6751_v36 = vadd.f32 %v1651_v33, %v1643_v25  ;;  %1665 = vst [vmem:[#allocation10 + $0x29] sm:$0x1] %v6741_v1  ;;  %v1689_v32 = vpack.c.bf16 %v6741_v1, %v6741_v1  ;;  %v1703_v38 = vunpack.c.l.b16 %v1687_v28  ;;  %v1708_v63 = vrot.slane %v1701_v45, 7  ;;  %v6820_v59 = vld [vmem:[#allocation9 + $0x94] ss:$12 sps:$4 sm:$0xff]  }
 0x2ad   :  { %1666 = vst [vmem:[#allocation10 + $0x31] sm:$0x1] %v6746_v31  ;;  %v1690_v10 = vpack.c.bf16 %v6746_v31, %v6746_v31  ;;  %v1704_v26 = vunpack.c.l.b16 %v1688_v5  ;;  %v1710_v9 = vrot.slane %v1702_v39, 6  ;;  %v6824_v61 = vld [vmem:[#allocation9 + $0x90] ss:$12 sps:$4 sm:$0xff]  }
 0x2ae   :  { %1667 = vst [vmem:[#allocation10 + $0x39] sm:$0x1] %v6751_v36  ;;  %v1691_v40 = vpack.c.bf16 %v6751_v36, %v6751_v36  ;;  %v1705_v7 = vunpack.c.l.b16 %v1689_v32  ;;  %v1712_v57 = vrot.slane %v1703_v38, 5  ;;  %v1709_v12 = vsel %vm1174_vm1, %v1708_v63, %v1700_v6  ;;  %v6827_v60 = vld [vmem:[#allocation9 + $0x98] ss:$12 sps:$4 sm:$0xff]  }
 0x2af   :  { %v1706_v13 = vunpack.c.l.b16 %v1690_v10  ;;  %v1711_v14 = vsel %vm1177_vm2, %v1710_v9, %v1709_v12  ;;  %v1714_v18 = vrot.slane %v1704_v26, 4  ;;  %7714 = vst [vmem:[#allocation14_spill] sm:$0xff] %v6827_v60  ;;  %v6830_v17 = vld [vmem:[#allocation9 + $0xac] ss:$12 sps:$4 sm:$0xff]   ;;  %v6834_v41 = vld [vmem:[#allocation9 + $0xa8] ss:$12 sps:$4 sm:$0xff]  }
 0x2b0   :  { %v1707_v19 = vunpack.c.l.b16 %v1691_v40  ;;  %v1713_v4 = vsel %vm1180_vm3, %v1712_v57, %v1711_v14  ;;  %v1716_v15 = vrot.slane %v1705_v7, 3  ;;  %7715 = vst [vmem:[#allocation15_spill] sm:$0xff] %v6830_v17  ;;  %7716 = vst [vmem:[#allocation16_spill] sm:$0xff] %v6834_v41  ;;  %v6837_v44 = vld [vmem:[#allocation9 + $0xb0] ss:$12 sps:$4 sm:$0xff]  }
 0x2b1   :  { %v1715_v34 = vsel %vm1183_vm4, %v1714_v18, %v1713_v4  ;;  %v1718_v43 = vrot.slane %v1706_v13, 2  ;;  %7717 = vst [vmem:[#allocation17_spill] sm:$0xff] %v6837_v44  ;;  %v6849_v26 = vld [vmem:[#allocation2 + $0x1a] ss:$8 sm:$0x7] }
 0x2b2   :  { %v1717_v46 = vsel %vm1186_vm5, %v1716_v15, %v1715_v34  ;;  %v1720_v47 = vrot.slane %v1707_v19, 1  ;;  %v6853_v57 = vld [vmem:[#allocation2 + $0x32] ss:$8 sm:$0x7] }
 0x2b3   :  { %v1719_v48 = vsel %vm1189_vm6, %v1718_v43, %v1717_v46  ;;  %v6855_v13 = vld [vmem:[#allocation2 + $0x4a] ss:$8 sm:$0x7] }
 0x2b4   :  { %v1721_v29 = vsel %vm1192_vm7, %v1720_v47, %v1719_v48  ;;  %v6859_v14 = vld [vmem:[#allocation2 + $0x62] ss:$8 sm:$0x7] }
 0x2b5   :  { %v1722_v49 = vpack.c.b16 %v1721_v29, %v1721_v29  ;;  %v6861_v18 = vld [vmem:[#allocation2 + $0x7a] ss:$8 sm:$0x7] }
 0x2b6   :  { %v6865_v46 = vld [vmem:[#allocation2 + $0x92] ss:$8 sm:$0x7] }
 0x2b7   :  { %1757 = vmatmul.mubr.bf16.vlgmr.msra.gmra.mrb[24].mxu0 %v1722_v49  ;;  %5255 = vmatmul.mubr.bf16.vlgmr.msra.gmra.mrb[16].mxu1 %v1722_v49 }
 0x2b8   :  { %2253 = vmatpush1.bf16.msra.mxu0 %v6610_v3  ;;  %5259 = vmatpush3.bf16.msra.mxu1 %v6613_v23  ;;  %v6784_v3 = vld [vmem:[#allocation9 + $0x30] ss:$12 sps:$4 sm:$0xff]   ;;  %v6787_v23 = vld [vmem:[#allocation9 + $0x38] ss:$12 sps:$4 sm:$0xff]  }
 0x2b9   :  { %2254 = vmatprep.subr.bf16.mxu0 %v6616_v21  ;;  %5260 = vmatprep.subr.bf16.mxu1 %v7700_v37  ;;  %v6790_v21 = vld [vmem:[#allocation9 + $0x4c] ss:$12 sps:$4 sm:$0xff]  }
 0x2ba   :  { %2284 = vmatprep.mubr.bf16.mxu0 %v7698_v0  ;;  %5274 = vmatprep.mubr.msk.bf16.mxu1 %vm6253_vm0, %v7700_v37 }
 0x2bc   :  { %2255 = vmatpush1.bf16.msra.mxu0 %v6623_v16  ;;  %5261 = vmatpush3.bf16.msra.mxu1 %v6777_v50  ;;  %v6794_v16 = vld [vmem:[#allocation9 + $0x48] ss:$12 sps:$4 sm:$0xff]  }
 0x2bd   :  { %2256 = vmatprep.subr.bf16.mxu0 %v6780_v51  ;;  %5262 = vmatprep.subr.bf16.mxu1 %v7700_v37 }
 0x2c0   :  { %2257 = vmatpush1.bf16.msra.mxu0 %v6784_v3  ;;  %5263 = vmatpush3.bf16.msra.mxu1 %v6787_v23 }
 0x2c1   :  { %2258 = vmatprep.subr.bf16.mxu0 %v6790_v21  ;;  %5264 = vmatprep.subr.bf16.mxu1 %v7700_v37 }
 0x2c4   :  { %2259 = vmatpush1.bf16.msra.mxu0 %v6794_v16  ;;  %5265 = vmatpush3.bf16.msra.mxu1 %v6797_v52 }
 0x2c5   :  { %2260 = vmatprep.subr.bf16.mxu0 %v6800_v22  ;;  %5266 = vmatprep.subr.bf16.mxu1 %v7700_v37 }
 0x2c8   :  { %2261 = vmatpush1.bf16.msra.mxu0 %v6804_v24  ;;  %5267 = vmatpush3.bf16.msra.mxu1 %v6807_v53 }
 0x2c9   :  { %2262 = vmatprep.subr.bf16.mxu0 %v6810_v54  ;;  %5268 = vmatprep.subr.bf16.mxu1 %v7700_v37 }
 0x2cc   :  { %2263 = vmatpush1.bf16.msra.mxu0 %v6814_v2  ;;  %5269 = vmatpush3.bf16.msra.mxu1 %v6817_v56 }
 0x2cd   :  { %2264 = vmatprep.subr.bf16.mxu0 %v6820_v59  ;;  %5270 = vmatprep.subr.bf16.mxu1 %v7700_v37 }
 0x2d0   :  { %2265 = vmatpush1.bf16.msra.mxu0 %v6824_v61  ;;  %5271 = vmatpush3.bf16.msra.mxu1 %v6827_v60 }
 0x2d1   :  { %2266 = vmatprep.subr.bf16.mxu0 %v6830_v17  ;;  %5272 = vmatprep.subr.bf16.mxu1 %v7700_v37 }
 0x2d4   :  { %2267 = vmatpush1.bf16.msra.mxu0 %v6834_v41  ;;  %5273 = vmatpush3.bf16.msra.mxu1 %v6837_v44 }
 0x2d5   :  { %2780 = vmatprep.subr.bf16.mxu0 %v6651_v42  ;;  %5278 = vmatprep.subr.bf16.mxu1 %v7700_v37  ;;  %v6847_v42 = vld [vmem:[#allocation2 + $0x2] ss:$8 sm:$0x7] }
 0x38a   :  { %v1758_v11 = vpop.f32.mrb[24].mxu0  ;;  %v6842_v27 = vpop.f32.mrb[16].mxu1 }
 0x38b   :  { %v1806_v62 = vcombine.high %v1758_v11, %v1758_v11  ;;  %v1813_v25 = vrot.slane %v1758_v11, %v6485_v20  ;;  %v1760_v33 = vpop.f32.mrb[25].mxu0  ;;  %v5256_v28 = vpop.f32.mrb[17].mxu1  ;;  %v6869_v11 = vld [vmem:[#allocation2 + $0xaa] ss:$8 sm:$0x7] }
 0x38c   :  { %v1762_v5 = vpop.f32.mrb[26].mxu0  ;;  %v1802_v45 = vpop.f32.mrb[18].mxu1  ;;  %v1951_v19 = vrot.slane %v1760_v33, %v6485_v20  ;;  %v1944_v49 = vcombine.high %v1760_v33, %v1760_v33 }
 0x38d   :  { %v1820_v39 = vrot.slane %v1806_v62, %v6485_v20  ;;  %v1821_v32 = vcombine.high %v1813_v25, %v1813_v25  ;;  %v1829_v6 = vrot.slane %v1813_v25, %v6485_v20  ;;  %v1763_v38 = vpop.f32.mrb[27].mxu0  ;;  %v5257_v10 = vpop.f32.mrb[19].mxu1 }
 0x38e   :  { %v1959_v10 = vcombine.high %v1951_v19, %v1951_v19  ;;  %v1967_v33 = vrot.slane %v1951_v19, %v6485_v20  ;;  %v6883_v19 = vld [vmem:[%s7696_s4] ss:$0 sm:$0xff] }
 0x38f   :  { %v1822_v63 = vcombine.high %v1820_v39, %v1820_v39  ;;  %v1836_v9 = vrot.slane %v1820_v39, %v6485_v20  ;;  %v1843_v40 = vrot.slane %v1821_v32, %v6485_v20  ;;  %v1851_v7 = vcombine.high %v1829_v6, %v1829_v6  ;;  %7718 = vst [vmem:[#allocation18_spill] sm:$0xff] %v6883_v19 }
 0x390   :  { %v1863_v12 = vadd.f32 %v1829_v6, %v6847_v42 }
 0x391   :  { %v1850_v4 = vrot.slane %v1822_v63, %v6485_v20  ;;  %v1852_v15 = vcombine.high %v1836_v9, %v1836_v9  ;;  %v1853_v34 = vcombine.high %v1843_v40, %v1843_v40  ;;  %v1864_v43 = vadd.f32 %v1843_v40, %v6849_v26 }
 0x392   :  { %v1865_v47 = vadd.f32 %v1851_v7, %v6853_v57  ;;  %v1867_v48 = vadd.f32 %v1836_v9, %v6859_v14  ;;  %v4994_v29 = vmul.f32 -1.442695, %v1863_v12  ;;  %v1958_v40 = vrot.slane %v1944_v49, %v6485_v20 }
 0x393   :  { %v1854_v62 = vcombine.high %v1850_v4, %v1850_v4  ;;  %v1866_v25 = vadd.f32 %v1853_v34, %v6855_v13  ;;  %v1868_v28 = vadd.f32 %v1850_v4, %v6861_v18  ;;  %v1869_v5 = vadd.f32 %v1852_v15, %v6865_v46 }
 0x394   :  { %5595 = vpow2.f32 %v4994_v29  ;;  %v4995_v45 = vmul.f32 -1.442695, %v1864_v43  ;;  %v4996_v39 = vmul.f32 -1.442695, %v1865_v47  ;;  %v4998_v38 = vmul.f32 -1.442695, %v1867_v48 }
 0x395   :  { %v1870_v32 = vadd.f32 %v1854_v62, %v6869_v11  ;;  %v4997_v6 = vmul.f32 -1.442695, %v1866_v25  ;;  %v4999_v63 = vmul.f32 -1.442695, %v1868_v28  ;;  %v5000_v9 = vmul.f32 -1.442695, %v1869_v5 }
 0x396   :  { %5597 = vpow2.f32 %v4995_v45  ;;  %v1927_v12 = vrot.slane %v6847_v42, 1  ;;  %v1981_v4 = vrot.slane %v1959_v10, %v6485_v20  ;;  %v1928_v15 = vrot.slane %v6849_v26, 1 }
 0x397   :  { %5599 = vpow2.f32 %v4996_v39  ;;  %v5001_v7 = vmul.f32 -1.442695, %v1870_v32  ;;  %v1960_v43 = vcombine.high %v1958_v40, %v1958_v40  ;;  %v2057_v47 = vadd.f32 %v6883_v19, %v6842_v27 }
 0x398   :  { %5601 = vpow2.f32 %v4997_v6  ;;  %v2001_v34 = vadd.f32 %v1967_v33, %v1927_v12  ;;  %v2002_v48 = vadd.f32 %v1981_v4, %v1928_v15  ;;  %v1929_v29 = vrot.slane %v6853_v57, 1 }
 0x399   :  { %5603 = vpow2.f32 %v4998_v38  ;;  %v1930_v49 = vrot.slane %v6855_v13, 1  ;;  %v1974_v25 = vrot.slane %v1958_v40, %v6485_v20  ;;  %v1989_v28 = vcombine.high %v1967_v33, %v1967_v33 }
 0x39a   :  { %5605 = vpow2.f32 %v4999_v63  ;;  %v5002_v5 = vmul.f32 -1.442695, %v2001_v34  ;;  %v5003_v45 = vmul.f32 -1.442695, %v2002_v48  ;;  %v1931_v32 = vrot.slane %v6859_v14, 1 }
 0x39b   :  { %5607 = vpow2.f32 %v5000_v9  ;;  %v1988_v6 = vrot.slane %v1960_v43, %v6485_v20  ;;  %v1991_v38 = vcombine.high %v1981_v4, %v1981_v4  ;;  %v2059_v63 = vcombine.high %v2057_v47, %v2057_v47 }
 0x39c   :  { %5609 = vpow2.f32 %v5001_v7  ;;  %v1932_v27 = vrot.slane %v6861_v18, 1  ;;  %v1933_v9 = vrot.slane %v6865_v46, 1  ;;  %v2066_v33 = vrot.slane %v2057_v47, %v6485_v20 }
 0x39d   :  { %5611 = vpow2.f32 %v5002_v5  ;;  %v1934_v40 = vrot.slane %v6869_v11, 1  ;;  %v1990_v48 = vcombine.high %v1974_v25, %v1974_v25  ;;  %v1992_v0 = vcombine.high %v1988_v6, %v1988_v6 }
 0x39e   :  { %v5596_v62 = vpop.eup %5595  ;;  %v2004_v37 = vadd.f32 %v1991_v38, %v1930_v49  ;;  %v2073_v5 = vrot.slane %v2059_v63, %v6485_v20  ;;  %v2074_v41 = vcombine.high %v2066_v33, %v2066_v33  ;;  %v2006_v17 = vadd.f32 %v1988_v6, %v1932_v27 }
 0x39f   :  { %v1895_v39 = vadd.f32 1.0, %v5596_v62  ;;  %v2003_v62 = vadd.f32 %v1989_v28, %v1929_v29  ;;  %v2007_v29 = vadd.f32 %v1990_v48, %v1933_v9  ;;  %v2125_v9 = vrot.slane %v6849_v26, 2 }
 0x3a0   :  { %v5598_v10 = vpop.eup %5597  ;;  %v5005_v49 = vmul.f32 -1.442695, %v2004_v37  ;;  %v2096_v63 = vrot.slane %v2074_v41, %v6485_v20 }
 0x3a1   :  { %v5600_v7 = vpop.eup %5599  ;;  %v1896_v12 = vadd.f32 1.0, %v5598_v10  ;;  %5613 = vrcp.f32 %v1895_v39  ;;  %v2005_v39 = vadd.f32 %v1974_v25, %v1931_v32  ;;  %v5004_v28 = vmul.f32 -1.442695, %v2003_v62 }
 0x3a2   :  { %v5602_v15 = vpop.eup %5601  ;;  %v1897_v34 = vadd.f32 1.0, %v5600_v7  ;;  %5615 = vpow2.f32 %v5003_v45  ;;  %v2082_v25 = vrot.slane %v2066_v33, %v6485_v20  ;;  %v5007_v32 = vmul.f32 -1.442695, %v2006_v17 }
 0x3a3   :  { %v5604_v4 = vpop.eup %5603  ;;  %v1898_v43 = vadd.f32 1.0, %v5602_v15  ;;  %5617 = vrcp.f32 %v1896_v12  ;;  %v2008_v12 = vadd.f32 %v1992_v0, %v1934_v40  ;;  %v5006_v38 = vmul.f32 -1.442695, %v2005_v39 }
 0x3a4   :  { %v5606_v19 = vpop.eup %5605  ;;  %v1899_v44 = vadd.f32 1.0, %v5604_v4  ;;  %5619 = vrcp.f32 %v1897_v34  ;;  %v2075_v15 = vcombine.high %v2073_v5, %v2073_v5  ;;  %v5008_v6 = vmul.f32 -1.442695, %v2007_v29 }
 0x3a5   :  { %v5608_v10 = vpop.eup %5607  ;;  %v1900_v47 = vadd.f32 1.0, %v5606_v19  ;;  %5621 = vrcp.f32 %v1898_v43  ;;  %v5009_v0 = vmul.f32 -1.442695, %v2008_v12  ;;  %v2089_v40 = vrot.slane %v2073_v5, %v6485_v20 }
 0x3a6   :  { %v5610_v7 = vpop.eup %5609  ;;  %v1901_v60 = vadd.f32 1.0, %v5608_v10  ;;  %5623 = vrcp.f32 %v1899_v44  ;;  %v2124_v44 = vrot.slane %v6847_v42, 2  ;;  %v2103_v33 = vrot.slane %v2075_v15, %v6485_v20 }
 0x3a7   :  { %v1902_v45 = vadd.f32 1.0, %v5610_v7  ;;  %5625 = vrcp.f32 %v1900_v47  ;;  %v5612_v19 = vpop.eup %5611  ;;  %v2104_v41 = vcombine.high %v2082_v25, %v2082_v25  ;;  %v2106_v4 = vcombine.high %v2096_v63, %v2096_v63 }
 0x3a8   :  { %5627 = vrcp.f32 %v1901_v60  ;;  %v2126_v60 = vrot.slane %v6853_v57, 2  ;;  %v2033_v48 = vadd.f32 1.0, %v5612_v19  ;;  %v2127_v39 = vrot.slane %v6855_v13, 2 }
 0x3a9   :  { %5629 = vrcp.f32 %v1902_v45  ;;  %v2128_v57 = vrot.slane %v6859_v14, 2  ;;  %v2129_v47 = vrot.slane %v6861_v18, 2  ;;  %v2105_v45 = vcombine.high %v2089_v40, %v2089_v40 }
 0x3aa   :  { %5631 = vpow2.f32 %v5004_v28  ;;  %v2107_v15 = vcombine.high %v2103_v33, %v2103_v33  ;;  %v2130_v14 = vrot.slane %v6865_v46, 2 }
 0x3ab   :  { %v5614_v27 = vpop.eup %5613  ;;  %5633 = vpow2.f32 %v5005_v49 }
 0x3ac   :  { %v5616_v37 = vpop.eup %5615  ;;  %v2116_v34 = vmul.f32 %v5614_v27, %v2082_v25  ;;  %5635 = vpow2.f32 %v5006_v38 }
 0x3ad   :  { %v5618_v17 = vpop.eup %5617  ;;  %5637 = vpow2.f32 %v5007_v32 }
 0x3ae   :  { %v5620_v62 = vpop.eup %5619  ;;  %v2117_v42 = vmul.f32 %v5618_v17, %v2096_v63  ;;  %v2140_v43 = vadd.f32 %v2124_v44, %v2116_v34  ;;  %5639 = vpow2.f32 %v5008_v6  ;;  %v2131_v6 = vrot.slane %v6869_v11, 2 }
 0x3af   :  { %v5622_v26 = vpop.eup %5621  ;;  %v2118_v10 = vmul.f32 %v5620_v62, %v2104_v41  ;;  %5641 = vpow2.f32 %v5009_v0 }
 0x3b0   :  { %v5624_v5 = vpop.eup %5623  ;;  %v2119_v7 = vmul.f32 %v5622_v26, %v2106_v4  ;;  %v2141_v29 = vadd.f32 %v2125_v9, %v2117_v42  ;;  %5643 = vtanh.f32 %v2140_v43 }
 0x3b1   :  { %v5626_v28 = vpop.eup %5625  ;;  %v2120_v12 = vmul.f32 %v5624_v5, %v2089_v40  ;;  %v2142_v49 = vadd.f32 %v2126_v60, %v2118_v10  ;;  %5645 = vrcp.f32 %v2033_v48  ;;  %v2034_v60 = vadd.f32 1.0, %v5616_v37 }
 0x3b2   :  { %v5628_v38 = vpop.eup %5627  ;;  %v2121_v25 = vmul.f32 %v5626_v28, %v2103_v33  ;;  %v2143_v32 = vadd.f32 %v2127_v39, %v2119_v7  ;;  %5647 = vtanh.f32 %v2141_v29 }
 0x3b3   :  { %v5630_v13 = vpop.eup %5629  ;;  %v2122_v19 = vmul.f32 %v5628_v38, %v2105_v45  ;;  %v2144_v63 = vadd.f32 %v2128_v57, %v2120_v12  ;;  %5649 = vtanh.f32 %v2142_v49 }
 0x3b4   :  { %v5632_v18 = vpop.eup %5631  ;;  %v2123_v27 = vmul.f32 %v5630_v13, %v2107_v15  ;;  %v2145_v44 = vadd.f32 %v2129_v47, %v2121_v25  ;;  %5651 = vtanh.f32 %v2143_v32 }
 0x3b5   :  { %v5634_v9 = vpop.eup %5633  ;;  %v2146_v0 = vadd.f32 %v2130_v14, %v2122_v19  ;;  %5653 = vtanh.f32 %v2144_v63  ;;  %v2035_v17 = vadd.f32 1.0, %v5632_v18 }
 0x3b6   :  { %v5636_v40 = vpop.eup %5635  ;;  %v2147_v34 = vadd.f32 %v2131_v6, %v2123_v27  ;;  %5655 = vtanh.f32 %v2145_v44  ;;  %v2036_v46 = vadd.f32 1.0, %v5634_v9 }
 0x3b7   :  { %v5638_v33 = vpop.eup %5637  ;;  %5657 = vtanh.f32 %v2146_v0  ;;  %v2037_v48 = vadd.f32 1.0, %v5636_v40 }
 0x3b8   :  { %v5640_v41 = vpop.eup %5639  ;;  %5659 = vtanh.f32 %v2147_v34  ;;  %v2038_v4 = vadd.f32 1.0, %v5638_v33 }
 0x3b9   :  { %v5642_v62 = vpop.eup %5641  ;;  %5661 = vrcp.f32 %v2034_v60  ;;  %v2039_v42 = vadd.f32 1.0, %v5640_v41 }
 0x3ba   :  { %v5644_v11 = vpop.eup %5643  ;;  %5663 = vrcp.f32 %v2035_v17  ;;  %v2040_v26 = vadd.f32 1.0, %v5642_v62 }
 0x3bb   :  { %v5646_v43 = vpop.eup %5645  ;;  %5665 = vrcp.f32 %v2036_v46 }
 0x3bc   :  { %v5648_v37 = vpop.eup %5647  ;;  %5667 = vrcp.f32 %v2037_v48  ;;  %v2156_v39 = vsub.f32 1.0, %v5646_v43  ;;  %v2172_v47 = vmul.f32 %v5646_v43, %v6715_v58 }
 0x3bd   :  { %v5650_v57 = vpop.eup %5649  ;;  %5669 = vrcp.f32 %v2038_v4 }
 0x3be   :  { %v5652_v10 = vpop.eup %5651  ;;  %5671 = vrcp.f32 %v2039_v42  ;;  %v2164_v5 = vmul.f32 %v5644_v11, %v2156_v39 }
 0x3bf   :  { %v5654_v7 = vpop.eup %5653  ;;  %5673 = vrcp.f32 %v2040_v26 }
 0x3c0   :  { %v5656_v29 = vpop.eup %5655  ;;  %v6910_v28 = vadd.f32 %v2172_v47, %v2164_v5 }
 0x3c1   :  { %v5658_v45 = vpop.eup %5657 }
 0x3c2   :  { %v5660_v12 = vpop.eup %5659  ;;  %2188 = vst [vmem:[#allocation10 + $0x2] sm:$0x1] %v6910_v28  ;;  %v2212_v58 = vpack.c.bf16 %v6910_v28, %v6910_v28 }
 0x3c3   :  { %v5662_v49 = vpop.eup %5661 }
 0x3c4   :  { %v5664_v38 = vpop.eup %5663  ;;  %v2157_v15 = vsub.f32 1.0, %v5662_v49  ;;  %v2173_v63 = vmul.f32 %v5662_v49, %v6724_v55 }
 0x3c5   :  { %v5666_v25 = vpop.eup %5665  ;;  %v2158_v32 = vsub.f32 1.0, %v5664_v38  ;;  %v2174_v44 = vmul.f32 %v5664_v38, %v6726_v30 }
 0x3c6   :  { %v5668_v13 = vpop.eup %5667  ;;  %v2159_v14 = vsub.f32 1.0, %v5666_v25  ;;  %v2165_v19 = vmul.f32 %v5648_v37, %v2157_v15  ;;  %v2175_v9 = vmul.f32 %v5666_v25, %v6731_v35 }
 0x3c7   :  { %v5670_v18 = vpop.eup %5669  ;;  %v2160_v6 = vsub.f32 1.0, %v5668_v13  ;;  %v2166_v27 = vmul.f32 %v5650_v57, %v2158_v32  ;;  %v2176_v34 = vmul.f32 %v5668_v13, %v6734_v8 }
 0x3c8   :  { %v5672_v0 = vpop.eup %5671  ;;  %v2161_v60 = vsub.f32 1.0, %v5670_v18  ;;  %v2167_v40 = vmul.f32 %v5652_v10, %v2159_v14  ;;  %v6919_v17 = vadd.f32 %v2173_v63, %v2165_v19  ;;  %v2177_v48 = vmul.f32 %v5670_v18, %v6741_v1 }
 0x3c9   :  { %v5674_v33 = vpop.eup %5673  ;;  %v2168_v46 = vmul.f32 %v5654_v7, %v2160_v6  ;;  %v6921_v55 = vadd.f32 %v2174_v44, %v2166_v27  ;;  %v2162_v41 = vsub.f32 1.0, %v5672_v0  ;;  %v2178_v35 = vmul.f32 %v5672_v0, %v6746_v31 }
 0x3ca   :  { %2189 = vst [vmem:[#allocation10 + $0xa] sm:$0x1] %v6919_v17  ;;  %v2163_v62 = vsub.f32 1.0, %v5674_v33  ;;  %v2169_v30 = vmul.f32 %v5656_v29, %v2161_v60  ;;  %v6926_v4 = vadd.f32 %v2175_v9, %v2167_v40  ;;  %v2213_v42 = vpack.c.bf16 %v6919_v17, %v6919_v17 }
 0x3cb   :  { %2190 = vst [vmem:[#allocation10 + $0x12] sm:$0x1] %v6921_v55  ;;  %v2170_v8 = vmul.f32 %v5658_v45, %v2162_v41  ;;  %v6929_v11 = vadd.f32 %v2176_v34, %v2168_v46  ;;  %v2214_v43 = vpack.c.bf16 %v6921_v55, %v6921_v55  ;;  %v2179_v26 = vmul.f32 %v5674_v33, %v6751_v36  ;;  %v6964_v33 = vld [vmem:[#allocation9] ss:$12 sps:$4 sm:$0xff]   ;;  %v6967_v46 = vld [vmem:[#allocation9 + $0x8] ss:$12 sps:$4 sm:$0xff]  }
 0x3cc   :  { %v2171_v1 = vmul.f32 %v5660_v12, %v2163_v62  ;;  %v6936_v37 = vadd.f32 %v2177_v48, %v2169_v30  ;;  %2191 = vst [vmem:[#allocation10 + $0x1a] sm:$0x1] %v6926_v4  ;;  %v2215_v31 = vpack.c.bf16 %v6926_v4, %v6926_v4  ;;  %v2229_v10 = vunpack.c.l.b16 %v2213_v42  ;;  %v6970_v41 = vld [vmem:[#allocation9 + $0x1c] ss:$12 sps:$4 sm:$0xff]   ;;  %v6977_v30 = vld [vmem:[#allocation9 + $0x18] ss:$12 sps:$4 sm:$0xff]  }
 0x3cd   :  { %v6941_v39 = vadd.f32 %v2178_v35, %v2170_v8  ;;  %2192 = vst [vmem:[#allocation10 + $0x22] sm:$0x1] %v6929_v11  ;;  %v2216_v57 = vpack.c.bf16 %v6929_v11, %v6929_v11  ;;  %v2230_v5 = vunpack.c.l.b16 %v2214_v43  ;;  %v2228_v7 = vunpack.c.l.b16 %v2212_v58  ;;  %v7012_v43 = vld [vmem:[#allocation2 + $0x3] ss:$8 sm:$0x7] }
 0x3ce   :  { %v6946_v47 = vadd.f32 %v2179_v26, %v2171_v1  ;;  %2193 = vst [vmem:[#allocation10 + $0x2a] sm:$0x1] %v6936_v37  ;;  %v2217_v36 = vpack.c.bf16 %v6936_v37, %v6936_v37  ;;  %v2231_v29 = vunpack.c.l.b16 %v2215_v31  ;;  %v2236_v49 = vrot.slane %v2229_v10, 7  ;;  %v7014_v1 = vld [vmem:[#allocation2 + $0x1b] ss:$8 sm:$0x7] }
 0x3cf   :  { %2194 = vst [vmem:[#allocation10 + $0x32] sm:$0x1] %v6941_v39  ;;  %v2218_v45 = vpack.c.bf16 %v6941_v39, %v6941_v39  ;;  %v2232_v12 = vunpack.c.l.b16 %v2216_v57  ;;  %v2238_v38 = vrot.slane %v2230_v5, 6  ;;  %v7719_v48 = vmov 0.0  }
 0x3d0   :  { %2195 = vst [vmem:[#allocation10 + $0x3a] sm:$0x1] %v6946_v47  ;;  %v2219_v15 = vpack.c.bf16 %v6946_v47, %v6946_v47  ;;  %v2233_v25 = vunpack.c.l.b16 %v2217_v36  ;;  %v2240_v32 = vrot.slane %v2231_v29, 5  ;;  %v2237_v14 = vsel %vm1174_vm1, %v2236_v49, %v2228_v7  ;;  %v7018_v5 = vld [vmem:[#allocation2 + $0x33] ss:$8 sm:$0x7] }
 0x3d1   :  { %v2234_v13 = vunpack.c.l.b16 %v2218_v45  ;;  %v2239_v63 = vsel %vm1177_vm2, %v2238_v38, %v2237_v14  ;;  %v2242_v58 = vrot.slane %v2232_v12, 4  ;;  %v7720_v62 = vmov 0   ;;  %v7020_v36 = vld [vmem:[#allocation2 + $0x4b] ss:$8 sm:$0x7] }
 0x3d2   :  { %v2235_v19 = vunpack.c.l.b16 %v2219_v15  ;;  %v2241_v18 = vsel %vm1180_vm3, %v2240_v32, %v2239_v63  ;;  %v2244_v6 = vrot.slane %v2233_v25, 3  ;;  %v7024_v45 = vld [vmem:[#allocation2 + $0x63] ss:$8 sm:$0x7] }
 0x3d3   :  { %v2243_v27 = vsel %vm1183_vm4, %v2242_v58, %v2241_v18  ;;  %v2246_v44 = vrot.slane %v2234_v13, 2  ;;  %v7026_v12 = vld [vmem:[#allocation2 + $0x7b] ss:$8 sm:$0x7] }
 0x3d4   :  { %v2245_v9 = vsel %vm1186_vm5, %v2244_v6, %v2243_v27  ;;  %v2248_v0 = vrot.slane %v2235_v19, 1  ;;  %v7030_v32 = vld [vmem:[#allocation2 + $0x93] ss:$8 sm:$0x7] }
 0x3d5   :  { %v2247_v60 = vsel %vm1189_vm6, %v2246_v44, %v2245_v9  ;;  %v7034_v58 = vld [vmem:[#allocation2 + $0xab] ss:$8 sm:$0x7] }
 0x3d6   :  { %v2249_v40 = vsel %vm1192_vm7, %v2248_v0, %v2247_v60 }
 0x3d7   :  { %v2250_v34 = vpack.c.b16 %v2249_v40, %v2249_v40 }
 0x3d9   :  { %2285 = vmatmul.mubr.bf16.vlgmr.msra.gmra.mrb[28].mxu0 %v2250_v34  ;;  %5275 = vmatmul.mubr.bf16.vlgmr.msra.gmra.mrb[20].mxu1 %v2250_v34 }
 0x3da   :  { %2781 = vmatpush1.bf16.msra.mxu0 %v6964_v33  ;;  %5279 = vmatpush3.bf16.msra.mxu1 %v6967_v46 }
 0x3db   :  { %2782 = vmatprep.subr.bf16.mxu0 %v6970_v41  ;;  %5280 = vmatprep.subr.bf16.mxu1 %v7719_v48 }
 0x3dc   :  { %2812 = vmatprep.mubr.bf16.mxu0 %v7720_v62  ;;  %5294 = vmatprep.mubr.msk.bf16.mxu1 %vm6253_vm0, %v7719_v48 }
 0x3de   :  { %2783 = vmatpush1.bf16.msra.mxu0 %v6977_v30  ;;  %5281 = vmatpush3.bf16.msra.mxu1 %v6777_v50  ;;  %v7721_v50 = vld [vmem:[#allocation14_spill] sm:$0xff] }
 0x3df   :  { %2784 = vmatprep.subr.bf16.mxu0 %v6780_v51  ;;  %5282 = vmatprep.subr.bf16.mxu1 %v7719_v48  ;;  %v7722_v51 = vld [vmem:[#allocation15_spill] sm:$0xff] }
 0x3e2   :  { %2785 = vmatpush1.bf16.msra.mxu0 %v6784_v3  ;;  %5283 = vmatpush3.bf16.msra.mxu1 %v6787_v23  ;;  %v7723_v3 = vld [vmem:[#allocation16_spill] sm:$0xff]  ;;  %v7724_v23 = vld [vmem:[#allocation17_spill] sm:$0xff] }
 0x3e3   :  { %2786 = vmatprep.subr.bf16.mxu0 %v6790_v21  ;;  %5284 = vmatprep.subr.bf16.mxu1 %v7719_v48  ;;  %v7005_v21 = vld [vmem:[#allocation9 + $0x4] ss:$12 sps:$4 sm:$0xff]  }
 0x3e6   :  { %2787 = vmatpush1.bf16.msra.mxu0 %v6794_v16  ;;  %5285 = vmatpush3.bf16.msra.mxu1 %v6797_v52 }
 0x3e7   :  { %2788 = vmatprep.subr.bf16.mxu0 %v6800_v22  ;;  %5286 = vmatprep.subr.bf16.mxu1 %v7719_v48 }
 0x3ea   :  { %2789 = vmatpush1.bf16.msra.mxu0 %v6804_v24  ;;  %5287 = vmatpush3.bf16.msra.mxu1 %v6807_v53 }
 0x3eb   :  { %2790 = vmatprep.subr.bf16.mxu0 %v6810_v54  ;;  %5288 = vmatprep.subr.bf16.mxu1 %v7719_v48 }
 0x3ee   :  { %2791 = vmatpush1.bf16.msra.mxu0 %v6814_v2  ;;  %5289 = vmatpush3.bf16.msra.mxu1 %v6817_v56 }
 0x3ef   :  { %2792 = vmatprep.subr.bf16.mxu0 %v6820_v59  ;;  %5290 = vmatprep.subr.bf16.mxu1 %v7719_v48 }
 0x3f2   :  { %2793 = vmatpush1.bf16.msra.mxu0 %v6824_v61  ;;  %5291 = vmatpush3.bf16.msra.mxu1 %v7721_v50 }
 0x3f3   :  { %2794 = vmatprep.subr.bf16.mxu0 %v7722_v51  ;;  %5292 = vmatprep.subr.bf16.mxu1 %v7719_v48 }
 0x3f6   :  { %2795 = vmatpush1.bf16.msra.mxu0 %v7723_v3  ;;  %5293 = vmatpush3.bf16.msra.mxu1 %v7724_v23 }
 0x3f7   :  { %3308 = vmatprep.subr.bf16.mxu0 %v7005_v21  ;;  %5298 = vmatprep.subr.bf16.mxu1 %v7719_v48 }
 0x4ac   :  { %v2286_v16 = vpop.f32.mrb[28].mxu0  ;;  %v2327_v52 = vpop.f32.mrb[20].mxu1 }
 0x4ad   :  { %v2334_v22 = vcombine.high %v2286_v16, %v2286_v16  ;;  %v2341_v24 = vrot.slane %v2286_v16, %v6485_v20  ;;  %v2288_v53 = vpop.f32.mrb[29].mxu0  ;;  %v5276_v54 = vpop.f32.mrb[21].mxu1 }
 0x4ae   :  { %v2290_v2 = vpop.f32.mrb[30].mxu0  ;;  %v2330_v56 = vpop.f32.mrb[22].mxu1  ;;  %v2479_v29 = vrot.slane %v2288_v53, %v6485_v20  ;;  %v2472_v63 = vcombine.high %v2288_v53, %v2288_v53  ;;  %v2456_v54 = vrot.slane %v7014_v1, 1 }
 0x4af   :  { %v2348_v59 = vrot.slane %v2334_v22, %v6485_v20  ;;  %v2349_v61 = vcombine.high %v2341_v24, %v2341_v24  ;;  %v2357_v35 = vrot.slane %v2341_v24, %v6485_v20  ;;  %v2291_v8 = vpop.f32.mrb[31].mxu0  ;;  %v5277_v42 = vpop.f32.mrb[23].mxu1  ;;  %v2455_v24 = vrot.slane %v7012_v43, 1 }
 0x4b0   :  { %v2487_v50 = vcombine.high %v2479_v29, %v2479_v29  ;;  %v2495_v3 = vrot.slane %v2479_v29, %v6485_v20  ;;  %v2486_v16 = vrot.slane %v2472_v63, %v6485_v20  ;;  %v2457_v8 = vrot.slane %v7018_v5, 1 }
 0x4b1   :  { %v2350_v26 = vcombine.high %v2348_v59, %v2348_v59  ;;  %v2364_v31 = vrot.slane %v2348_v59, %v6485_v20  ;;  %v2371_v57 = vrot.slane %v2349_v61, %v6485_v20  ;;  %v2379_v10 = vcombine.high %v2357_v35, %v2357_v35  ;;  %v7725_v59 = vld [vmem:[#allocation18_spill] sm:$0xff] }
 0x4b2   :  { %v2391_v7 = vadd.f32 %v2357_v35, %v7012_v43  ;;  %v2509_v53 = vrot.slane %v2487_v50, %v6485_v20  ;;  %v2529_v2 = vadd.f32 %v2495_v3, %v2455_v24  ;;  %v2488_v56 = vcombine.high %v2486_v16, %v2486_v16 }
 0x4b3   :  { %v2378_v49 = vrot.slane %v2350_v26, %v6485_v20  ;;  %v2380_v38 = vcombine.high %v2364_v31, %v2364_v31  ;;  %v2381_v15 = vcombine.high %v2371_v57, %v2371_v57  ;;  %v2392_v25 = vadd.f32 %v2371_v57, %v7014_v1 }
 0x4b4   :  { %v2393_v13 = vadd.f32 %v2379_v10, %v7018_v5  ;;  %v2395_v14 = vadd.f32 %v2364_v31, %v7024_v45  ;;  %v5010_v19 = vmul.f32 -1.442695, %v2391_v7  ;;  %v2585_v61 = vadd.f32 %v7725_v59, %v2327_v52 }
 0x4b5   :  { %v2382_v18 = vcombine.high %v2378_v49, %v2378_v49  ;;  %v2394_v6 = vadd.f32 %v2381_v15, %v7020_v36  ;;  %v2396_v27 = vadd.f32 %v2378_v49, %v7026_v12  ;;  %v2397_v44 = vadd.f32 %v2380_v38, %v7030_v32 }
 0x4b6   :  { %5675 = vpow2.f32 %v5010_v19  ;;  %v5011_v9 = vmul.f32 -1.442695, %v2392_v25  ;;  %v5012_v0 = vmul.f32 -1.442695, %v2393_v13  ;;  %v5014_v34 = vmul.f32 -1.442695, %v2395_v14 }
 0x4b7   :  { %v2398_v60 = vadd.f32 %v2382_v18, %v7034_v58  ;;  %v5013_v40 = vmul.f32 -1.442695, %v2394_v6  ;;  %v5015_v51 = vmul.f32 -1.442695, %v2396_v27  ;;  %v5016_v23 = vmul.f32 -1.442695, %v2397_v44 }
 0x4b8   :  { %5677 = vpow2.f32 %v5011_v9  ;;  %v2530_v35 = vadd.f32 %v2509_v53, %v2456_v54  ;;  %v2458_v42 = vrot.slane %v7020_v36, 1  ;;  %v2502_v31 = vrot.slane %v2486_v16, %v6485_v20 }
 0x4b9   :  { %5679 = vpow2.f32 %v5012_v0  ;;  %v5017_v22 = vmul.f32 -1.442695, %v2398_v60  ;;  %v2517_v57 = vcombine.high %v2495_v3, %v2495_v3  ;;  %v5018_v10 = vmul.f32 -1.442695, %v2529_v2 }
 0x4ba   :  { %5681 = vpow2.f32 %v5013_v40  ;;  %v5019_v7 = vmul.f32 -1.442695, %v2530_v35  ;;  %v2459_v49 = vrot.slane %v7024_v45, 1  ;;  %v2516_v38 = vrot.slane %v2488_v56, %v6485_v20 }
 0x4bb   :  { %5683 = vpow2.f32 %v5014_v34  ;;  %v2519_v15 = vcombine.high %v2509_v53, %v2509_v53  ;;  %v2587_v13 = vcombine.high %v2585_v61, %v2585_v61  ;;  %v2460_v52 = vrot.slane %v7026_v12, 1 }
 0x4bc   :  { %5685 = vpow2.f32 %v5015_v51  ;;  %v2461_v14 = vrot.slane %v7030_v32, 1  ;;  %v2594_v18 = vrot.slane %v2585_v61, %v6485_v20  ;;  %v2462_v6 = vrot.slane %v7034_v58, 1 }
 0x4bd   :  { %5687 = vpow2.f32 %v5016_v23  ;;  %v2518_v9 = vcombine.high %v2502_v31, %v2502_v31  ;;  %v2531_v0 = vadd.f32 %v2517_v57, %v2457_v8  ;;  %v2520_v34 = vcombine.high %v2516_v38, %v2516_v38 }
 0x4be   :  { %5689 = vpow2.f32 %v5017_v22  ;;  %v2532_v50 = vadd.f32 %v2519_v15, %v2458_v42  ;;  %v2601_v23 = vrot.slane %v2587_v13, %v6485_v20  ;;  %v2533_v16 = vadd.f32 %v2502_v31, %v2459_v49 }
 0x4bf   :  { %5691 = vpow2.f32 %v5018_v10  ;;  %v2602_v53 = vcombine.high %v2594_v18, %v2594_v18  ;;  %v2534_v54 = vadd.f32 %v2516_v38, %v2460_v52  ;;  %v2535_v59 = vadd.f32 %v2518_v9, %v2461_v14 }
 0x4c0   :  { %v5676_v26 = vpop.eup %5675  ;;  %v5020_v61 = vmul.f32 -1.442695, %v2531_v0  ;;  %v2536_v8 = vadd.f32 %v2520_v34, %v2462_v6  ;;  %v5021_v42 = vmul.f32 -1.442695, %v2532_v50  ;;  %v2603_v57 = vcombine.high %v2601_v23, %v2601_v23 }
 0x4c1   :  { %v2423_v29 = vadd.f32 1.0, %v5676_v26  ;;  %v5022_v26 = vmul.f32 -1.442695, %v2533_v16  ;;  %v2610_v31 = vrot.slane %v2594_v18, %v6485_v20  ;;  %v5023_v10 = vmul.f32 -1.442695, %v2534_v54 }
 0x4c2   :  { %v5678_v25 = vpop.eup %5677  ;;  %v5024_v49 = vmul.f32 -1.442695, %v2535_v59  ;;  %v2652_v15 = vrot.slane %v7012_v43, 2  ;;  %v5025_v13 = vmul.f32 -1.442695, %v2536_v8  ;;  %v2654_v14 = vrot.slane %v7018_v5, 2 }
 0x4c3   :  { %v5680_v19 = vpop.eup %5679  ;;  %v2424_v63 = vadd.f32 1.0, %v5678_v25  ;;  %5693 = vrcp.f32 %v2423_v29  ;;  %v2624_v29 = vrot.slane %v2602_v53, %v6485_v20  ;;  %v2653_v25 = vrot.slane %v7014_v1, 2 }
 0x4c4   :  { %v5682_v27 = vpop.eup %5681  ;;  %v2425_v44 = vadd.f32 1.0, %v5680_v19  ;;  %5695 = vpow2.f32 %v5019_v7  ;;  %v2617_v19 = vrot.slane %v2601_v23, %v6485_v20  ;;  %v2631_v6 = vrot.slane %v2603_v57, %v6485_v20 }
 0x4c5   :  { %v5684_v60 = vpop.eup %5683  ;;  %v2426_v40 = vadd.f32 1.0, %v5682_v27  ;;  %5697 = vrcp.f32 %v2424_v63  ;;  %v2632_v27 = vcombine.high %v2610_v31, %v2610_v31  ;;  %v2634_v0 = vcombine.high %v2624_v29, %v2624_v29 }
 0x4c6   :  { %v5686_v51 = vpop.eup %5685  ;;  %v2427_v3 = vadd.f32 1.0, %v5684_v60  ;;  %5699 = vrcp.f32 %v2425_v44  ;;  %v2656_v5 = vrot.slane %v7024_v45, 2  ;;  %v2658_v45 = vrot.slane %v7030_v32, 2 }
 0x4c7   :  { %v5688_v22 = vpop.eup %5687  ;;  %v2428_v24 = vadd.f32 1.0, %v5686_v51  ;;  %5701 = vrcp.f32 %v2426_v40  ;;  %v2655_v40 = vrot.slane %v7020_v36, 2  ;;  %v2657_v51 = vrot.slane %v7026_v12, 2 }
 0x4c8   :  { %v5690_v2 = vpop.eup %5689  ;;  %v2429_v56 = vadd.f32 1.0, %v5688_v22  ;;  %5703 = vrcp.f32 %v2427_v3  ;;  %v2633_v22 = vcombine.high %v2617_v19, %v2617_v19  ;;  %v2659_v8 = vrot.slane %v7034_v58, 2 }
 0x4c9   :  { %v2430_v35 = vadd.f32 1.0, %v5690_v2  ;;  %5705 = vrcp.f32 %v2428_v24  ;;  %v5692_v7 = vpop.eup %5691  ;;  %v2635_v2 = vcombine.high %v2631_v6, %v2631_v6 }
 0x4ca   :  { %5707 = vrcp.f32 %v2429_v56  ;;  %v2561_v44 = vadd.f32 1.0, %v5692_v7 }
 0x4cb   :  { %5709 = vrcp.f32 %v2430_v35 }
 0x4cc   :  { %5711 = vpow2.f32 %v5020_v61 }
 0x4cd   :  { %v5694_v38 = vpop.eup %5693  ;;  %5713 = vpow2.f32 %v5021_v42 }
 0x4ce   :  { %v5696_v52 = vpop.eup %5695  ;;  %v2644_v63 = vmul.f32 %v5694_v38, %v2610_v31  ;;  %5715 = vpow2.f32 %v5022_v26 }
 0x4cf   :  { %v5698_v18 = vpop.eup %5697  ;;  %5717 = vpow2.f32 %v5023_v10  ;;  %v2562_v10 = vadd.f32 1.0, %v5696_v52 }
 0x4d0   :  { %v5700_v9 = vpop.eup %5699  ;;  %v2645_v43 = vmul.f32 %v5698_v18, %v2624_v29  ;;  %v2668_v60 = vadd.f32 %v2652_v15, %v2644_v63  ;;  %5719 = vpow2.f32 %v5024_v49 }
 0x4d1   :  { %v5702_v1 = vpop.eup %5701  ;;  %v2646_v34 = vmul.f32 %v5700_v9, %v2632_v27  ;;  %5721 = vpow2.f32 %v5025_v13 }
 0x4d2   :  { %v5704_v50 = vpop.eup %5703  ;;  %v2647_v3 = vmul.f32 %v5702_v1, %v2634_v0  ;;  %v2669_v23 = vadd.f32 %v2653_v25, %v2645_v43  ;;  %5723 = vtanh.f32 %v2668_v60 }
 0x4d3   :  { %v5706_v16 = vpop.eup %5705  ;;  %v2648_v24 = vmul.f32 %v5704_v50, %v2617_v19  ;;  %v2670_v53 = vadd.f32 %v2654_v14, %v2646_v34  ;;  %5725 = vrcp.f32 %v2561_v44 }
 0x4d4   :  { %v5708_v54 = vpop.eup %5707  ;;  %v2649_v56 = vmul.f32 %v5706_v16, %v2631_v6  ;;  %v2671_v59 = vadd.f32 %v2655_v40, %v2647_v3  ;;  %5727 = vtanh.f32 %v2669_v23 }
 0x4d5   :  { %v5710_v36 = vpop.eup %5709  ;;  %v2650_v61 = vmul.f32 %v5708_v54, %v2633_v22  ;;  %v2672_v35 = vadd.f32 %v2656_v5, %v2648_v24  ;;  %5729 = vtanh.f32 %v2670_v53 }
 0x4d6   :  { %v5712_v12 = vpop.eup %5711  ;;  %v2651_v42 = vmul.f32 %v5710_v36, %v2635_v2  ;;  %v2673_v26 = vadd.f32 %v2657_v51, %v2649_v56  ;;  %5731 = vtanh.f32 %v2671_v59 }
 0x4d7   :  { %v5714_v57 = vpop.eup %5713  ;;  %v2674_v31 = vadd.f32 %v2658_v45, %v2650_v61  ;;  %5733 = vtanh.f32 %v2672_v35  ;;  %v2563_v49 = vadd.f32 1.0, %v5712_v12 }
 0x4d8   :  { %v5716_v7 = vpop.eup %5715  ;;  %v2675_v29 = vadd.f32 %v2659_v8, %v2651_v42  ;;  %5735 = vtanh.f32 %v2673_v26  ;;  %v2564_v32 = vadd.f32 1.0, %v5714_v57 }
 0x4d9   :  { %v5718_v38 = vpop.eup %5717  ;;  %5737 = vtanh.f32 %v2674_v31  ;;  %v2565_v25 = vadd.f32 1.0, %v5716_v7 }
 0x4da   :  { %v5720_v15 = vpop.eup %5719  ;;  %5739 = vtanh.f32 %v2675_v29  ;;  %v2566_v14 = vadd.f32 1.0, %v5718_v38 }
 0x4db   :  { %v5722_v13 = vpop.eup %5721  ;;  %5741 = vrcp.f32 %v2562_v10  ;;  %v2567_v19 = vadd.f32 1.0, %v5720_v15 }
 0x4dc   :  { %v5724_v58 = vpop.eup %5723  ;;  %5743 = vrcp.f32 %v2563_v49  ;;  %v2568_v18 = vadd.f32 1.0, %v5722_v13 }
 0x4dd   :  { %v5726_v63 = vpop.eup %5725  ;;  %5745 = vrcp.f32 %v2564_v32 }
 0x4de   :  { %v5728_v52 = vpop.eup %5727  ;;  %5747 = vrcp.f32 %v2565_v25  ;;  %v2684_v6 = vsub.f32 1.0, %v5726_v63  ;;  %v2700_v0 = vmul.f32 %v5726_v63, %v6910_v28 }
 0x4df   :  { %v5730_v27 = vpop.eup %5729  ;;  %5749 = vrcp.f32 %v2566_v14 }
 0x4e0   :  { %v5732_v44 = vpop.eup %5731  ;;  %5751 = vrcp.f32 %v2567_v19  ;;  %v2692_v9 = vmul.f32 %v5724_v58, %v2684_v6 }
 0x4e1   :  { %v5734_v43 = vpop.eup %5733  ;;  %5753 = vrcp.f32 %v2568_v18 }
 0x4e2   :  { %v5736_v60 = vpop.eup %5735  ;;  %v7069_v1 = vadd.f32 %v2700_v0, %v2692_v9 }
 0x4e3   :  { %v5738_v40 = vpop.eup %5737 }
 0x4e4   :  { %v5740_v5 = vpop.eup %5739  ;;  %2716 = vst [vmem:[#allocation10 + $0x3] sm:$0x1] %v7069_v1  ;;  %v2740_v28 = vpack.c.bf16 %v7069_v1, %v7069_v1 }
 0x4e5   :  { %v5742_v34 = vpop.eup %5741 }
 0x4e6   :  { %v5744_v50 = vpop.eup %5743  ;;  %v2685_v51 = vsub.f32 1.0, %v5742_v34  ;;  %v2701_v53 = vmul.f32 %v5742_v34, %v6919_v17  ;;  %v2756_v63 = vunpack.c.l.b16 %v2740_v28 }
 0x4e7   :  { %v5746_v3 = vpop.eup %5745  ;;  %v2686_v23 = vsub.f32 1.0, %v5744_v50  ;;  %v2702_v59 = vmul.f32 %v5744_v50, %v6921_v55 }
 0x4e8   :  { %v5748_v16 = vpop.eup %5747  ;;  %v2687_v22 = vsub.f32 1.0, %v5746_v3  ;;  %v2693_v24 = vmul.f32 %v5728_v52, %v2685_v51  ;;  %v2703_v36 = vmul.f32 %v5746_v3, %v6926_v4 }
 0x4e9   :  { %v5750_v54 = vpop.eup %5749  ;;  %v2688_v2 = vsub.f32 1.0, %v5748_v16  ;;  %v2694_v56 = vmul.f32 %v5730_v27, %v2686_v23  ;;  %v2704_v12 = vmul.f32 %v5748_v16, %v6929_v11 }
 0x4ea   :  { %v5752_v45 = vpop.eup %5751  ;;  %v2689_v61 = vsub.f32 1.0, %v5750_v54  ;;  %v2695_v35 = vmul.f32 %v5732_v44, %v2687_v22  ;;  %v7078_v8 = vadd.f32 %v2701_v53, %v2693_v24  ;;  %v2705_v31 = vmul.f32 %v5750_v54, %v6936_v37 }
 0x4eb   :  { %v5754_v42 = vpop.eup %5753  ;;  %v2696_v26 = vmul.f32 %v5734_v43, %v2688_v2  ;;  %v7080_v17 = vadd.f32 %v2702_v59, %v2694_v56  ;;  %v2690_v57 = vsub.f32 1.0, %v5752_v45  ;;  %v2706_v4 = vmul.f32 %v5752_v45, %v6941_v39  ;;  %v7131_v2 = vld [vmem:[#allocation9 + $0x20] ss:$12 sps:$4 sm:$0xff]   ;;  %v7151_v59 = vld [vmem:[#allocation9 + $0x50] ss:$12 sps:$4 sm:$0xff]  }
 0x4ec   :  { %2717 = vst [vmem:[#allocation10 + $0xb] sm:$0x1] %v7078_v8  ;;  %v2691_v10 = vsub.f32 1.0, %v5754_v42  ;;  %v2697_v55 = vmul.f32 %v5736_v60, %v2689_v61  ;;  %v7085_v7 = vadd.f32 %v2703_v36, %v2695_v35  ;;  %v2741_v49 = vpack.c.bf16 %v7078_v8, %v7078_v8  ;;  %v7134_v56 = vld [vmem:[#allocation9 + $0x34] ss:$12 sps:$4 sm:$0xff]  }
 0x4ed   :  { %2718 = vst [vmem:[#allocation10 + $0x13] sm:$0x1] %v7080_v17  ;;  %v2698_v11 = vmul.f32 %v5738_v40, %v2690_v57  ;;  %v7088_v29 = vadd.f32 %v2704_v12, %v2696_v26  ;;  %v2742_v38 = vpack.c.bf16 %v7080_v17, %v7080_v17  ;;  %v2707_v32 = vmul.f32 %v5754_v42, %v6946_v47  ;;  %v7154_v36 = vld [vmem:[#allocation9 + $0x64] ss:$12 sps:$4 sm:$0xff]   ;;  %v7158_v45 = vld [vmem:[#allocation9 + $0x60] ss:$12 sps:$4 sm:$0xff]  }
 0x4ee   :  { %v2699_v37 = vmul.f32 %v5740_v5, %v2691_v10  ;;  %v7095_v15 = vadd.f32 %v2705_v31, %v2697_v55  ;;  %2719 = vst [vmem:[#allocation10 + $0x1b] sm:$0x1] %v7085_v7  ;;  %v2743_v39 = vpack.c.bf16 %v7085_v7, %v7085_v7  ;;  %v2757_v14 = vunpack.c.l.b16 %v2741_v49  ;;  %v7161_v61 = vld [vmem:[#allocation9 + $0x68] ss:$12 sps:$4 sm:$0xff]   ;;  %v7168_v12 = vld [vmem:[#allocation9 + $0x78] ss:$12 sps:$4 sm:$0xff]  }
 0x4ef   :  { %v7100_v25 = vadd.f32 %v2706_v4, %v2698_v11  ;;  %2720 = vst [vmem:[#allocation10 + $0x23] sm:$0x1] %v7088_v29  ;;  %v2744_v13 = vpack.c.bf16 %v7088_v29, %v7088_v29  ;;  %v2758_v58 = vunpack.c.l.b16 %v2742_v38  ;;  %v7164_v35 = vld [vmem:[#allocation9 + $0x7c] ss:$12 sps:$4 sm:$0xff]   ;;  %v7171_v42 = vld [vmem:[#allocation9 + $0x80] ss:$12 sps:$4 sm:$0xff]  }
 0x4f0   :  { %v7105_v19 = vadd.f32 %v2707_v32, %v2699_v37  ;;  %2721 = vst [vmem:[#allocation10 + $0x2b] sm:$0x1] %v7095_v15  ;;  %v2745_v47 = vpack.c.bf16 %v7095_v15, %v7095_v15  ;;  %v2759_v18 = vunpack.c.l.b16 %v2743_v39  ;;  %v2764_v27 = vrot.slane %v2757_v14, 7  ;;  %v7174_v26 = vld [vmem:[#allocation9 + $0x94] ss:$12 sps:$4 sm:$0xff]  }
 0x4f1   :  { %2722 = vst [vmem:[#allocation10 + $0x33] sm:$0x1] %v7100_v25  ;;  %v2746_v52 = vpack.c.bf16 %v7100_v25, %v7100_v25  ;;  %v2760_v6 = vunpack.c.l.b16 %v2744_v13  ;;  %v2766_v44 = vrot.slane %v2758_v58, 6  ;;  %7726 = vst [vmem:[#allocation14_spill] sm:$0xff] %v7174_v26  ;;  %v7178_v57 = vld [vmem:[#allocation9 + $0x90] ss:$12 sps:$4 sm:$0xff]  }
 0x4f2   :  { %2723 = vst [vmem:[#allocation10 + $0x3b] sm:$0x1] %v7105_v19  ;;  %v2747_v9 = vpack.c.bf16 %v7105_v19, %v7105_v19  ;;  %v2761_v0 = vunpack.c.l.b16 %v2745_v47  ;;  %v2768_v43 = vrot.slane %v2759_v18, 5  ;;  %v2765_v40 = vsel %vm1174_vm1, %v2764_v27, %v2756_v63  ;;  %7727 = vst [vmem:[#allocation15_spill] sm:$0xff] %v7178_v57  ;;  %v7181_v31 = vld [vmem:[#allocation9 + $0x98] ss:$12 sps:$4 sm:$0xff]  }
 0x4f3   :  { %v2762_v60 = vunpack.c.l.b16 %v2746_v52  ;;  %v2767_v34 = vsel %vm1177_vm2, %v2766_v44, %v2765_v40  ;;  %v2770_v50 = vrot.slane %v2760_v6, 4  ;;  %7728 = vst [vmem:[#allocation16_spill] sm:$0xff] %v7181_v31  ;;  %v7184_v10 = vld [vmem:[#allocation9 + $0xac] ss:$12 sps:$4 sm:$0xff]   ;;  %v7188_v55 = vld [vmem:[#allocation9 + $0xa8] ss:$12 sps:$4 sm:$0xff]  }
 0x4f4   :  { %v2763_v5 = vunpack.c.l.b16 %v2747_v9  ;;  %v2769_v51 = vsel %vm1180_vm3, %v2768_v43, %v2767_v34  ;;  %v2772_v3 = vrot.slane %v2761_v0, 3  ;;  %7729 = vst [vmem:[#allocation17_spill] sm:$0xff] %v7184_v10  ;;  %7730 = vst [vmem:[#allocation18_spill] sm:$0xff] %v7188_v55  ;;  %v7191_v4 = vld [vmem:[#allocation9 + $0xb0] ss:$12 sps:$4 sm:$0xff]  }
 0x4f5   :  { %v2771_v23 = vsel %vm1183_vm4, %v2770_v50, %v2769_v51  ;;  %v2774_v16 = vrot.slane %v2762_v60, 2  ;;  %7731 = vst [vmem:[#allocation19_spill] sm:$0xff] %v7191_v4  ;;  %v7203_v6 = vld [vmem:[#allocation2 + $0x1c] ss:$8 sm:$0x7] }
 0x4f6   :  { %v2773_v22 = vsel %vm1186_vm5, %v2772_v3, %v2771_v23  ;;  %v2776_v24 = vrot.slane %v2763_v5, 1  ;;  %v7207_v43 = vld [vmem:[#allocation2 + $0x34] ss:$8 sm:$0x7] }
 0x4f7   :  { %v2775_v53 = vsel %vm1189_vm6, %v2774_v16, %v2773_v22  ;;  %v7209_v60 = vld [vmem:[#allocation2 + $0x4c] ss:$8 sm:$0x7] }
 0x4f8   :  { %v2777_v28 = vsel %vm1192_vm7, %v2776_v24, %v2775_v53  ;;  %v7213_v34 = vld [vmem:[#allocation2 + $0x64] ss:$8 sm:$0x7] }
 0x4f9   :  { %v2778_v54 = vpack.c.b16 %v2777_v28, %v2777_v28  ;;  %v7215_v50 = vld [vmem:[#allocation2 + $0x7c] ss:$8 sm:$0x7] }
 0x4fa   :  { %v7219_v22 = vld [vmem:[#allocation2 + $0x94] ss:$8 sm:$0x7] }
 0x4fb   :  { %2813 = vmatmul.mubr.bf16.vlgmr.msra.gmra.mrb[32].mxu0 %v2778_v54  ;;  %5295 = vmatmul.mubr.bf16.vlgmr.msra.gmra.mrb[24].mxu1 %v2778_v54 }
 0x4fc   :  { %3309 = vmatpush1.bf16.msra.mxu0 %v6964_v33  ;;  %5299 = vmatpush3.bf16.msra.mxu1 %v6967_v46  ;;  %v7138_v33 = vld [vmem:[#allocation9 + $0x30] ss:$12 sps:$4 sm:$0xff]   ;;  %v7141_v46 = vld [vmem:[#allocation9 + $0x38] ss:$12 sps:$4 sm:$0xff]  }
 0x4fd   :  { %3310 = vmatprep.subr.bf16.mxu0 %v6970_v41  ;;  %5300 = vmatprep.subr.bf16.mxu1 %v7719_v48  ;;  %v7144_v41 = vld [vmem:[#allocation9 + $0x4c] ss:$12 sps:$4 sm:$0xff]  }
 0x4fe   :  { %3340 = vmatprep.mubr.bf16.mxu0 %v7720_v62  ;;  %5314 = vmatprep.mubr.msk.bf16.mxu1 %vm6253_vm0, %v7719_v48 }
 0x500   :  { %3311 = vmatpush1.bf16.msra.mxu0 %v6977_v30  ;;  %5301 = vmatpush3.bf16.msra.mxu1 %v7131_v2  ;;  %v7148_v30 = vld [vmem:[#allocation9 + $0x48] ss:$12 sps:$4 sm:$0xff]  }
 0x501   :  { %3312 = vmatprep.subr.bf16.mxu0 %v7134_v56  ;;  %5302 = vmatprep.subr.bf16.mxu1 %v7719_v48 }
 0x504   :  { %3313 = vmatpush1.bf16.msra.mxu0 %v7138_v33  ;;  %5303 = vmatpush3.bf16.msra.mxu1 %v7141_v46 }
 0x505   :  { %3314 = vmatprep.subr.bf16.mxu0 %v7144_v41  ;;  %5304 = vmatprep.subr.bf16.mxu1 %v7719_v48 }
 0x508   :  { %3315 = vmatpush1.bf16.msra.mxu0 %v7148_v30  ;;  %5305 = vmatpush3.bf16.msra.mxu1 %v7151_v59 }
 0x509   :  { %3316 = vmatprep.subr.bf16.mxu0 %v7154_v36  ;;  %5306 = vmatprep.subr.bf16.mxu1 %v7719_v48 }
 0x50c   :  { %3317 = vmatpush1.bf16.msra.mxu0 %v7158_v45  ;;  %5307 = vmatpush3.bf16.msra.mxu1 %v7161_v61 }
 0x50d   :  { %3318 = vmatprep.subr.bf16.mxu0 %v7164_v35  ;;  %5308 = vmatprep.subr.bf16.mxu1 %v7719_v48 }
 0x510   :  { %3319 = vmatpush1.bf16.msra.mxu0 %v7168_v12  ;;  %5309 = vmatpush3.bf16.msra.mxu1 %v7171_v42 }
 0x511   :  { %3320 = vmatprep.subr.bf16.mxu0 %v7174_v26  ;;  %5310 = vmatprep.subr.bf16.mxu1 %v7719_v48 }
 0x514   :  { %3321 = vmatpush1.bf16.msra.mxu0 %v7178_v57  ;;  %5311 = vmatpush3.bf16.msra.mxu1 %v7181_v31 }
 0x515   :  { %3322 = vmatprep.subr.bf16.mxu0 %v7184_v10  ;;  %5312 = vmatprep.subr.bf16.mxu1 %v7719_v48 }
 0x518   :  { %3323 = vmatpush1.bf16.msra.mxu0 %v7188_v55  ;;  %5313 = vmatpush3.bf16.msra.mxu1 %v7191_v4 }
 0x519   :  { %3836 = vmatprep.subr.bf16.mxu0 %v7005_v21  ;;  %5318 = vmatprep.subr.bf16.mxu1 %v7719_v48  ;;  %v7201_v21 = vld [vmem:[#allocation2 + $0x4] ss:$8 sm:$0x7] }
 0x5ce   :  { %v2814_v11 = vpop.f32.mrb[32].mxu0  ;;  %v7196_v49 = vpop.f32.mrb[24].mxu1 }
 0x5cf   :  { %v2862_v38 = vcombine.high %v2814_v11, %v2814_v11  ;;  %v2869_v37 = vrot.slane %v2814_v11, %v6485_v20  ;;  %v2816_v32 = vpop.f32.mrb[33].mxu0  ;;  %v5296_v39 = vpop.f32.mrb[25].mxu1  ;;  %v7223_v11 = vld [vmem:[#allocation2 + $0xac] ss:$8 sm:$0x7] }
 0x5d0   :  { %v2818_v13 = vpop.f32.mrb[34].mxu0  ;;  %v2858_v14 = vpop.f32.mrb[26].mxu1  ;;  %v3007_v5 = vrot.slane %v2816_v32, %v6485_v20  ;;  %v3000_v54 = vcombine.high %v2816_v32, %v2816_v32 }
 0x5d1   :  { %v2876_v58 = vrot.slane %v2862_v38, %v6485_v20  ;;  %v2877_v47 = vcombine.high %v2869_v37, %v2869_v37  ;;  %v2885_v63 = vrot.slane %v2869_v37, %v6485_v20  ;;  %v2819_v18 = vpop.f32.mrb[35].mxu0  ;;  %v5297_v52 = vpop.f32.mrb[27].mxu1 }
 0x5d2   :  { %v3015_v52 = vcombine.high %v3007_v5, %v3007_v5  ;;  %v3023_v32 = vrot.slane %v3007_v5, %v6485_v20  ;;  %v7237_v5 = vld [vmem:[%s7696_s4] ss:$0 sm:$0xff] }
 0x5d3   :  { %v2878_v27 = vcombine.high %v2876_v58, %v2876_v58  ;;  %v2892_v44 = vrot.slane %v2876_v58, %v6485_v20  ;;  %v2899_v9 = vrot.slane %v2877_v47, %v6485_v20  ;;  %v2907_v0 = vcombine.high %v2885_v63, %v2885_v63  ;;  %7732 = vst [vmem:[#allocation20_spill] sm:$0xff] %v7237_v5 }
 0x5d4   :  { %v2919_v40 = vadd.f32 %v2885_v63, %v7201_v21 }
 0x5d5   :  { %v2906_v51 = vrot.slane %v2878_v27, %v6485_v20  ;;  %v2908_v3 = vcombine.high %v2892_v44, %v2892_v44  ;;  %v2909_v23 = vcombine.high %v2899_v9, %v2899_v9  ;;  %v2920_v16 = vadd.f32 %v2899_v9, %v7203_v6 }
 0x5d6   :  { %v2921_v24 = vadd.f32 %v2907_v0, %v7207_v43  ;;  %v2923_v53 = vadd.f32 %v2892_v44, %v7213_v34  ;;  %v5026_v28 = vmul.f32 -1.442695, %v2919_v40  ;;  %v3014_v9 = vrot.slane %v3000_v54, %v6485_v20 }
 0x5d7   :  { %v2910_v38 = vcombine.high %v2906_v51, %v2906_v51  ;;  %v2922_v37 = vadd.f32 %v2909_v23, %v7209_v60  ;;  %v2924_v39 = vadd.f32 %v2906_v51, %v7215_v50  ;;  %v2925_v13 = vadd.f32 %v2908_v3, %v7219_v22 }
 0x5d8   :  { %5755 = vpow2.f32 %v5026_v28  ;;  %v5027_v14 = vmul.f32 -1.442695, %v2920_v16  ;;  %v5028_v58 = vmul.f32 -1.442695, %v2921_v24  ;;  %v5030_v18 = vmul.f32 -1.442695, %v2923_v53 }
 0x5d9   :  { %v2926_v47 = vadd.f32 %v2910_v38, %v7223_v11  ;;  %v5029_v63 = vmul.f32 -1.442695, %v2922_v37  ;;  %v5031_v27 = vmul.f32 -1.442695, %v2924_v39  ;;  %v5032_v44 = vmul.f32 -1.442695, %v2925_v13 }
 0x5da   :  { %5757 = vpow2.f32 %v5027_v14  ;;  %v2983_v40 = vrot.slane %v7201_v21, 1  ;;  %v3037_v51 = vrot.slane %v3015_v52, %v6485_v20  ;;  %v2984_v3 = vrot.slane %v7203_v6, 1 }
 0x5db   :  { %5759 = vpow2.f32 %v5028_v58  ;;  %v5033_v0 = vmul.f32 -1.442695, %v2926_v47  ;;  %v3016_v16 = vcombine.high %v3014_v9, %v3014_v9  ;;  %v3113_v24 = vadd.f32 %v7237_v5, %v7196_v49 }
 0x5dc   :  { %5761 = vpow2.f32 %v5029_v63  ;;  %v3057_v23 = vadd.f32 %v3023_v32, %v2983_v40  ;;  %v3058_v53 = vadd.f32 %v3037_v51, %v2984_v3  ;;  %v2985_v28 = vrot.slane %v7207_v43, 1 }
 0x5dd   :  { %5763 = vpow2.f32 %v5030_v18  ;;  %v2986_v54 = vrot.slane %v7209_v60, 1  ;;  %v3030_v37 = vrot.slane %v3014_v9, %v6485_v20  ;;  %v3045_v39 = vcombine.high %v3023_v32, %v3023_v32 }
 0x5de   :  { %5765 = vpow2.f32 %v5031_v27  ;;  %v5034_v13 = vmul.f32 -1.442695, %v3057_v23  ;;  %v5035_v14 = vmul.f32 -1.442695, %v3058_v53  ;;  %v2987_v47 = vrot.slane %v7213_v34, 1 }
 0x5df   :  { %5767 = vpow2.f32 %v5032_v44  ;;  %v3044_v63 = vrot.slane %v3016_v16, %v6485_v20  ;;  %v3047_v18 = vcombine.high %v3037_v51, %v3037_v51  ;;  %v3115_v27 = vcombine.high %v3113_v24, %v3113_v24 }
 0x5e0   :  { %5769 = vpow2.f32 %v5033_v0  ;;  %v2988_v49 = vrot.slane %v7215_v50, 1  ;;  %v2989_v44 = vrot.slane %v7219_v22, 1  ;;  %v3122_v32 = vrot.slane %v3113_v24, %v6485_v20 }
 0x5e1   :  { %5771 = vpow2.f32 %v5034_v13  ;;  %v2990_v9 = vrot.slane %v7223_v11, 1  ;;  %v3046_v53 = vcombine.high %v3030_v37, %v3030_v37  ;;  %v3048_v5 = vcombine.high %v3044_v63, %v3044_v63 }
 0x5e2   :  { %v5756_v38 = vpop.eup %5755  ;;  %v3060_v4 = vadd.f32 %v3047_v18, %v2986_v54  ;;  %v3129_v13 = vrot.slane %v3115_v27, %v6485_v20  ;;  %v3130_v31 = vcombine.high %v3122_v32, %v3122_v32  ;;  %v3062_v57 = vadd.f32 %v3044_v63, %v2988_v49 }
 0x5e3   :  { %v2951_v58 = vadd.f32 1.0, %v5756_v38  ;;  %v3059_v38 = vadd.f32 %v3045_v39, %v2985_v28  ;;  %v3063_v28 = vadd.f32 %v3046_v53, %v2989_v44  ;;  %v3181_v44 = vrot.slane %v7203_v6, 2 }
 0x5e4   :  { %v5758_v52 = vpop.eup %5757  ;;  %v5037_v54 = vmul.f32 -1.442695, %v3060_v4  ;;  %v3152_v27 = vrot.slane %v3130_v31, %v6485_v20 }
 0x5e5   :  { %v5760_v0 = vpop.eup %5759  ;;  %v2952_v40 = vadd.f32 1.0, %v5758_v52  ;;  %5773 = vrcp.f32 %v2951_v58  ;;  %v3061_v58 = vadd.f32 %v3030_v37, %v2987_v47  ;;  %v5036_v39 = vmul.f32 -1.442695, %v3059_v38 }
 0x5e6   :  { %v5762_v3 = vpop.eup %5761  ;;  %v2953_v23 = vadd.f32 1.0, %v5760_v0  ;;  %5775 = vpow2.f32 %v5035_v14  ;;  %v3138_v37 = vrot.slane %v3122_v32, %v6485_v20  ;;  %v5039_v47 = vmul.f32 -1.442695, %v3062_v57 }
 0x5e7   :  { %v5764_v51 = vpop.eup %5763  ;;  %v2954_v16 = vadd.f32 1.0, %v5762_v3  ;;  %5777 = vrcp.f32 %v2952_v40  ;;  %v3064_v40 = vadd.f32 %v3048_v5, %v2990_v9  ;;  %v5038_v18 = vmul.f32 -1.442695, %v3061_v58 }
 0x5e8   :  { %v5766_v55 = vpop.eup %5765  ;;  %v2955_v10 = vadd.f32 1.0, %v5764_v51  ;;  %5779 = vrcp.f32 %v2953_v23  ;;  %v3131_v3 = vcombine.high %v3129_v13, %v3129_v13  ;;  %v5040_v63 = vmul.f32 -1.442695, %v3063_v28 }
 0x5e9   :  { %v5768_v52 = vpop.eup %5767  ;;  %v2956_v24 = vadd.f32 1.0, %v5766_v55  ;;  %5781 = vrcp.f32 %v2954_v16  ;;  %v5041_v5 = vmul.f32 -1.442695, %v3064_v40  ;;  %v3145_v9 = vrot.slane %v3129_v13, %v6485_v20 }
 0x5ea   :  { %v5770_v0 = vpop.eup %5769  ;;  %v2957_v26 = vadd.f32 1.0, %v5768_v52  ;;  %5783 = vrcp.f32 %v2955_v10  ;;  %v3180_v10 = vrot.slane %v7201_v21, 2  ;;  %v3159_v32 = vrot.slane %v3131_v3, %v6485_v20 }
 0x5eb   :  { %v2958_v14 = vadd.f32 1.0, %v5770_v0  ;;  %5785 = vrcp.f32 %v2956_v24  ;;  %v5772_v55 = vpop.eup %5771  ;;  %v3160_v31 = vcombine.high %v3138_v37, %v3138_v37  ;;  %v3162_v51 = vcombine.high %v3152_v27, %v3152_v27 }
 0x5ec   :  { %5787 = vrcp.f32 %v2957_v26  ;;  %v3182_v26 = vrot.slane %v7207_v43, 2  ;;  %v3089_v53 = vadd.f32 1.0, %v5772_v55  ;;  %v3183_v58 = vrot.slane %v7209_v60, 2 }
 0x5ed   :  { %5789 = vrcp.f32 %v2958_v14  ;;  %v3184_v43 = vrot.slane %v7213_v34, 2  ;;  %v3185_v24 = vrot.slane %v7215_v50, 2  ;;  %v3161_v14 = vcombine.high %v3145_v9, %v3145_v9 }
 0x5ee   :  { %5791 = vpow2.f32 %v5036_v39  ;;  %v3163_v3 = vcombine.high %v3159_v32, %v3159_v32  ;;  %v3186_v34 = vrot.slane %v7219_v22, 2 }
 0x5ef   :  { %v5774_v49 = vpop.eup %5773  ;;  %5793 = vpow2.f32 %v5037_v54 }
 0x5f0   :  { %v5776_v4 = vpop.eup %5775  ;;  %v3172_v23 = vmul.f32 %v5774_v49, %v3138_v37  ;;  %5795 = vpow2.f32 %v5038_v18 }
 0x5f1   :  { %v5778_v57 = vpop.eup %5777  ;;  %5797 = vpow2.f32 %v5039_v47 }
 0x5f2   :  { %v5780_v38 = vpop.eup %5779  ;;  %v3173_v21 = vmul.f32 %v5778_v57, %v3152_v27  ;;  %v3196_v16 = vadd.f32 %v3180_v10, %v3172_v23  ;;  %5799 = vpow2.f32 %v5040_v63  ;;  %v3187_v63 = vrot.slane %v7223_v11, 2 }
 0x5f3   :  { %v5782_v6 = vpop.eup %5781  ;;  %v3174_v52 = vmul.f32 %v5780_v38, %v3160_v31  ;;  %5801 = vpow2.f32 %v5041_v5 }
 0x5f4   :  { %v5784_v13 = vpop.eup %5783  ;;  %v3175_v0 = vmul.f32 %v5782_v6, %v3162_v51  ;;  %v3197_v28 = vadd.f32 %v3181_v44, %v3173_v21  ;;  %5803 = vtanh.f32 %v3196_v16 }
 0x5f5   :  { %v5786_v39 = vpop.eup %5785  ;;  %v3176_v40 = vmul.f32 %v5784_v13, %v3145_v9  ;;  %v3198_v54 = vadd.f32 %v3182_v26, %v3174_v52  ;;  %5805 = vrcp.f32 %v3089_v53  ;;  %v3090_v26 = vadd.f32 1.0, %v5776_v4 }
 0x5f6   :  { %v5788_v18 = vpop.eup %5787  ;;  %v3177_v37 = vmul.f32 %v5786_v39, %v3159_v32  ;;  %v3199_v47 = vadd.f32 %v3183_v58, %v3175_v0  ;;  %5807 = vtanh.f32 %v3197_v28 }
 0x5f7   :  { %v5790_v60 = vpop.eup %5789  ;;  %v3178_v55 = vmul.f32 %v5788_v18, %v3161_v14  ;;  %v3200_v27 = vadd.f32 %v3184_v43, %v3176_v40  ;;  %5809 = vtanh.f32 %v3198_v54 }
 0x5f8   :  { %v5792_v50 = vpop.eup %5791  ;;  %v3179_v49 = vmul.f32 %v5790_v60, %v3163_v3  ;;  %v3201_v10 = vadd.f32 %v3185_v24, %v3177_v37  ;;  %5811 = vtanh.f32 %v3199_v47 }
 0x5f9   :  { %v5794_v44 = vpop.eup %5793  ;;  %v3202_v5 = vadd.f32 %v3186_v34, %v3178_v55  ;;  %5813 = vtanh.f32 %v3200_v27  ;;  %v3091_v57 = vadd.f32 1.0, %v5792_v50 }
 0x5fa   :  { %v5796_v9 = vpop.eup %5795  ;;  %v3203_v23 = vadd.f32 %v3187_v63, %v3179_v49  ;;  %5815 = vtanh.f32 %v3201_v10  ;;  %v3092_v22 = vadd.f32 1.0, %v5794_v44 }
 0x5fb   :  { %v5798_v32 = vpop.eup %5797  ;;  %5817 = vtanh.f32 %v3202_v5  ;;  %v3093_v53 = vadd.f32 1.0, %v5796_v9 }
 0x5fc   :  { %v5800_v31 = vpop.eup %5799  ;;  %5819 = vtanh.f32 %v3203_v23  ;;  %v3094_v51 = vadd.f32 1.0, %v5798_v32 }
 0x5fd   :  { %v5802_v38 = vpop.eup %5801  ;;  %5821 = vrcp.f32 %v3090_v26  ;;  %v3095_v21 = vadd.f32 1.0, %v5800_v31 }
 0x5fe   :  { %v5804_v11 = vpop.eup %5803  ;;  %5823 = vrcp.f32 %v3091_v57  ;;  %v3096_v6 = vadd.f32 1.0, %v5802_v38 }
 0x5ff   :  { %v5806_v16 = vpop.eup %5805  ;;  %5825 = vrcp.f32 %v3092_v22 }
 0x600   :  { %v5808_v4 = vpop.eup %5807  ;;  %5827 = vrcp.f32 %v3093_v53  ;;  %v3212_v58 = vsub.f32 1.0, %v5806_v16  ;;  %v3228_v24 = vmul.f32 %v5806_v16, %v7069_v1 }
 0x601   :  { %v5810_v43 = vpop.eup %5809  ;;  %5829 = vrcp.f32 %v3094_v51 }
 0x602   :  { %v5812_v52 = vpop.eup %5811  ;;  %5831 = vrcp.f32 %v3095_v21  ;;  %v3220_v13 = vmul.f32 %v5804_v11, %v3212_v58 }
 0x603   :  { %v5814_v0 = vpop.eup %5813  ;;  %5833 = vrcp.f32 %v3096_v6 }
 0x604   :  { %v5816_v28 = vpop.eup %5815  ;;  %v7264_v39 = vadd.f32 %v3228_v24, %v3220_v13 }
 0x605   :  { %v5818_v14 = vpop.eup %5817 }
 0x606   :  { %v5820_v40 = vpop.eup %5819  ;;  %3244 = vst [vmem:[#allocation10 + $0x4] sm:$0x1] %v7264_v39  ;;  %v3268_v1 = vpack.c.bf16 %v7264_v39, %v7264_v39 }
 0x607   :  { %v5822_v54 = vpop.eup %5821 }
 0x608   :  { %v5824_v18 = vpop.eup %5823  ;;  %v3213_v3 = vsub.f32 1.0, %v5822_v54  ;;  %v3229_v27 = vmul.f32 %v5822_v54, %v7078_v8 }
 0x609   :  { %v5826_v37 = vpop.eup %5825  ;;  %v3214_v47 = vsub.f32 1.0, %v5824_v18  ;;  %v3230_v10 = vmul.f32 %v5824_v18, %v7080_v17 }
 0x60a   :  { %v5828_v60 = vpop.eup %5827  ;;  %v3215_v34 = vsub.f32 1.0, %v5826_v37  ;;  %v3221_v55 = vmul.f32 %v5808_v4, %v3213_v3  ;;  %v3231_v44 = vmul.f32 %v5826_v37, %v7085_v7 }
 0x60b   :  { %v5830_v50 = vpop.eup %5829  ;;  %v3216_v63 = vsub.f32 1.0, %v5828_v60  ;;  %v3222_v49 = vmul.f32 %v5810_v43, %v3214_v47  ;;  %v3232_v23 = vmul.f32 %v5828_v60, %v7088_v29 }
 0x60c   :  { %v5832_v5 = vpop.eup %5831  ;;  %v3217_v26 = vsub.f32 1.0, %v5830_v50  ;;  %v3223_v9 = vmul.f32 %v5812_v52, %v3215_v34  ;;  %v7273_v57 = vadd.f32 %v3229_v27, %v3221_v55  ;;  %v3233_v53 = vmul.f32 %v5830_v50, %v7095_v15 }
 0x60d   :  { %v5834_v32 = vpop.eup %5833  ;;  %v3224_v22 = vmul.f32 %v5814_v0, %v3216_v63  ;;  %v7275_v8 = vadd.f32 %v3230_v10, %v3222_v49  ;;  %v3218_v31 = vsub.f32 1.0, %v5832_v5  ;;  %v3234_v7 = vmul.f32 %v5832_v5, %v7100_v25 }
 0x60e   :  { %3245 = vst [vmem:[#allocation10 + $0xc] sm:$0x1] %v7273_v57  ;;  %v3219_v38 = vsub.f32 1.0, %v5834_v32  ;;  %v3225_v17 = vmul.f32 %v5816_v28, %v3217_v26  ;;  %v7280_v51 = vadd.f32 %v3231_v44, %v3223_v9  ;;  %v3269_v21 = vpack.c.bf16 %v7273_v57, %v7273_v57 }
 0x60f   :  { %3246 = vst [vmem:[#allocation10 + $0x14] sm:$0x1] %v7275_v8  ;;  %v3226_v29 = vmul.f32 %v5818_v14, %v3218_v31  ;;  %v7283_v11 = vadd.f32 %v3232_v23, %v3224_v22  ;;  %v3270_v16 = vpack.c.bf16 %v7275_v8, %v7275_v8  ;;  %v3235_v6 = vmul.f32 %v5834_v32, %v7105_v19  ;;  %v7318_v32 = vld [vmem:[#allocation9] ss:$12 sps:$4 sm:$0xff]   ;;  %v7321_v22 = vld [vmem:[#allocation9 + $0x8] ss:$12 sps:$4 sm:$0xff]  }
 0x610   :  { %v3227_v15 = vmul.f32 %v5820_v40, %v3219_v38  ;;  %v7290_v4 = vadd.f32 %v3233_v53, %v3225_v17  ;;  %3247 = vst [vmem:[#allocation10 + $0x1c] sm:$0x1] %v7280_v51  ;;  %v3271_v25 = vpack.c.bf16 %v7280_v51, %v7280_v51  ;;  %v3285_v52 = vunpack.c.l.b16 %v3269_v21  ;;  %v7324_v31 = vld [vmem:[#allocation9 + $0x1c] ss:$12 sps:$4 sm:$0xff]   ;;  %v7331_v53 = vld [vmem:[#allocation9 + $0x18] ss:$12 sps:$4 sm:$0xff]  }
 0x611   :  { %v7295_v58 = vadd.f32 %v3234_v7, %v3226_v29  ;;  %3248 = vst [vmem:[#allocation10 + $0x24] sm:$0x1] %v7283_v11  ;;  %v3272_v43 = vpack.c.bf16 %v7283_v11, %v7283_v11  ;;  %v3286_v13 = vunpack.c.l.b16 %v3270_v16  ;;  %v3284_v0 = vunpack.c.l.b16 %v3268_v1 }
 0x612   :  { %v7300_v24 = vadd.f32 %v3235_v6, %v3227_v15  ;;  %3249 = vst [vmem:[#allocation10 + $0x2c] sm:$0x1] %v7290_v4  ;;  %v3273_v19 = vpack.c.bf16 %v7290_v4, %v7290_v4  ;;  %v3287_v28 = vunpack.c.l.b16 %v3271_v25  ;;  %v3292_v54 = vrot.slane %v3285_v52, 7  ;;  %v7363_v6 = vld [vmem:[#allocation2 + $0x5] ss:$8 sm:$0x7] }
 0x613   :  { %3250 = vst [vmem:[#allocation10 + $0x34] sm:$0x1] %v7295_v58  ;;  %v3274_v14 = vpack.c.bf16 %v7295_v58, %v7295_v58  ;;  %v3288_v40 = vunpack.c.l.b16 %v3272_v43  ;;  %v3294_v18 = vrot.slane %v3286_v13, 6  ;;  %v7365_v25 = vld [vmem:[#allocation2 + $0x1d] ss:$8 sm:$0x7] }
 0x614   :  { %3251 = vst [vmem:[#allocation10 + $0x3c] sm:$0x1] %v7300_v24  ;;  %v3275_v3 = vpack.c.bf16 %v7300_v24, %v7300_v24  ;;  %v3289_v37 = vunpack.c.l.b16 %v3273_v19  ;;  %v3296_v47 = vrot.slane %v3287_v28, 5  ;;  %v3293_v34 = vsel %vm1174_vm1, %v3292_v54, %v3284_v0  ;;  %v7369_v0 = vld [vmem:[#allocation2 + $0x35] ss:$8 sm:$0x7] }
 0x615   :  { %v3290_v60 = vunpack.c.l.b16 %v3274_v14  ;;  %v3295_v27 = vsel %vm1177_vm2, %v3294_v18, %v3293_v34  ;;  %v3298_v1 = vrot.slane %v3288_v40, 4  ;;  %v7371_v28 = vld [vmem:[#allocation2 + $0x4d] ss:$8 sm:$0x7] }
 0x616   :  { %v3291_v55 = vunpack.c.l.b16 %v3275_v3  ;;  %v3297_v50 = vsel %vm1180_vm3, %v3296_v47, %v3295_v27  ;;  %v3300_v63 = vrot.slane %v3289_v37, 3  ;;  %v7375_v54 = vld [vmem:[#allocation2 + $0x65] ss:$8 sm:$0x7] }
 0x617   :  { %v3299_v49 = vsel %vm1183_vm4, %v3298_v1, %v3297_v50  ;;  %v3302_v10 = vrot.slane %v3290_v60, 2  ;;  %v7377_v18 = vld [vmem:[#allocation2 + $0x7d] ss:$8 sm:$0x7] }
 0x618   :  { %v3301_v44 = vsel %vm1186_vm5, %v3300_v63, %v3299_v49  ;;  %v3304_v5 = vrot.slane %v3291_v55, 1  ;;  %v7381_v34 = vld [vmem:[#allocation2 + $0x95] ss:$8 sm:$0x7] }
 0x619   :  { %v3303_v26 = vsel %vm1189_vm6, %v3302_v10, %v3301_v44  ;;  %v7385_v63 = vld [vmem:[#allocation2 + $0xad] ss:$8 sm:$0x7] }
 0x61a   :  { %v3305_v9 = vsel %vm1192_vm7, %v3304_v5, %v3303_v26 }
 0x61b   :  { %v3306_v23 = vpack.c.b16 %v3305_v9, %v3305_v9 }
 0x61d   :  { %3341 = vmatmul.mubr.bf16.vlgmr.msra.gmra.mrb[36].mxu0 %v3306_v23  ;;  %5315 = vmatmul.mubr.bf16.vlgmr.msra.gmra.mrb[28].mxu1 %v3306_v23 }
 0x61e   :  { %3837 = vmatpush1.bf16.msra.mxu0 %v7318_v32  ;;  %5319 = vmatpush3.bf16.msra.mxu1 %v7321_v22 }
 0x61f   :  { %3838 = vmatprep.subr.bf16.mxu0 %v7324_v31  ;;  %5320 = vmatprep.subr.bf16.mxu1 %v7719_v48 }
 0x620   :  { %3868 = vmatprep.mubr.bf16.mxu0 %v7720_v62  ;;  %5334 = vmatprep.mubr.msk.bf16.mxu1 %vm6253_vm0, %v7719_v48 }
 0x622   :  { %3839 = vmatpush1.bf16.msra.mxu0 %v7331_v53  ;;  %5321 = vmatpush3.bf16.msra.mxu1 %v7131_v2  ;;  %v7733_v2 = vld [vmem:[#allocation14_spill] sm:$0xff] }
 0x623   :  { %3840 = vmatprep.subr.bf16.mxu0 %v7134_v56  ;;  %5322 = vmatprep.subr.bf16.mxu1 %v7719_v48  ;;  %v7734_v56 = vld [vmem:[#allocation15_spill] sm:$0xff] }
 0x626   :  { %3841 = vmatpush1.bf16.msra.mxu0 %v7138_v33  ;;  %5323 = vmatpush3.bf16.msra.mxu1 %v7141_v46  ;;  %v7735_v33 = vld [vmem:[#allocation16_spill] sm:$0xff]  ;;  %v7736_v46 = vld [vmem:[#allocation17_spill] sm:$0xff] }
 0x627   :  { %3842 = vmatprep.subr.bf16.mxu0 %v7144_v41  ;;  %5324 = vmatprep.subr.bf16.mxu1 %v7719_v48  ;;  %v7737_v41 = vld [vmem:[#allocation18_spill] sm:$0xff] }
 0x62a   :  { %3843 = vmatpush1.bf16.msra.mxu0 %v7148_v30  ;;  %5325 = vmatpush3.bf16.msra.mxu1 %v7151_v59  ;;  %v7738_v30 = vld [vmem:[#allocation19_spill] sm:$0xff]  ;;  %v6129_v59 = vld [vmem:[#allocation9 + $0x4] ss:$12 sps:$4 sm:$0xff]  }
 0x62b   :  { %3844 = vmatprep.subr.bf16.mxu0 %v7154_v36  ;;  %5326 = vmatprep.subr.bf16.mxu1 %v7719_v48 }
 0x62e   :  { %3845 = vmatpush1.bf16.msra.mxu0 %v7158_v45  ;;  %5327 = vmatpush3.bf16.msra.mxu1 %v7161_v61 }
 0x62f   :  { %3846 = vmatprep.subr.bf16.mxu0 %v7164_v35  ;;  %5328 = vmatprep.subr.bf16.mxu1 %v7719_v48 }
 0x632   :  { %3847 = vmatpush1.bf16.msra.mxu0 %v7168_v12  ;;  %5329 = vmatpush3.bf16.msra.mxu1 %v7171_v42 }
 0x633   :  { %3848 = vmatprep.subr.bf16.mxu0 %v7733_v2  ;;  %5330 = vmatprep.subr.bf16.mxu1 %v7719_v48 }
 0x636   :  { %3849 = vmatpush1.bf16.msra.mxu0 %v7734_v56  ;;  %5331 = vmatpush3.bf16.msra.mxu1 %v7735_v33 }
 0x637   :  { %3850 = vmatprep.subr.bf16.mxu0 %v7736_v46  ;;  %5332 = vmatprep.subr.bf16.mxu1 %v7719_v48 }
 0x63a   :  { %3851 = vmatpush1.bf16.msra.mxu0 %v7737_v41  ;;  %5333 = vmatpush3.bf16.msra.mxu1 %v7738_v30 }
 0x63b   :  { %4364 = vmatprep.subr.bf16.mxu0 %v6129_v59  ;;  %5338 = vmatprep.subr.bf16.mxu1 %v7719_v48 }
 0x6f0   :  { %v3342_v36 = vpop.f32.mrb[36].mxu0  ;;  %v3383_v45 = vpop.f32.mrb[28].mxu1 }
 0x6f1   :  { %v3390_v61 = vcombine.high %v3342_v36, %v3342_v36  ;;  %v3397_v35 = vrot.slane %v3342_v36, %v6485_v20  ;;  %v3344_v12 = vpop.f32.mrb[37].mxu0  ;;  %v5316_v42 = vpop.f32.mrb[29].mxu1 }
 0x6f2   :  { %v3346_v38 = vpop.f32.mrb[38].mxu0  ;;  %v3386_v17 = vpop.f32.mrb[30].mxu1  ;;  %v3535_v40 = vrot.slane %v3344_v12, %v6485_v20  ;;  %v3528_v50 = vcombine.high %v3344_v12, %v3344_v12  ;;  %v3512_v12 = vrot.slane %v7365_v25, 1 }
 0x6f3   :  { %v3404_v7 = vrot.slane %v3390_v61, %v6485_v20  ;;  %v3405_v29 = vcombine.high %v3397_v35, %v3397_v35  ;;  %v3413_v21 = vrot.slane %v3397_v35, %v6485_v20  ;;  %v3347_v16 = vpop.f32.mrb[39].mxu0  ;;  %v5317_v15 = vpop.f32.mrb[31].mxu1  ;;  %v3511_v61 = vrot.slane %v7363_v6, 1  ;;  %v7739_v17 = vld [vmem:[#allocation20_spill] sm:$0xff] }
 0x6f4   :  { %v3543_v33 = vcombine.high %v3535_v40, %v3535_v40  ;;  %v3551_v41 = vrot.slane %v3535_v40, %v6485_v20  ;;  %v3542_v59 = vrot.slane %v3528_v50, %v6485_v20  ;;  %v3514_v16 = vrot.slane %v7371_v28, 1 }
 0x6f5   :  { %v3406_v43 = vcombine.high %v3404_v7, %v3404_v7  ;;  %v3420_v52 = vrot.slane %v3404_v7, %v6485_v20  ;;  %v3427_v13 = vrot.slane %v3405_v29, %v6485_v20  ;;  %v3435_v19 = vcombine.high %v3413_v21, %v3413_v21 }
 0x6f6   :  { %v3447_v14 = vadd.f32 %v3413_v21, %v7363_v6  ;;  %v3565_v35 = vrot.slane %v3543_v33, %v6485_v20  ;;  %v3585_v42 = vadd.f32 %v3551_v41, %v3511_v61  ;;  %v3544_v38 = vcombine.high %v3542_v59, %v3542_v59 }
 0x6f7   :  { %v3434_v3 = vrot.slane %v3406_v43, %v6485_v20  ;;  %v3436_v37 = vcombine.high %v3420_v52, %v3420_v52  ;;  %v3437_v47 = vcombine.high %v3427_v13, %v3427_v13  ;;  %v3448_v60 = vadd.f32 %v3427_v13, %v7365_v25 }
 0x6f8   :  { %v3449_v55 = vadd.f32 %v3435_v19, %v7369_v0  ;;  %v3451_v27 = vadd.f32 %v3420_v52, %v7375_v54  ;;  %v5042_v1 = vmul.f32 -1.442695, %v3447_v14  ;;  %v3641_v7 = vadd.f32 %v7739_v17, %v3383_v45 }
 0x6f9   :  { %v3438_v49 = vcombine.high %v3434_v3, %v3434_v3  ;;  %v3450_v10 = vadd.f32 %v3437_v47, %v7371_v28  ;;  %v3452_v44 = vadd.f32 %v3434_v3, %v7377_v18  ;;  %v3453_v5 = vadd.f32 %v3436_v37, %v7381_v34 }
 0x6fa   :  { %5835 = vpow2.f32 %v5042_v1  ;;  %v5043_v26 = vmul.f32 -1.442695, %v3448_v60  ;;  %v5044_v9 = vmul.f32 -1.442695, %v3449_v55  ;;  %v5046_v56 = vmul.f32 -1.442695, %v3451_v27 }
 0x6fb   :  { %v3454_v23 = vadd.f32 %v3438_v49, %v7385_v63  ;;  %v5045_v2 = vmul.f32 -1.442695, %v3450_v10  ;;  %v5047_v46 = vmul.f32 -1.442695, %v3452_v44  ;;  %v5048_v30 = vmul.f32 -1.442695, %v3453_v5 }
 0x6fc   :  { %5837 = vpow2.f32 %v5043_v26  ;;  %v3586_v29 = vadd.f32 %v3565_v35, %v3512_v12  ;;  %v3513_v21 = vrot.slane %v7369_v0, 1  ;;  %v3558_v43 = vrot.slane %v3542_v59, %v6485_v20 }
 0x6fd   :  { %5839 = vpow2.f32 %v5044_v9  ;;  %v5049_v36 = vmul.f32 -1.442695, %v3454_v23  ;;  %v3573_v52 = vcombine.high %v3551_v41, %v3551_v41  ;;  %v5050_v13 = vmul.f32 -1.442695, %v3585_v42 }
 0x6fe   :  { %5841 = vpow2.f32 %v5045_v2  ;;  %v5051_v19 = vmul.f32 -1.442695, %v3586_v29  ;;  %v3515_v40 = vrot.slane %v7375_v54, 1  ;;  %v3572_v3 = vrot.slane %v3544_v38, %v6485_v20 }
 0x6ff   :  { %5843 = vpow2.f32 %v5046_v56  ;;  %v3575_v37 = vcombine.high %v3565_v35, %v3565_v35  ;;  %v3643_v60 = vcombine.high %v3641_v7, %v3641_v7  ;;  %v3516_v45 = vrot.slane %v7377_v18, 1 }
 0x700   :  { %5845 = vpow2.f32 %v5047_v46  ;;  %v3517_v55 = vrot.slane %v7381_v34, 1  ;;  %v3650_v50 = vrot.slane %v3641_v7, %v6485_v20  ;;  %v3518_v49 = vrot.slane %v7385_v63, 1 }
 0x701   :  { %5847 = vpow2.f32 %v5048_v30  ;;  %v3574_v5 = vcombine.high %v3558_v43, %v3558_v43  ;;  %v3587_v26 = vadd.f32 %v3573_v52, %v3513_v21  ;;  %v3576_v2 = vcombine.high %v3572_v3, %v3572_v3 }
 0x702   :  { %5849 = vpow2.f32 %v5049_v36  ;;  %v3588_v56 = vadd.f32 %v3575_v37, %v3514_v16  ;;  %v3657_v41 = vrot.slane %v3643_v60, %v6485_v20  ;;  %v3589_v30 = vadd.f32 %v3558_v43, %v3515_v40 }
 0x703   :  { %5851 = vpow2.f32 %v5050_v13  ;;  %v3658_v61 = vcombine.high %v3650_v50, %v3650_v50  ;;  %v3590_v35 = vadd.f32 %v3572_v3, %v3516_v45  ;;  %v3591_v38 = vadd.f32 %v3574_v5, %v3517_v55 }
 0x704   :  { %v5836_v15 = vpop.eup %5835  ;;  %v5052_v17 = vmul.f32 -1.442695, %v3587_v26  ;;  %v3592_v29 = vadd.f32 %v3576_v2, %v3518_v49  ;;  %v5053_v21 = vmul.f32 -1.442695, %v3588_v56  ;;  %v5054_v16 = vmul.f32 -1.442695, %v3589_v30 }
 0x705   :  { %v3479_v14 = vadd.f32 1.0, %v5836_v15  ;;  %v3659_v15 = vcombine.high %v3657_v41, %v3657_v41  ;;  %v3666_v43 = vrot.slane %v3650_v50, %v6485_v20  ;;  %v5055_v52 = vmul.f32 -1.442695, %v3590_v35 }
 0x706   :  { %v5838_v47 = vpop.eup %5837  ;;  %v3708_v3 = vrot.slane %v7363_v6, 2  ;;  %v3709_v37 = vrot.slane %v7365_v25, 2  ;;  %v3710_v45 = vrot.slane %v7369_v0, 2  ;;  %v3673_v55 = vrot.slane %v3657_v41, %v6485_v20 }
 0x707   :  { %v5840_v27 = vpop.eup %5839  ;;  %v3480_v1 = vadd.f32 1.0, %v5838_v47  ;;  %5853 = vrcp.f32 %v3479_v14  ;;  %v5056_v14 = vmul.f32 -1.442695, %v3591_v38  ;;  %v5057_v47 = vmul.f32 -1.442695, %v3592_v29 }
 0x708   :  { %v5842_v10 = vpop.eup %5841  ;;  %v3481_v44 = vadd.f32 1.0, %v5840_v27  ;;  %5855 = vpow2.f32 %v5051_v19  ;;  %v3680_v19 = vrot.slane %v3658_v61, %v6485_v20  ;;  %v3687_v50 = vrot.slane %v3659_v15, %v6485_v20 }
 0x709   :  { %v5844_v9 = vpop.eup %5843  ;;  %v3482_v23 = vadd.f32 1.0, %v5842_v10  ;;  %5857 = vrcp.f32 %v3480_v1  ;;  %v3688_v49 = vcombine.high %v3666_v43, %v3666_v43  ;;  %v3712_v0 = vrot.slane %v7375_v54, 2 }
 0x70a   :  { %v5846_v33 = vpop.eup %5845  ;;  %v3483_v46 = vadd.f32 1.0, %v5844_v9  ;;  %5859 = vrcp.f32 %v3481_v44  ;;  %v3690_v5 = vcombine.high %v3680_v19, %v3680_v19  ;;  %v3711_v9 = vrot.slane %v7371_v28, 2 }
 0x70b   :  { %v5848_v59 = vpop.eup %5847  ;;  %v3484_v36 = vadd.f32 1.0, %v5846_v33  ;;  %5861 = vrcp.f32 %v3482_v23  ;;  %v3713_v56 = vrot.slane %v7377_v18, 2  ;;  %v3689_v30 = vcombine.high %v3673_v55, %v3673_v55 }
 0x70c   :  { %v5850_v12 = vpop.eup %5849  ;;  %v3485_v42 = vadd.f32 1.0, %v5848_v59  ;;  %5863 = vrcp.f32 %v3483_v46  ;;  %v3691_v35 = vcombine.high %v3687_v50, %v3687_v50  ;;  %v3714_v54 = vrot.slane %v7381_v34, 2 }
 0x70d   :  { %v3486_v7 = vadd.f32 1.0, %v5850_v12  ;;  %5865 = vrcp.f32 %v3484_v36  ;;  %v5852_v13 = vpop.eup %5851 }
 0x70e   :  { %5867 = vrcp.f32 %v3485_v42  ;;  %v3617_v10 = vadd.f32 1.0, %v5852_v13 }
 0x70f   :  { %5869 = vrcp.f32 %v3486_v7  ;;  %v3715_v7 = vrot.slane %v7385_v63, 2 }
 0x710   :  { %5871 = vpow2.f32 %v5052_v17 }
 0x711   :  { %v5854_v40 = vpop.eup %5853  ;;  %5873 = vpow2.f32 %v5053_v21 }
 0x712   :  { %v5856_v60 = vpop.eup %5855  ;;  %v3700_v27 = vmul.f32 %v5854_v40, %v3666_v43  ;;  %5875 = vpow2.f32 %v5054_v16 }
 0x713   :  { %v5858_v1 = vpop.eup %5857  ;;  %5877 = vpow2.f32 %v5055_v52  ;;  %v3618_v43 = vadd.f32 1.0, %v5856_v60 }
 0x714   :  { %v5860_v44 = vpop.eup %5859  ;;  %v3701_v6 = vmul.f32 %v5858_v1, %v3680_v19  ;;  %v3724_v26 = vadd.f32 %v3708_v3, %v3700_v27  ;;  %5879 = vpow2.f32 %v5056_v14 }
 0x715   :  { %v5862_v25 = vpop.eup %5861  ;;  %v3702_v23 = vmul.f32 %v5860_v44, %v3688_v49  ;;  %5881 = vpow2.f32 %v5057_v47 }
 0x716   :  { %v5864_v2 = vpop.eup %5863  ;;  %v3703_v33 = vmul.f32 %v5862_v25, %v3690_v5  ;;  %v3725_v46 = vadd.f32 %v3709_v37, %v3701_v6  ;;  %5883 = vtanh.f32 %v3724_v26 }
 0x717   :  { %v5866_v41 = vpop.eup %5865  ;;  %v3704_v59 = vmul.f32 %v5864_v2, %v3673_v55  ;;  %v3726_v36 = vadd.f32 %v3710_v45, %v3702_v23  ;;  %5885 = vrcp.f32 %v3617_v10 }
 0x718   :  { %v5868_v61 = vpop.eup %5867  ;;  %v3705_v12 = vmul.f32 %v5866_v41, %v3687_v50  ;;  %v3727_v42 = vadd.f32 %v3711_v9, %v3703_v33  ;;  %5887 = vtanh.f32 %v3725_v46 }
 0x719   :  { %v5870_v28 = vpop.eup %5869  ;;  %v3706_v38 = vmul.f32 %v5868_v61, %v3689_v30  ;;  %v3728_v17 = vadd.f32 %v3712_v0, %v3704_v59  ;;  %5889 = vtanh.f32 %v3726_v36 }
 0x71a   :  { %v5872_v18 = vpop.eup %5871  ;;  %v3707_v29 = vmul.f32 %v5870_v28, %v3691_v35  ;;  %v3729_v21 = vadd.f32 %v3713_v56, %v3705_v12  ;;  %5891 = vtanh.f32 %v3727_v42 }
 0x71b   :  { %v5874_v16 = vpop.eup %5873  ;;  %v3730_v15 = vadd.f32 %v3714_v54, %v3706_v38  ;;  %5893 = vtanh.f32 %v3728_v17  ;;  %v3619_v19 = vadd.f32 1.0, %v5872_v18 }
 0x71c   :  { %v5876_v52 = vpop.eup %5875  ;;  %v3731_v13 = vadd.f32 %v3715_v7, %v3707_v29  ;;  %5895 = vtanh.f32 %v3729_v21  ;;  %v3620_v34 = vadd.f32 1.0, %v5874_v16 }
 0x71d   :  { %v5878_v14 = vpop.eup %5877  ;;  %5897 = vtanh.f32 %v3730_v15  ;;  %v3621_v3 = vadd.f32 1.0, %v5876_v52 }
 0x71e   :  { %v5880_v40 = vpop.eup %5879  ;;  %5899 = vtanh.f32 %v3731_v13  ;;  %v3622_v47 = vadd.f32 1.0, %v5878_v14 }
 0x71f   :  { %v5882_v37 = vpop.eup %5881  ;;  %5901 = vrcp.f32 %v3618_v43  ;;  %v3623_v45 = vadd.f32 1.0, %v5880_v40 }
 0x720   :  { %v5884_v63 = vpop.eup %5883  ;;  %5903 = vrcp.f32 %v3619_v19  ;;  %v3624_v27 = vadd.f32 1.0, %v5882_v37 }
 0x721   :  { %v5886_v55 = vpop.eup %5885  ;;  %5905 = vrcp.f32 %v3620_v34 }
 0x722   :  { %v5888_v60 = vpop.eup %5887  ;;  %5907 = vrcp.f32 %v3621_v3  ;;  %v3740_v1 = vsub.f32 1.0, %v5886_v55  ;;  %v3756_v44 = vmul.f32 %v5886_v55, %v7264_v39 }
 0x723   :  { %v5890_v50 = vpop.eup %5889  ;;  %5909 = vrcp.f32 %v3622_v47 }
 0x724   :  { %v5892_v49 = vpop.eup %5891  ;;  %5911 = vrcp.f32 %v3623_v45  ;;  %v3748_v10 = vmul.f32 %v5884_v63, %v3740_v1 }
 0x725   :  { %v5894_v5 = vpop.eup %5893  ;;  %5913 = vrcp.f32 %v3624_v27 }
 0x726   :  { %v5896_v6 = vpop.eup %5895  ;;  %v7420_v26 = vadd.f32 %v3756_v44, %v3748_v10 }
 0x727   :  { %v5898_v25 = vpop.eup %5897 }
 0x728   :  { %v5900_v9 = vpop.eup %5899  ;;  %3772 = vst [vmem:[#allocation10 + $0x5] sm:$0x1] %v7420_v26  ;;  %v3796_v39 = vpack.c.bf16 %v7420_v26, %v7420_v26 }
 0x729   :  { %v5902_v0 = vpop.eup %5901 }
 0x72a   :  { %v5904_v23 = vpop.eup %5903  ;;  %v3741_v2 = vsub.f32 1.0, %v5902_v0  ;;  %v3757_v59 = vmul.f32 %v5902_v0, %v7273_v57  ;;  %v3812_v45 = vunpack.c.l.b16 %v3796_v39 }
 0x72b   :  { %v5906_v56 = vpop.eup %5905  ;;  %v3742_v33 = vsub.f32 1.0, %v5904_v23  ;;  %v3758_v12 = vmul.f32 %v5904_v23, %v7275_v8 }
 0x72c   :  { %v5908_v46 = vpop.eup %5907  ;;  %v3743_v41 = vsub.f32 1.0, %v5906_v56  ;;  %v3749_v30 = vmul.f32 %v5888_v60, %v3741_v2  ;;  %v3759_v42 = vmul.f32 %v5906_v56, %v7280_v51 }
 0x72d   :  { %v5910_v36 = vpop.eup %5909  ;;  %v3744_v61 = vsub.f32 1.0, %v5908_v46  ;;  %v3750_v35 = vmul.f32 %v5890_v50, %v3742_v33  ;;  %v3760_v17 = vmul.f32 %v5908_v46, %v7283_v11 }
 0x72e   :  { %v5912_v28 = vpop.eup %5911  ;;  %v3745_v54 = vsub.f32 1.0, %v5910_v36  ;;  %v3751_v38 = vmul.f32 %v5892_v49, %v3743_v41  ;;  %v7429_v18 = vadd.f32 %v3757_v59, %v3749_v30  ;;  %v3761_v16 = vmul.f32 %v5910_v36, %v7290_v4  ;;  %v6130_v36 = vld [vmem:[#allocation9 + $0x20] ss:$12 sps:$4 sm:$0xff]  }
 0x72f   :  { %v5914_v7 = vpop.eup %5913  ;;  %v3752_v29 = vmul.f32 %v5894_v5, %v3744_v61  ;;  %v7431_v57 = vadd.f32 %v3758_v12, %v3750_v35  ;;  %v3746_v21 = vsub.f32 1.0, %v5912_v28  ;;  %v3762_v51 = vmul.f32 %v5912_v28, %v7295_v58  ;;  %v6131_v61 = vld [vmem:[#allocation9 + $0x34] ss:$12 sps:$4 sm:$0xff]   ;;  %v6136_v35 = vld [vmem:[#allocation9 + $0x50] ss:$12 sps:$4 sm:$0xff]  }
 0x730   :  { %3773 = vst [vmem:[#allocation10 + $0xd] sm:$0x1] %v7429_v18  ;;  %v3747_v15 = vsub.f32 1.0, %v5914_v7  ;;  %v3753_v8 = vmul.f32 %v5896_v6, %v3745_v54  ;;  %v7436_v43 = vadd.f32 %v3759_v42, %v3751_v38  ;;  %v3797_v13 = vpack.c.bf16 %v7429_v18, %v7429_v18  ;;  %v6137_v12 = vld [vmem:[#allocation9 + $0x64] ss:$12 sps:$4 sm:$0xff]  }
 0x731   :  { %3774 = vst [vmem:[#allocation10 + $0x15] sm:$0x1] %v7431_v57  ;;  %v3754_v11 = vmul.f32 %v5898_v25, %v3746_v21  ;;  %v7439_v52 = vadd.f32 %v3760_v17, %v3752_v29  ;;  %v3798_v19 = vpack.c.bf16 %v7431_v57, %v7431_v57  ;;  %v3763_v14 = vmul.f32 %v5914_v7, %v7300_v24  ;;  %v6139_v42 = vld [vmem:[#allocation9 + $0x68] ss:$12 sps:$4 sm:$0xff]   ;;  %v6141_v54 = vld [vmem:[#allocation9 + $0x78] ss:$12 sps:$4 sm:$0xff]  }
 0x732   :  { %v3755_v4 = vmul.f32 %v5900_v9, %v3747_v15  ;;  %v7446_v34 = vadd.f32 %v3761_v16, %v3753_v8  ;;  %3775 = vst [vmem:[#allocation10 + $0x1d] sm:$0x1] %v7436_v43  ;;  %v3799_v58 = vpack.c.bf16 %v7436_v43, %v7436_v43  ;;  %v3813_v37 = vunpack.c.l.b16 %v3797_v13  ;;  %v6140_v28 = vld [vmem:[#allocation9 + $0x7c] ss:$12 sps:$4 sm:$0xff]   ;;  %v6142_v38 = vld [vmem:[#allocation9 + $0x80] ss:$12 sps:$4 sm:$0xff]  }
 0x733   :  { %v7451_v40 = vadd.f32 %v3762_v51, %v3754_v11  ;;  %3776 = vst [vmem:[#allocation10 + $0x25] sm:$0x1] %v7439_v52  ;;  %v3800_v3 = vpack.c.bf16 %v7439_v52, %v7439_v52  ;;  %v3814_v47 = vunpack.c.l.b16 %v3798_v19  ;;  %v6143_v17 = vld [vmem:[#allocation9 + $0x94] ss:$12 sps:$4 sm:$0xff]   ;;  %v6144_v7 = vld [vmem:[#allocation9 + $0x90] ss:$12 sps:$4 sm:$0xff]  }
 0x734   :  { %v7456_v63 = vadd.f32 %v3763_v14, %v3755_v4  ;;  %3777 = vst [vmem:[#allocation10 + $0x2d] sm:$0x1] %v7446_v34  ;;  %v3801_v24 = vpack.c.bf16 %v7446_v34, %v7446_v34  ;;  %v3815_v55 = vunpack.c.l.b16 %v3799_v58  ;;  %v3820_v1 = vrot.slane %v3813_v37, 7  ;;  %v6145_v29 = vld [vmem:[#allocation9 + $0x98] ss:$12 sps:$4 sm:$0xff]  }
 0x735   :  { %3778 = vst [vmem:[#allocation10 + $0x35] sm:$0x1] %v7451_v40  ;;  %v3802_v27 = vpack.c.bf16 %v7451_v40, %v7451_v40  ;;  %v3816_v60 = vunpack.c.l.b16 %v3800_v3  ;;  %v3822_v50 = vrot.slane %v3814_v47, 6  ;;  %v6146_v21 = vld [vmem:[#allocation9 + $0xac] ss:$12 sps:$4 sm:$0xff]  }
 0x736   :  { %3779 = vst [vmem:[#allocation10 + $0x3d] sm:$0x1] %v7456_v63  ;;  %v3803_v49 = vpack.c.bf16 %v7456_v63, %v7456_v63  ;;  %v3817_v10 = vunpack.c.l.b16 %v3801_v24  ;;  %v3824_v44 = vrot.slane %v3815_v55, 5  ;;  %v3821_v6 = vsel %vm1174_vm1, %v3820_v1, %v3812_v45  ;;  %v6147_v16 = vld [vmem:[#allocation9 + $0xa8] ss:$12 sps:$4 sm:$0xff]  }
 0x737   :  { %v3818_v5 = vunpack.c.l.b16 %v3802_v27  ;;  %v3823_v9 = vsel %vm1177_vm2, %v3822_v50, %v3821_v6  ;;  %v3826_v0 = vrot.slane %v3816_v60, 4  ;;  %v6148_v15 = vld [vmem:[#allocation9 + $0xb0] ss:$12 sps:$4 sm:$0xff]   ;;  %v7493_v45 = vld [vmem:[#allocation2 + $0x6] ss:$8 sm:$0x7] }
 0x738   :  { %v3819_v25 = vunpack.c.l.b16 %v3803_v49  ;;  %v3825_v23 = vsel %vm1180_vm3, %v3824_v44, %v3823_v9  ;;  %v3828_v2 = vrot.slane %v3817_v10, 3  ;;  %v7495_v55 = vld [vmem:[#allocation2 + $0x1e] ss:$8 sm:$0x7] }
 0x739   :  { %v3827_v56 = vsel %vm1183_vm4, %v3826_v0, %v3825_v23  ;;  %v3830_v33 = vrot.slane %v3818_v5, 2  ;;  %v7499_v49 = vld [vmem:[#allocation2 + $0x36] ss:$8 sm:$0x7] }
 0x73a   :  { %v3829_v46 = vsel %vm1186_vm5, %v3828_v2, %v3827_v56  ;;  %v3832_v41 = vrot.slane %v3819_v25, 1  ;;  %v7501_v10 = vld [vmem:[#allocation2 + $0x4e] ss:$8 sm:$0x7] }
 0x73b   :  { %v3831_v30 = vsel %vm1189_vm6, %v3830_v33, %v3829_v46  ;;  %v7505_v6 = vld [vmem:[#allocation2 + $0x66] ss:$8 sm:$0x7] }
 0x73c   :  { %v3833_v59 = vsel %vm1192_vm7, %v3832_v41, %v3831_v30  ;;  %v7507_v25 = vld [vmem:[#allocation2 + $0x7e] ss:$8 sm:$0x7] }
 0x73d   :  { %v3834_v39 = vpack.c.b16 %v3833_v59, %v3833_v59  ;;  %v7511_v56 = vld [vmem:[#allocation2 + $0x96] ss:$8 sm:$0x7] }
 0x73e   :  { %v7515_v59 = vld [vmem:[#allocation2 + $0xae] ss:$8 sm:$0x7] }
 0x73f   :  { %3869 = vmatmul.mubr.bf16.vlgmr.msra.gmra.mrb[40].mxu0 %v3834_v39  ;;  %5335 = vmatmul.mubr.bf16.vlgmr.msra.gmra.mrb[32].mxu1 %v3834_v39 }
 0x740   :  { %4365 = vmatpush1.bf16.msra.mxu0 %v7318_v32  ;;  %5339 = vmatpush3.bf16.msra.mxu1 %v7321_v22  ;;  %v6132_v32 = vld [vmem:[#allocation9 + $0x30] ss:$12 sps:$4 sm:$0xff]   ;;  %v6133_v22 = vld [vmem:[#allocation9 + $0x38] ss:$12 sps:$4 sm:$0xff]  }
 0x741   :  { %4366 = vmatprep.subr.bf16.mxu0 %v7324_v31  ;;  %5340 = vmatprep.subr.bf16.mxu1 %v7719_v48  ;;  %v6134_v31 = vld [vmem:[#allocation9 + $0x4c] ss:$12 sps:$4 sm:$0xff]  }
 0x742   :  { %4396 = vmatprep.mubr.bf16.mxu0 %v7720_v62  ;;  %5354 = vmatprep.mubr.msk.bf16.mxu1 %vm6253_vm0, %v7719_v48  ;;  %v6135_v62 = vld [vmem:[#allocation9 + $0x48] ss:$12 sps:$4 sm:$0xff]  }
 0x744   :  { %4367 = vmatpush1.bf16.msra.mxu0 %v7331_v53  ;;  %5341 = vmatpush3.bf16.msra.mxu1 %v6130_v36  ;;  %v6138_v53 = vld [vmem:[#allocation9 + $0x60] ss:$12 sps:$4 sm:$0xff]  }
 0x745   :  { %4368 = vmatprep.subr.bf16.mxu0 %v6131_v61  ;;  %5342 = vmatprep.subr.bf16.mxu1 %v7719_v48 }
 0x748   :  { %4369 = vmatpush1.bf16.msra.mxu0 %v6132_v32  ;;  %5343 = vmatpush3.bf16.msra.mxu1 %v6133_v22 }
 0x749   :  { %4370 = vmatprep.subr.bf16.mxu0 %v6134_v31  ;;  %5344 = vmatprep.subr.bf16.mxu1 %v7719_v48 }
 0x74c   :  { %4371 = vmatpush1.bf16.msra.mxu0 %v6135_v62  ;;  %5345 = vmatpush3.bf16.msra.mxu1 %v6136_v35 }
 0x74d   :  { %4372 = vmatprep.subr.bf16.mxu0 %v6137_v12  ;;  %5346 = vmatprep.subr.bf16.mxu1 %v7719_v48 }
 0x750   :  { %4373 = vmatpush1.bf16.msra.mxu0 %v6138_v53  ;;  %5347 = vmatpush3.bf16.msra.mxu1 %v6139_v42 }
 0x751   :  { %4374 = vmatprep.subr.bf16.mxu0 %v6140_v28  ;;  %5348 = vmatprep.subr.bf16.mxu1 %v7719_v48 }
 0x754   :  { %4375 = vmatpush1.bf16.msra.mxu0 %v6141_v54  ;;  %5349 = vmatpush3.bf16.msra.mxu1 %v6142_v38 }
 0x755   :  { %4376 = vmatprep.subr.bf16.mxu0 %v6143_v17  ;;  %5350 = vmatprep.subr.bf16.mxu1 %v7719_v48 }
 0x758   :  { %4377 = vmatpush1.bf16.msra.mxu0 %v6144_v7  ;;  %5351 = vmatpush3.bf16.msra.mxu1 %v6145_v29  ;;  %v4039_v7 = vrot.slane %v7493_v45, 1 }
 0x759   :  { %4378 = vmatprep.subr.bf16.mxu0 %v6146_v21  ;;  %5352 = vmatprep.subr.bf16.mxu1 %v7719_v48  ;;  %v4040_v21 = vrot.slane %v7495_v55, 1 }
 0x75c   :  { %4379 = vmatpush1.bf16.msra.mxu0 %v6147_v16  ;;  %5353 = vmatpush3.bf16.msra.mxu1 %v6148_v15 }
 0x812   :  { %v3870_v8 = vpop.f32.mrb[40].mxu0  ;;  %v7488_v51 = vpop.f32.mrb[32].mxu1 }
 0x813   :  { %v3918_v11 = vcombine.high %v3870_v8, %v3870_v8  ;;  %v3925_v13 = vrot.slane %v3870_v8, %v6485_v20  ;;  %v3872_v19 = vpop.f32.mrb[41].mxu0  ;;  %v5336_v4 = vpop.f32.mrb[33].mxu1  ;;  %v7529_v8 = vld [vmem:[%s7696_s4] ss:$0 sm:$0xff]  ;;  %s6256_s4 = smov [#allocation10]  }
 0x814   :  { %v3874_v14 = vpop.f32.mrb[42].mxu0  ;;  %v3914_v58 = vpop.f32.mrb[34].mxu1  ;;  %v4063_v5 = vrot.slane %v3872_v19, %v6485_v20  ;;  %v4056_v30 = vcombine.high %v3872_v19, %v3872_v19  ;;  %v4041_v19 = vrot.slane %v7499_v49, 1  ;;  %v4042_v4 = vrot.slane %v7501_v10, 1  ;;  %s4900_s14 = sshll.u32 %s6256_s4, 4  ;;  %s4901_s14 = int_to_ptr.vmem [resolvable:$true] %s4900_s14 }
 0x815   :  { %v3932_v3 = vrot.slane %v3918_v11, %v6485_v20  ;;  %v3933_v37 = vcombine.high %v3925_v13, %v3925_v13  ;;  %v3941_v47 = vrot.slane %v3925_v13, %v6485_v20  ;;  %v3875_v48 = vpop.f32.mrb[43].mxu0  ;;  %v5337_v24 = vpop.f32.mrb[35].mxu1  ;;  %v4169_v11 = vadd.f32 %v7529_v8, %v7488_v51  ;;  %s6216_s15 = scalar_lea.vmem %s4901_s14, 1024  ;;  %p6221_p11 = scmp.lt.s32.totalorder %s4901_s14, %s4901_s14 }
 0x816   :  { %v4071_v53 = vcombine.high %v4063_v5, %v4063_v5  ;;  %v4079_v28 = vrot.slane %v4063_v5, %v6485_v20  ;;  %v4070_v38 = vrot.slane %v4056_v30, %v6485_v20  ;;  %v4043_v24 = vrot.slane %v7505_v6, 1  ;;  %p6217_p10 = scmp.ne.s32.totalorder %s4901_s14, %s6216_s15  ;;  %p6222_p12 = scmp.lt.s32.totalorder %s6216_s15, %s6216_s15 }
 0x817   :  { %v3934_v27 = vcombine.high %v3932_v3, %v3932_v3  ;;  %v3948_v60 = vrot.slane %v3932_v3, %v6485_v20  ;;  %v3955_v1 = vrot.slane %v3933_v37, %v6485_v20  ;;  %v3963_v50 = vcombine.high %v3941_v47, %v3941_v47 }
 0x818   :  { %v3975_v44 = vadd.f32 %v3941_v47, %v7493_v45  ;;  %v4093_v29 = vrot.slane %v4071_v53, %v6485_v20  ;;  %v4113_v16 = vadd.f32 %v4079_v28, %v4039_v7  ;;  %v4072_v15 = vcombine.high %v4070_v38, %v4070_v38  ;;  %p6223_p13 = por %p6222_p12, %p6221_p11 }
 0x819   :  { %v3962_v9 = vrot.slane %v3934_v27, %v6485_v20  ;;  %v3964_v0 = vcombine.high %v3948_v60, %v3948_v60  ;;  %v3965_v23 = vcombine.high %v3955_v1, %v3955_v1  ;;  %v3976_v2 = vadd.f32 %v3955_v1, %v7495_v55 }
 0x81a   :  { %v3977_v33 = vadd.f32 %v3963_v50, %v7499_v49  ;;  %v3979_v46 = vadd.f32 %v3948_v60, %v7505_v6  ;;  %v5058_v41 = vmul.f32 -1.442695, %v3975_v44  ;;  %v4114_v13 = vadd.f32 %v4093_v29, %v4040_v21  ;;  %p6224_p0 = pnand %p6223_p13, %p6217_p10 }
 0x81b   :  { %v3966_v39 = vcombine.high %v3962_v9, %v3962_v9  ;;  %v3978_v36 = vadd.f32 %v3965_v23, %v7501_v10  ;;  %v3980_v61 = vadd.f32 %v3962_v9, %v7507_v25  ;;  %v3981_v32 = vadd.f32 %v3964_v0, %v7511_v56 }
 0x81c   :  { %5915 = vpow2.f32 %v5058_v41  ;;  %v5059_v22 = vmul.f32 -1.442695, %v3976_v2  ;;  %v5060_v31 = vmul.f32 -1.442695, %v3977_v33  ;;  %v5062_v12 = vmul.f32 -1.442695, %v3979_v46 }
 0x81d   :  { %v3982_v62 = vadd.f32 %v3966_v39, %v7515_v59  ;;  %v5061_v35 = vmul.f32 -1.442695, %v3978_v36  ;;  %v5063_v42 = vmul.f32 -1.442695, %v3980_v61  ;;  %v5064_v54 = vmul.f32 -1.442695, %v3981_v32 }
 0x81e   :  { %5917 = vpow2.f32 %v5059_v22  ;;  %v4086_v58 = vrot.slane %v4070_v38, %v6485_v20  ;;  %v4101_v3 = vcombine.high %v4079_v28, %v4079_v28  ;;  %v5066_v37 = vmul.f32 -1.442695, %v4113_v16 }
 0x81f   :  { %5919 = vpow2.f32 %v5060_v31  ;;  %v5065_v17 = vmul.f32 -1.442695, %v3982_v62  ;;  %v5067_v47 = vmul.f32 -1.442695, %v4114_v13  ;;  %v4100_v27 = vrot.slane %v4072_v15, %v6485_v20 }
 0x820   :  { %5921 = vpow2.f32 %v5061_v35  ;;  %v4103_v60 = vcombine.high %v4093_v29, %v4093_v29  ;;  %v4171_v50 = vcombine.high %v4169_v11, %v4169_v11  ;;  %v4044_v51 = vrot.slane %v7507_v25, 1 }
 0x821   :  { %5923 = vpow2.f32 %v5062_v12  ;;  %v4045_v44 = vrot.slane %v7511_v56, 1  ;;  %v4178_v0 = vrot.slane %v4169_v11, %v6485_v20  ;;  %v4046_v23 = vrot.slane %v7515_v59, 1 }
 0x822   :  { %5925 = vpow2.f32 %v5063_v42  ;;  %v4102_v46 = vcombine.high %v4086_v58, %v4086_v58  ;;  %v4115_v41 = vadd.f32 %v4101_v3, %v4041_v19  ;;  %v4104_v36 = vcombine.high %v4100_v27, %v4100_v27 }
 0x823   :  { %5927 = vpow2.f32 %v5064_v54  ;;  %v4116_v61 = vadd.f32 %v4103_v60, %v4042_v4  ;;  %v4185_v31 = vrot.slane %v4171_v50, %v6485_v20  ;;  %v4117_v62 = vadd.f32 %v4086_v58, %v4043_v24 }
 0x824   :  { %5929 = vpow2.f32 %v5065_v17  ;;  %v4186_v53 = vcombine.high %v4178_v0, %v4178_v0  ;;  %v4118_v42 = vadd.f32 %v4100_v27, %v4044_v51  ;;  %v4119_v38 = vadd.f32 %v4102_v46, %v4045_v44 }
 0x825   :  { %5931 = vpow2.f32 %v5066_v37  ;;  %v5068_v17 = vmul.f32 -1.442695, %v4115_v41  ;;  %v4120_v29 = vadd.f32 %v4104_v36, %v4046_v23  ;;  %v5069_v21 = vmul.f32 -1.442695, %v4116_v61 }
 0x826   :  { %v5916_v14 = vpop.eup %5915  ;;  %v5070_v16 = vmul.f32 -1.442695, %v4117_v62  ;;  %v4187_v15 = vcombine.high %v4185_v31, %v4185_v31  ;;  %v4194_v11 = vrot.slane %v4178_v0, %v6485_v20  ;;  %v5071_v13 = vmul.f32 -1.442695, %v4118_v42 }
 0x827   :  { %v4007_v48 = vadd.f32 1.0, %v5916_v14  ;;  %v4208_v4 = vrot.slane %v4186_v53, %v6485_v20  ;;  %v5072_v14 = vmul.f32 -1.442695, %v4119_v38  ;;  %v4236_v3 = vrot.slane %v7493_v45, 2 }
 0x828   :  { %v5918_v1 = vpop.eup %5917  ;;  %v4237_v37 = vrot.slane %v7495_v55, 2  ;;  %v4238_v24 = vrot.slane %v7499_v49, 2  ;;  %v4201_v27 = vrot.slane %v4185_v31, %v6485_v20  ;;  %v4215_v50 = vrot.slane %v4187_v15, %v6485_v20 }
 0x829   :  { %v5920_v5 = vpop.eup %5919  ;;  %v4008_v9 = vadd.f32 1.0, %v5918_v1  ;;  %5933 = vrcp.f32 %v4007_v48  ;;  %v4216_v51 = vcombine.high %v4194_v11, %v4194_v11  ;;  %v4239_v23 = vrot.slane %v7501_v10, 2 }
 0x82a   :  { %v5922_v2 = vpop.eup %5921  ;;  %v4009_v33 = vadd.f32 1.0, %v5920_v5  ;;  %5935 = vpow2.f32 %v5067_v47  ;;  %v5073_v47 = vmul.f32 -1.442695, %v4120_v29  ;;  %v4240_v49 = vrot.slane %v7505_v6, 2 }
 0x82b   :  { %v5924_v30 = vpop.eup %5923  ;;  %v4010_v39 = vadd.f32 1.0, %v5922_v2  ;;  %5937 = vrcp.f32 %v4008_v9  ;;  %v4218_v9 = vcombine.high %v4208_v4, %v4208_v4  ;;  %v4241_v46 = vrot.slane %v7507_v25, 2 }
 0x82c   :  { %v5926_v32 = vpop.eup %5925  ;;  %v4011_v22 = vadd.f32 1.0, %v5924_v30  ;;  %5939 = vrcp.f32 %v4009_v33  ;;  %v4217_v36 = vcombine.high %v4201_v27, %v4201_v27  ;;  %v4219_v31 = vcombine.high %v4215_v50, %v4215_v50 }
 0x82d   :  { %v5928_v35 = vpop.eup %5927  ;;  %v4012_v12 = vadd.f32 1.0, %v5926_v32  ;;  %5941 = vrcp.f32 %v4010_v39  ;;  %v4242_v6 = vrot.slane %v7511_v56, 2  ;;  %v4243_v42 = vrot.slane %v7515_v59, 2 }
 0x82e   :  { %v5930_v28 = vpop.eup %5929  ;;  %v4013_v54 = vadd.f32 1.0, %v5928_v35  ;;  %5943 = vrcp.f32 %v4011_v22 }
 0x82f   :  { %v4014_v7 = vadd.f32 1.0, %v5930_v28  ;;  %5945 = vrcp.f32 %v4012_v12  ;;  %v5932_v19 = vpop.eup %5931 }
 0x830   :  { %5947 = vrcp.f32 %v4013_v54  ;;  %v4145_v44 = vadd.f32 1.0, %v5932_v19 }
 0x831   :  { %5949 = vrcp.f32 %v4014_v7 }
 0x832   :  { %5951 = vpow2.f32 %v5068_v17 }
 0x833   :  { %v5934_v58 = vpop.eup %5933  ;;  %5953 = vpow2.f32 %v5069_v21 }
 0x834   :  { %v5936_v48 = vpop.eup %5935  ;;  %v4228_v60 = vmul.f32 %v5934_v58, %v4194_v11  ;;  %5955 = vpow2.f32 %v5070_v16 }
 0x835   :  { %v5938_v1 = vpop.eup %5937  ;;  %5957 = vpow2.f32 %v5071_v13  ;;  %v4146_v7 = vadd.f32 1.0, %v5936_v48 }
 0x836   :  { %v5940_v5 = vpop.eup %5939  ;;  %v4229_v45 = vmul.f32 %v5938_v1, %v4208_v4  ;;  %v4252_v0 = vadd.f32 %v4236_v3, %v4228_v60  ;;  %5959 = vpow2.f32 %v5072_v14 }
 0x837   :  { %v5942_v55 = vpop.eup %5941  ;;  %v4230_v2 = vmul.f32 %v5940_v5, %v4216_v51  ;;  %5961 = vpow2.f32 %v5073_v47 }
 0x838   :  { %v5944_v33 = vpop.eup %5943  ;;  %v4231_v41 = vmul.f32 %v5942_v55, %v4218_v9  ;;  %v4253_v30 = vadd.f32 %v4237_v37, %v4229_v45  ;;  %5963 = vtanh.f32 %v4252_v0 }
 0x839   :  { %v5946_v39 = vpop.eup %5945  ;;  %v4232_v61 = vmul.f32 %v5944_v33, %v4201_v27  ;;  %v4254_v32 = vadd.f32 %v4238_v24, %v4230_v2  ;;  %5965 = vrcp.f32 %v4145_v44 }
 0x83a   :  { %v5948_v22 = vpop.eup %5947  ;;  %v4233_v62 = vmul.f32 %v5946_v39, %v4215_v50  ;;  %v4255_v35 = vadd.f32 %v4239_v23, %v4231_v41  ;;  %5967 = vtanh.f32 %v4253_v30 }
 0x83b   :  { %v5950_v10 = vpop.eup %5949  ;;  %v4234_v12 = vmul.f32 %v5948_v22, %v4217_v36  ;;  %v4256_v53 = vadd.f32 %v4240_v49, %v4232_v61  ;;  %5969 = vtanh.f32 %v4254_v32 }
 0x83c   :  { %v5952_v25 = vpop.eup %5951  ;;  %v4235_v28 = vmul.f32 %v5950_v10, %v4219_v31  ;;  %v4257_v54 = vadd.f32 %v4241_v46, %v4233_v62  ;;  %5971 = vtanh.f32 %v4255_v35 }
 0x83d   :  { %v5954_v38 = vpop.eup %5953  ;;  %v4258_v17 = vadd.f32 %v4242_v6, %v4234_v12  ;;  %5973 = vtanh.f32 %v4256_v53  ;;  %v4147_v16 = vadd.f32 1.0, %v5952_v25 }
 0x83e   :  { %v5956_v29 = vpop.eup %5955  ;;  %v4259_v21 = vadd.f32 %v4243_v42, %v4235_v28  ;;  %5975 = vtanh.f32 %v4257_v54  ;;  %v4148_v56 = vadd.f32 1.0, %v5954_v38 }
 0x83f   :  { %v5958_v15 = vpop.eup %5957  ;;  %5977 = vtanh.f32 %v4258_v17  ;;  %v4149_v13 = vadd.f32 1.0, %v5956_v29 }
 0x840   :  { %v5960_v11 = vpop.eup %5959  ;;  %5979 = vtanh.f32 %v4259_v21  ;;  %v4150_v4 = vadd.f32 1.0, %v5958_v15 }
 0x841   :  { %v5962_v19 = vpop.eup %5961  ;;  %5981 = vrcp.f32 %v4146_v7  ;;  %v4151_v14 = vadd.f32 1.0, %v5960_v11 }
 0x842   :  { %v5964_v59 = vpop.eup %5963  ;;  %5983 = vrcp.f32 %v4147_v16  ;;  %v4152_v3 = vadd.f32 1.0, %v5962_v19 }
 0x843   :  { %v5966_v58 = vpop.eup %5965  ;;  %5985 = vrcp.f32 %v4148_v56 }
 0x844   :  { %v5968_v37 = vpop.eup %5967  ;;  %5987 = vrcp.f32 %v4149_v13  ;;  %v4268_v47 = vsub.f32 1.0, %v5966_v58  ;;  %v4284_v60 = vmul.f32 %v5966_v58, %v7420_v26 }
 0x845   :  { %v5970_v48 = vpop.eup %5969  ;;  %5989 = vrcp.f32 %v4150_v4 }
 0x846   :  { %v5972_v24 = vpop.eup %5971  ;;  %5991 = vrcp.f32 %v4151_v14  ;;  %v4276_v27 = vmul.f32 %v5964_v59, %v4268_v47 }
 0x847   :  { %v5974_v1 = vpop.eup %5973  ;;  %5993 = vrcp.f32 %v4152_v3 }
 0x848   :  { %v5976_v50 = vpop.eup %5975  ;;  %v7556_v51 = vadd.f32 %v4284_v60, %v4276_v27 }
 0x849   :  { %v5978_v44 = vpop.eup %5977 }
 0x84a   :  { %v5980_v5 = vpop.eup %5979  ;;  %4300 = vst [vmem:[#allocation10 + $0x6] sm:$0x1] %v7556_v51  ;;  %v4324_v26 = vpack.c.bf16 %v7556_v51, %v7556_v51 }
 0x84b   :  { %v5982_v9 = vpop.eup %5981 }
 0x84c   :  { %v5984_v45 = vpop.eup %5983  ;;  %v4269_v0 = vsub.f32 1.0, %v5982_v9  ;;  %v4285_v46 = vmul.f32 %v5982_v9, %v7429_v18  ;;  %v4340_v11 = vunpack.c.l.b16 %v4324_v26 }
 0x84d   :  { %v5986_v55 = vpop.eup %5985  ;;  %v4270_v23 = vsub.f32 1.0, %v5984_v45  ;;  %v4286_v36 = vmul.f32 %v5984_v45, %v7431_v57 }
 0x84e   :  { %v5988_v49 = vpop.eup %5987  ;;  %v4271_v2 = vsub.f32 1.0, %v5986_v55  ;;  %v4277_v33 = vmul.f32 %v5968_v37, %v4269_v0  ;;  %v4287_v61 = vmul.f32 %v5986_v55, %v7436_v43 }
 0x84f   :  { %v5990_v41 = vpop.eup %5989  ;;  %v4272_v30 = vsub.f32 1.0, %v5988_v49  ;;  %v4278_v39 = vmul.f32 %v5970_v48, %v4270_v23  ;;  %v4288_v62 = vmul.f32 %v5988_v49, %v7439_v52 }
 0x850   :  { %v5992_v32 = vpop.eup %5991  ;;  %v4273_v22 = vsub.f32 1.0, %v5990_v41  ;;  %v4279_v31 = vmul.f32 %v5972_v24, %v4271_v2  ;;  %v7565_v35 = vadd.f32 %v4285_v46, %v4277_v33  ;;  %v4289_v53 = vmul.f32 %v5990_v41, %v7446_v34 }
 0x851   :  { %v5994_v10 = vpop.eup %5993  ;;  %v4280_v6 = vmul.f32 %v5974_v1, %v4272_v30  ;;  %v7567_v18 = vadd.f32 %v4286_v36, %v4278_v39  ;;  %v4274_v12 = vsub.f32 1.0, %v5992_v32  ;;  %v4290_v43 = vmul.f32 %v5992_v32, %v7451_v40 }
 0x852   :  { %4301 = vst [vmem:[#allocation10 + $0xe] sm:$0x1] %v7565_v35  ;;  %v4275_v25 = vsub.f32 1.0, %v5994_v10  ;;  %v4281_v57 = vmul.f32 %v5976_v50, %v4273_v22  ;;  %v7572_v42 = vadd.f32 %v4287_v61, %v4279_v31  ;;  %v4325_v54 = vpack.c.bf16 %v7565_v35, %v7565_v35 }
 0x853   :  { %4302 = vst [vmem:[#allocation10 + $0x16] sm:$0x1] %v7567_v18  ;;  %v4282_v52 = vmul.f32 %v5978_v44, %v4274_v12  ;;  %v7575_v28 = vadd.f32 %v4288_v62, %v4280_v6  ;;  %v4326_v38 = vpack.c.bf16 %v7567_v18, %v7567_v18  ;;  %v4291_v17 = vmul.f32 %v5994_v10, %v7456_v63  ;;  %v7613_v62 = vld [vmem:[#allocation2 + $0x7] ss:$8 sm:$0x7] }
 0x854   :  { %v4283_v34 = vmul.f32 %v5980_v5, %v4275_v25  ;;  %v7582_v7 = vadd.f32 %v4289_v53, %v4281_v57  ;;  %4303 = vst [vmem:[#allocation10 + $0x1e] sm:$0x1] %v7572_v42  ;;  %v4327_v40 = vpack.c.bf16 %v7572_v42, %v7572_v42  ;;  %v4341_v16 = vunpack.c.l.b16 %v4325_v54  ;;  %v7615_v10 = vld [vmem:[#allocation2 + $0x1f] ss:$8 sm:$0x7] }
 0x855   :  { %v7587_v29 = vadd.f32 %v4290_v43, %v4282_v52  ;;  %4304 = vst [vmem:[#allocation10 + $0x26] sm:$0x1] %v7575_v28  ;;  %v4328_v21 = vpack.c.bf16 %v7575_v28, %v7575_v28  ;;  %v4342_v15 = vunpack.c.l.b16 %v4326_v38  ;;  %v7619_v57 = vld [vmem:[#allocation2 + $0x37] ss:$8 sm:$0x7] }
 0x856   :  { %v7592_v56 = vadd.f32 %v4291_v17, %v4283_v34  ;;  %4305 = vst [vmem:[#allocation10 + $0x2e] sm:$0x1] %v7582_v7  ;;  %v4329_v63 = vpack.c.bf16 %v7582_v7, %v7582_v7  ;;  %v4343_v13 = vunpack.c.l.b16 %v4327_v40  ;;  %v4348_v59 = vrot.slane %v4341_v16, 7  ;;  %v7621_v43 = vld [vmem:[#allocation2 + $0x4f] ss:$8 sm:$0x7] }
 0x857   :  { %4306 = vst [vmem:[#allocation10 + $0x36] sm:$0x1] %v7587_v29  ;;  %v4330_v19 = vpack.c.bf16 %v7587_v29, %v7587_v29  ;;  %v4344_v4 = vunpack.c.l.b16 %v4328_v21  ;;  %v4350_v14 = vrot.slane %v4342_v15, 6  ;;  %v7625_v38 = vld [vmem:[#allocation2 + $0x67] ss:$8 sm:$0x7] }
 0x858   :  { %4307 = vst [vmem:[#allocation10 + $0x3e] sm:$0x1] %v7592_v56  ;;  %v4331_v58 = vpack.c.bf16 %v7592_v56, %v7592_v56  ;;  %v4345_v3 = vunpack.c.l.b16 %v4329_v63  ;;  %v4352_v37 = vrot.slane %v4343_v13, 5  ;;  %v4349_v48 = vsel %vm1174_vm1, %v4348_v59, %v4340_v11  ;;  %v7627_v34 = vld [vmem:[#allocation2 + $0x7f] ss:$8 sm:$0x7] }
 0x859   :  { %v4346_v47 = vunpack.c.l.b16 %v4330_v19  ;;  %v4351_v27 = vsel %vm1177_vm2, %v4350_v14, %v4349_v48  ;;  %v4354_v60 = vrot.slane %v4344_v4, 4  ;;  %v7631_v15 = vld [vmem:[#allocation2 + $0x97] ss:$8 sm:$0x7] }
 0x85a   :  { %v4347_v24 = vunpack.c.l.b16 %v4331_v58  ;;  %v4353_v1 = vsel %vm1180_vm3, %v4352_v37, %v4351_v27  ;;  %v4356_v50 = vrot.slane %v4345_v3, 3  ;;  %v7635_v4 = vld [vmem:[#allocation2 + $0xaf] ss:$8 sm:$0x7] }
 0x85b   :  { %v4355_v44 = vsel %vm1183_vm4, %v4354_v60, %v4353_v1  ;;  %v4358_v5 = vrot.slane %v4346_v47, 2 }
 0x85c   :  { %v4357_v9 = vsel %vm1186_vm5, %v4356_v50, %v4355_v44  ;;  %v4360_v45 = vrot.slane %v4347_v24, 1 }
 0x85d   :  { %v4359_v0 = vsel %vm1189_vm6, %v4358_v5, %v4357_v9 }
 0x85e   :  { %v4361_v55 = vsel %vm1192_vm7, %v4360_v45, %v4359_v0  ;;  %v4567_v45 = vrot.slane %v7613_v62, 1 }
 0x85f   :  { %v4362_v23 = vpack.c.b16 %v4361_v55, %v4361_v55  ;;  %v4568_v55 = vrot.slane %v7615_v10, 1 }
 0x861   :  { %4397 = vmatmul.mubr.bf16.vlgmr.msra.gmra.mrb[44].mxu0 %v4362_v23  ;;  %5355 = vmatmul.mubr.bf16.vlgmr.msra.gmra.mrb[36].mxu1 %v4362_v23 }
 0x934   :  { %v4398_v49 = vpop.f32.mrb[44].mxu0  ;;  %v4439_v2 = vpop.f32.mrb[36].mxu1 }
 0x935   :  { %v4446_v33 = vcombine.high %v4398_v49, %v4398_v49  ;;  %v4453_v46 = vrot.slane %v4398_v49, %v6485_v20  ;;  %v4400_v26 = vpop.f32.mrb[45].mxu0  ;;  %v5356_v41 = vpop.f32.mrb[37].mxu1 }
 0x936   :  { %v4402_v30 = vpop.f32.mrb[46].mxu0  ;;  %v4442_v39 = vpop.f32.mrb[38].mxu1  ;;  %v4591_v54 = vrot.slane %v4400_v26, %v6485_v20  ;;  %v4584_v19 = vcombine.high %v4400_v26, %v4400_v26  ;;  %v4569_v26 = vrot.slane %v7619_v57, 1  ;;  %v4570_v41 = vrot.slane %v7621_v43, 1 }
 0x937   :  { %v4460_v36 = vrot.slane %v4446_v33, %v6485_v20  ;;  %v4461_v61 = vcombine.high %v4453_v46, %v4453_v46  ;;  %v4469_v32 = vrot.slane %v4453_v46, %v6485_v20  ;;  %v4403_v22 = vpop.f32.mrb[47].mxu0  ;;  %v5357_v31 = vpop.f32.mrb[39].mxu1  ;;  %v4697_v33 = vadd.f32 %v7529_v8, %v4439_v2 }
 0x938   :  { %v4599_v60 = vcombine.high %v4591_v54, %v4591_v54  ;;  %v4607_v50 = vrot.slane %v4591_v54, %v6485_v20  ;;  %v4598_v5 = vrot.slane %v4584_v19, %v6485_v20  ;;  %v4571_v31 = vrot.slane %v7625_v38, 1 }
 0x939   :  { %v4462_v6 = vcombine.high %v4460_v36, %v4460_v36  ;;  %v4476_v12 = vrot.slane %v4460_v36, %v6485_v20  ;;  %v4483_v53 = vrot.slane %v4461_v61, %v6485_v20  ;;  %v4491_v25 = vcombine.high %v4469_v32, %v4469_v32 }
 0x93a   :  { %v4503_v52 = vadd.f32 %v4469_v32, %v7613_v62  ;;  %v4621_v0 = vrot.slane %v4599_v60, %v6485_v20  ;;  %v4641_v23 = vadd.f32 %v4607_v50, %v4567_v45  ;;  %v4600_v49 = vcombine.high %v4598_v5, %v4598_v5 }
 0x93b   :  { %v4490_v17 = vrot.slane %v4462_v6, %v6485_v20  ;;  %v4492_v40 = vcombine.high %v4476_v12, %v4476_v12  ;;  %v4493_v21 = vcombine.high %v4483_v53, %v4483_v53  ;;  %v4504_v16 = vadd.f32 %v4483_v53, %v7615_v10 }
 0x93c   :  { %v4505_v63 = vadd.f32 %v4491_v25, %v7619_v57  ;;  %v4507_v11 = vadd.f32 %v4476_v12, %v7625_v38  ;;  %v5074_v13 = vmul.f32 -1.442695, %v4503_v52  ;;  %v4642_v46 = vadd.f32 %v4621_v0, %v4568_v55 }
 0x93d   :  { %v4494_v59 = vcombine.high %v4490_v17, %v4490_v17  ;;  %v4506_v14 = vadd.f32 %v4493_v21, %v7621_v43  ;;  %v4508_v58 = vadd.f32 %v4490_v17, %v7627_v34  ;;  %v4509_v3 = vadd.f32 %v4492_v40, %v7631_v15 }
 0x93e   :  { %5995 = vpow2.f32 %v5074_v13  ;;  %v5075_v37 = vmul.f32 -1.442695, %v4504_v16  ;;  %v5076_v47 = vmul.f32 -1.442695, %v4505_v63  ;;  %v5078_v27 = vmul.f32 -1.442695, %v4507_v11 }
 0x93f   :  { %v4510_v48 = vadd.f32 %v4494_v59, %v7635_v4  ;;  %v5077_v24 = vmul.f32 -1.442695, %v4506_v14  ;;  %v5079_v1 = vmul.f32 -1.442695, %v4508_v58  ;;  %v5080_v44 = vmul.f32 -1.442695, %v4509_v3 }
 0x940   :  { %5997 = vpow2.f32 %v5075_v37  ;;  %v4614_v39 = vrot.slane %v4598_v5, %v6485_v20  ;;  %v4629_v36 = vcombine.high %v4607_v50, %v4607_v50  ;;  %v5082_v61 = vmul.f32 -1.442695, %v4641_v23 }
 0x941   :  { %5999 = vpow2.f32 %v5076_v47  ;;  %v5081_v9 = vmul.f32 -1.442695, %v4510_v48  ;;  %v5083_v32 = vmul.f32 -1.442695, %v4642_v46  ;;  %v4628_v6 = vrot.slane %v4600_v49, %v6485_v20 }
 0x942   :  { %6001 = vpow2.f32 %v5077_v24  ;;  %v4631_v12 = vcombine.high %v4621_v0, %v4621_v0  ;;  %v4699_v25 = vcombine.high %v4697_v33, %v4697_v33  ;;  %v4572_v8 = vrot.slane %v7627_v34, 1 }
 0x943   :  { %6003 = vpow2.f32 %v5078_v27  ;;  %v4573_v2 = vrot.slane %v7631_v15, 1  ;;  %v4706_v17 = vrot.slane %v4697_v33, %v6485_v20  ;;  %v4574_v40 = vrot.slane %v7635_v4, 1 }
 0x944   :  { %6005 = vpow2.f32 %v5079_v1  ;;  %v4630_v63 = vcombine.high %v4614_v39, %v4614_v39  ;;  %v4643_v11 = vadd.f32 %v4629_v36, %v4569_v26  ;;  %v4632_v59 = vcombine.high %v4628_v6, %v4628_v6 }
 0x945   :  { %6007 = vpow2.f32 %v5080_v44  ;;  %v4644_v14 = vadd.f32 %v4631_v12, %v4570_v41  ;;  %v4713_v37 = vrot.slane %v4699_v25, %v6485_v20  ;;  %v4645_v47 = vadd.f32 %v4614_v39, %v4571_v31 }
 0x946   :  { %6009 = vpow2.f32 %v5081_v9  ;;  %v4714_v27 = vcombine.high %v4706_v17, %v4706_v17  ;;  %v4646_v60 = vadd.f32 %v4628_v6, %v4572_v8  ;;  %v4647_v44 = vadd.f32 %v4630_v63, %v4573_v2 }
 0x947   :  { %6011 = vpow2.f32 %v5082_v61  ;;  %v5084_v5 = vmul.f32 -1.442695, %v4643_v11  ;;  %v4648_v45 = vadd.f32 %v4632_v59, %v4574_v40  ;;  %v5085_v0 = vmul.f32 -1.442695, %v4644_v14 }
 0x948   :  { %v5996_v30 = vpop.eup %5995  ;;  %v5086_v55 = vmul.f32 -1.442695, %v4645_v47  ;;  %v4715_v23 = vcombine.high %v4713_v37, %v4713_v37  ;;  %v4722_v49 = vrot.slane %v4706_v17, %v6485_v20  ;;  %v5087_v33 = vmul.f32 -1.442695, %v4646_v60 }
 0x949   :  { %v4535_v22 = vadd.f32 1.0, %v5996_v30  ;;  %v4736_v26 = vrot.slane %v4714_v27, %v6485_v20  ;;  %v5088_v41 = vmul.f32 -1.442695, %v4647_v44  ;;  %v4764_v39 = vrot.slane %v7613_v62, 2 }
 0x94a   :  { %v5998_v53 = vpop.eup %5997  ;;  %v4765_v36 = vrot.slane %v7615_v10, 2  ;;  %v5089_v61 = vmul.f32 -1.442695, %v4648_v45  ;;  %v4729_v31 = vrot.slane %v4713_v37, %v6485_v20  ;;  %v4744_v25 = vcombine.high %v4722_v49, %v4722_v49 }
 0x94b   :  { %v6000_v52 = vpop.eup %5999  ;;  %v4536_v54 = vadd.f32 1.0, %v5998_v53  ;;  %6013 = vrcp.f32 %v4535_v22  ;;  %v4766_v22 = vrot.slane %v7619_v57, 2  ;;  %v4743_v53 = vrot.slane %v4715_v23, %v6485_v20 }
 0x94c   :  { %v6002_v21 = vpop.eup %6001  ;;  %v4537_v16 = vadd.f32 1.0, %v6000_v52  ;;  %6015 = vpow2.f32 %v5083_v32  ;;  %v4746_v52 = vcombine.high %v4736_v26, %v4736_v26  ;;  %v4767_v17 = vrot.slane %v7621_v43, 2 }
 0x94d   :  { %v6004_v13 = vpop.eup %6003  ;;  %v4538_v19 = vadd.f32 1.0, %v6002_v21  ;;  %6017 = vrcp.f32 %v4536_v54  ;;  %v4768_v57 = vrot.slane %v7625_v38, 2  ;;  %v4770_v38 = vrot.slane %v7631_v15, 2 }
 0x94e   :  { %v6006_v58 = vpop.eup %6005  ;;  %v4539_v3 = vadd.f32 1.0, %v6004_v13  ;;  %6019 = vrcp.f32 %v4537_v16  ;;  %v4769_v16 = vrot.slane %v7627_v34, 2  ;;  %v4745_v13 = vcombine.high %v4729_v31, %v4729_v31 }
 0x94f   :  { %v6008_v48 = vpop.eup %6007  ;;  %v4540_v24 = vadd.f32 1.0, %v6006_v58  ;;  %6021 = vrcp.f32 %v4538_v19  ;;  %v4747_v58 = vcombine.high %v4743_v53, %v4743_v53 }
 0x950   :  { %v6010_v1 = vpop.eup %6009  ;;  %v4541_v50 = vadd.f32 1.0, %v6008_v48  ;;  %6023 = vrcp.f32 %v4539_v3 }
 0x951   :  { %v4542_v9 = vadd.f32 1.0, %v6010_v1  ;;  %6025 = vrcp.f32 %v4540_v24  ;;  %v6012_v46 = vpop.eup %6011  ;;  %v4771_v24 = vrot.slane %v7635_v4, 2 }
 0x952   :  { %6027 = vrcp.f32 %v4541_v50  ;;  %v4673_v8 = vadd.f32 1.0, %v6012_v46 }
 0x953   :  { %6029 = vrcp.f32 %v4542_v9 }
 0x954   :  { %6031 = vpow2.f32 %v5084_v5 }
 0x955   :  { %v6014_v30 = vpop.eup %6013  ;;  %6033 = vpow2.f32 %v5085_v0 }
 0x956   :  { %v6016_v32 = vpop.eup %6015  ;;  %v4756_v6 = vmul.f32 %v6014_v30, %v4722_v49  ;;  %6035 = vpow2.f32 %v5086_v55 }
 0x957   :  { %v6018_v12 = vpop.eup %6017  ;;  %6037 = vpow2.f32 %v5087_v33  ;;  %v4674_v44 = vadd.f32 1.0, %v6016_v32 }
 0x958   :  { %v6020_v2 = vpop.eup %6019  ;;  %v4757_v62 = vmul.f32 %v6018_v12, %v4736_v26  ;;  %v4780_v54 = vadd.f32 %v4764_v39, %v4756_v6  ;;  %6039 = vpow2.f32 %v5088_v41 }
 0x959   :  { %v6022_v10 = vpop.eup %6021  ;;  %v4758_v40 = vmul.f32 %v6020_v2, %v4744_v25  ;;  %6041 = vpow2.f32 %v5089_v61 }
 0x95a   :  { %v6024_v21 = vpop.eup %6023  ;;  %v4759_v63 = vmul.f32 %v6022_v10, %v4746_v52  ;;  %v4781_v20 = vadd.f32 %v4765_v36, %v4757_v62  ;;  %6043 = vtanh.f32 %v4780_v54 }
 0x95b   :  { %v6026_v11 = vpop.eup %6025  ;;  %v4760_v19 = vmul.f32 %v6024_v21, %v4729_v31  ;;  %v4782_v59 = vadd.f32 %v4766_v22, %v4758_v40  ;;  %6045 = vrcp.f32 %v4673_v8 }
 0x95c   :  { %v6028_v14 = vpop.eup %6027  ;;  %v4761_v3 = vmul.f32 %v6026_v11, %v4743_v53  ;;  %v4783_v37 = vadd.f32 %v4767_v17, %v4759_v63  ;;  %6047 = vtanh.f32 %v4781_v20 }
 0x95d   :  { %v6030_v43 = vpop.eup %6029  ;;  %v4762_v47 = vmul.f32 %v6028_v14, %v4745_v13  ;;  %v4784_v48 = vadd.f32 %v4768_v57, %v4760_v19  ;;  %6049 = vtanh.f32 %v4782_v59 }
 0x95e   :  { %v6032_v34 = vpop.eup %6031  ;;  %v4763_v27 = vmul.f32 %v6030_v43, %v4747_v58  ;;  %v4785_v60 = vadd.f32 %v4769_v16, %v4761_v3  ;;  %6051 = vtanh.f32 %v4783_v37 }
 0x95f   :  { %v6034_v1 = vpop.eup %6033  ;;  %v4786_v50 = vadd.f32 %v4770_v38, %v4762_v47  ;;  %6053 = vtanh.f32 %v4784_v48  ;;  %v4675_v45 = vadd.f32 1.0, %v6032_v34 }
 0x960   :  { %v6036_v5 = vpop.eup %6035  ;;  %v4787_v9 = vadd.f32 %v4771_v24, %v4763_v27  ;;  %6055 = vtanh.f32 %v4785_v60  ;;  %v4676_v15 = vadd.f32 1.0, %v6034_v1 }
 0x961   :  { %v6038_v0 = vpop.eup %6037  ;;  %6057 = vtanh.f32 %v4786_v50  ;;  %v4677_v23 = vadd.f32 1.0, %v6036_v5 }
 0x962   :  { %v6040_v55 = vpop.eup %6039  ;;  %6059 = vtanh.f32 %v4787_v9  ;;  %v4678_v33 = vadd.f32 1.0, %v6038_v0 }
 0x963   :  { %v6042_v49 = vpop.eup %6041  ;;  %6061 = vrcp.f32 %v4674_v44  ;;  %v4679_v46 = vadd.f32 1.0, %v6040_v55 }
 0x964   :  { %v6044_v4 = vpop.eup %6043  ;;  %6063 = vrcp.f32 %v4675_v45  ;;  %v4680_v41 = vadd.f32 1.0, %v6042_v49 }
 0x965   :  { %v6046_v26 = vpop.eup %6045  ;;  %6065 = vrcp.f32 %v4676_v15 }
 0x966   :  { %v6048_v30 = vpop.eup %6047  ;;  %6067 = vrcp.f32 %v4677_v23  ;;  %v4796_v39 = vsub.f32 1.0, %v6046_v26  ;;  %v4812_v22 = vmul.f32 %v6046_v26, %v7556_v51 }
 0x967   :  { %v6050_v36 = vpop.eup %6049  ;;  %6069 = vrcp.f32 %v4678_v33 }
 0x968   :  { %v6052_v61 = vpop.eup %6051  ;;  %6071 = vrcp.f32 %v4679_v46  ;;  %v4804_v32 = vmul.f32 %v6044_v4, %v4796_v39 }
 0x969   :  { %v6054_v31 = vpop.eup %6053  ;;  %6073 = vrcp.f32 %v4680_v41 }
 0x96a   :  { %v6056_v6 = vpop.eup %6055  ;;  %v4820_v12 = vadd.f32 %v4812_v22, %v4804_v32 }
 0x96b   :  { %v6058_v53 = vpop.eup %6057 }
 0x96c   :  { %v6060_v25 = vpop.eup %6059  ;;  %4828 = vst [vmem:[#allocation10 + $0x7] sm:$0x1] %v4820_v12 }
 0x96d   :  { %v6062_v8 = vpop.eup %6061 }
 0x96e   :  { %v6064_v2 = vpop.eup %6063  ;;  %v4797_v52 = vsub.f32 1.0, %v6062_v8  ;;  %v4813_v40 = vmul.f32 %v6062_v8, %v7565_v35 }
 0x96f   :  { %v6066_v62 = vpop.eup %6065  ;;  %v4798_v54 = vsub.f32 1.0, %v6064_v2  ;;  %v4814_v63 = vmul.f32 %v6064_v2, %v7567_v18 }
 0x970   :  { %v6068_v10 = vpop.eup %6067  ;;  %v4799_v17 = vsub.f32 1.0, %v6066_v62  ;;  %v4805_v57 = vmul.f32 %v6048_v30, %v4797_v52  ;;  %v4815_v19 = vmul.f32 %v6066_v62, %v7572_v42 }
 0x971   :  { %v6070_v21 = vpop.eup %6069  ;;  %v4800_v16 = vsub.f32 1.0, %v6068_v10  ;;  %v4806_v51 = vmul.f32 %v6050_v36, %v4798_v54  ;;  %v4816_v37 = vmul.f32 %v6068_v10, %v7575_v28 }
 0x972   :  { %v6072_v20 = vpop.eup %6071  ;;  %v4801_v11 = vsub.f32 1.0, %v6070_v21  ;;  %v4807_v13 = vmul.f32 %v6052_v61, %v4799_v17  ;;  %v4821_v59 = vadd.f32 %v4813_v40, %v4805_v57  ;;  %v4817_v35 = vmul.f32 %v6070_v21, %v7582_v7 }
 0x973   :  { %v6074_v14 = vpop.eup %6073  ;;  %v4802_v58 = vsub.f32 1.0, %v6072_v20  ;;  %v4808_v3 = vmul.f32 %v6054_v31, %v4800_v16  ;;  %v4822_v43 = vadd.f32 %v4814_v63, %v4806_v51  ;;  %v4818_v18 = vmul.f32 %v6072_v20, %v7587_v29 }
 0x974   :  { %v4803_v38 = vsub.f32 1.0, %v6074_v14  ;;  %v4809_v47 = vmul.f32 %v6056_v6, %v4801_v11  ;;  %v4823_v48 = vadd.f32 %v4815_v19, %v4807_v13  ;;  %4829 = vst [vmem:[#allocation10 + $0xf] sm:$0x1] %v4821_v59  ;;  %v4819_v27 = vmul.f32 %v6074_v14, %v7592_v56 }
 0x975   :  { %v4810_v34 = vmul.f32 %v6058_v53, %v4802_v58  ;;  %v4824_v24 = vadd.f32 %v4816_v37, %v4808_v3  ;;  %4830 = vst [vmem:[#allocation10 + $0x17] sm:$0x1] %v4822_v43 }
 0x976   :  { %v4811_v42 = vmul.f32 %v6060_v25, %v4803_v38  ;;  %v4825_v60 = vadd.f32 %v4817_v35, %v4809_v47  ;;  %4831 = vst [vmem:[#allocation10 + $0x1f] sm:$0x1] %v4823_v48 }
 0x977   :  { %v4826_v28 = vadd.f32 %v4818_v18, %v4810_v34  ;;  %4832 = vst [vmem:[#allocation10 + $0x27] sm:$0x1] %v4824_v24 }
 0x978   :  { %v4827_v1 = vadd.f32 %v4819_v27, %v4811_v42  ;;  %4833 = vst [vmem:[#allocation10 + $0x2f] sm:$0x1] %v4825_v60 }
 0x979   :  { %4834 = vst [vmem:[#allocation10 + $0x37] sm:$0x1] %v4826_v28 }
 0x97a   :  { %4835 = vst [vmem:[#allocation10 + $0x3f] sm:$0x1] %v4827_v1 }
 0x97b   :  { %6227 = shalt.err (!%p6224_p0)
}
 0x97c   :  { %s6228_s19 = scalar_lea.hbm %s7697_s5, 1024 }
 0x97d   :  { %p6229_p1 = scmp.ne.s32.totalorder %s7697_s5, %s6228_s19  ;;  %p6232_p2 = scmp.lt.u32.totalorder %s6228_s19, %s7697_s5 }
 0x97f   :  { %p6234_p3 = pnand %p6232_p2, %p6229_p1 }
 0x981   :  { %6237 = shalt.err (!%p6234_p3)
}
 0x982   :  { %4906 = dma.vmem_to_hbm [thread:$0]  %s4901_s14, 1024, %s7697_s5, [#allocation6], %s6248_s1, %s6248_s1, %s6249_s17  }
 0x983   :  { %6242 = dma.done.wait [#allocation6], 1024  }
 0x984   :  { %6243 = vsyncadd [#allocation6], 4294966272 }
 0x985   :  { %4910 = vsyncpa [#allocation5], 1 }
 0x986   :  { %4911 = vsyncpa [#allocation8], 1 }
 0x987   :  { %4912 = vsyncpa [#allocation6], 1 }

</bundles_post_ra>
